<compile_context>
chip_gen: v7x
topology: tpu7x:2x2x1
jax: 0.10.0
libtpu: 0.0.40
codegen_flags: <defaults>
</compile_context>

<pallas_src>
import functools
import math

import jax
import jax.numpy as jnp
from jax.experimental import pallas as pl
from jax.experimental.pallas import tpu as pltpu


def _decoder_layer_kernel(
    # activations / masks
    trg_ref, enc_ref, tmask_ref, smask_ref,
    # self-attention weights (head-major, bf16) + out-proj bias (f32)
    wq_s, wk_s, wv_s, wo_s, bo_s,
    # cross-attention weights
    wq_e, wk_e, wv_e, wo_e, bo_e,
    # layer-norm params (f32)
    g1, be1, g2, be2, g3, be3,
    # FFN weights (bf16) + biases (f32)
    w1, bb1, w2, bb2,
    # output
    out_ref,
    # VMEM scratch: cached head-major K/V for self- and cross-attention
    kh_s_ref, vh_s_ref, kh_c_ref, vh_c_ref,
    *, heads, head_size, q_block, compute_dtype,
):
    cd = compute_dtype
    q_idx = pl.program_id(1)
    row0 = pl.multiple_of(q_idx * q_block, q_block)
    inv_scale = jnp.float32(1.0 / math.sqrt(head_size))
    neg_big = jnp.float32(-1e9)

    # ---- K/V cache: computed once per batch element (q_idx == 0), reused for every
    # query tile.  Head-major weights make the per-head slab a major-axis ref index
    # (free) and each projection a plain full-contraction 2-D MXU matmul.
    @pl.when(q_idx == 0)
    def _build_kv_cache():
        t_all = trg_ref[0].astype(cd)      # (T, H)
        e_all = enc_ref[0].astype(cd)      # (S, H)
        for h in range(heads):
            kh_s_ref[h] = jnp.dot(t_all, wk_s[h],
                                  preferred_element_type=jnp.float32).astype(cd)
            vh_s_ref[h] = jnp.dot(t_all, wv_s[h],
                                  preferred_element_type=jnp.float32).astype(cd)
            kh_c_ref[h] = jnp.dot(e_all, wk_e[h],
                                  preferred_element_type=jnp.float32).astype(cd)
            vh_c_ref[h] = jnp.dot(e_all, wv_e[h],
                                  preferred_element_type=jnp.float32).astype(cd)

    # Query rows handled by this grid step, sliced from the single full-sequence block
    # (no duplicate trg DMA stream).
    trg_q = trg_ref[0, pl.ds(row0, q_block), :]                   # (TQ, H) f32

    # Additive masks: 0 where attended, -1e9 where masked (avoids -inf -> NaN rows).
    tbias = (1.0 - tmask_ref[0].astype(jnp.float32)) * neg_big    # (TQ, T)
    sbias = (1.0 - smask_ref[0].astype(jnp.float32)) * neg_big    # (TQ, S)

    def layer_norm(x, g_ref, b_ref):
        mu = jnp.mean(x, axis=-1, keepdims=True)
        var = jnp.mean((x - mu) ** 2, axis=-1, keepdims=True)
        return (x - mu) * jax.lax.rsqrt(var + 1e-5) * g_ref[0] + b_ref[0]

    def attend(x_q, bias, wq_h, kh_ref, vh_ref, wo_h, bo):
        x_cd = x_q.astype(cd)
        # Per-head Q projection (full-H contraction, bf16 operands / f32 accumulation);
        # the 1/sqrt(d) scale is folded into Q once.
        qs = [jnp.dot(x_cd, wq_h[h], preferred_element_type=jnp.float32) * inv_scale
              for h in range(heads)]
        Qh = jnp.stack(qs, axis=0).astype(cd)             # (h, TQ, d)
        Kh = kh_ref[...]                                  # (h, Tk, d) bf16, cached
        Vh = vh_ref[...]                                  # (h, Tk, d) bf16, cached

        s = jnp.einsum("hqd,hkd->hqk", Qh, Kh,
                       preferred_element_type=jnp.float32)        # (h, TQ, Tk)
        s = s + bias[None, :, :]
        s = s - jnp.max(s, axis=-1, keepdims=True)
        p = jnp.exp(s)
        denom = jnp.sum(p, axis=-1, keepdims=True)
        r = pl.reciprocal(denom, approx=True)             # EUP slot (cheap)
        r = r * (2.0 - denom * r)                         # one Newton refinement
        p = (p * r).astype(cd)

        ctx = jnp.einsum("hqk,hkd->hqd", p, Vh,
                         preferred_element_type=jnp.float32)      # (h, TQ, d)
        ctx = ctx.astype(cd)
        # Output projection: per-head (TQ,d)@(d,H) partials accumulated in f32 —
        # no (heads, TQ, H) intermediate, no lane-wise head concatenation.
        acc = jnp.dot(ctx[0], wo_h[0], preferred_element_type=jnp.float32)
        for h in range(1, heads):
            acc = acc + jnp.dot(ctx[h], wo_h[h], preferred_element_type=jnp.float32)
        return acc + bo[0]

    # --- self-attention block (dropout == identity, eval mode) ---
    a = attend(trg_q, tbias, wq_s, kh_s_ref, vh_s_ref, wo_s, bo_s)
    x = layer_norm(trg_q + a, g1, be1)
    # --- encoder (cross) attention block ---
    a = attend(x, sbias, wq_e, kh_c_ref, vh_c_ref, wo_e, bo_e)
    x = layer_norm(x + a, g2, be2)
    # --- position-wise feed-forward block ---
    hpf = jnp.dot(x.astype(cd), w1[...], preferred_element_type=jnp.float32) + bb1[0]
    hpf = jnp.maximum(hpf, 0.0)
    f = jnp.dot(hpf.astype(cd), w2[...], preferred_element_type=jnp.float32) + bb2[0]
    x = layer_norm(x + f, g3, be3)

    out_ref[0] = x.astype(out_ref.dtype)
    # TODO(synk): dropout is identity (eval mode); training-mode RNG dropout not implemented.


def decoder_layer(trg, enc_src, trg_mask, src_mask, params, *, heads,
                  q_block=None, compute_dtype=jnp.bfloat16):
    """trg: (B, T, H), enc_src: (B, S, H), trg_mask: (B, T, T), src_mask: (B, T, S)."""
    B, T, H = trg.shape
    S = enc_src.shape[1]
    head_size = H // heads
    cd = compute_dtype

    if q_block is None:
        q_block = min(T, 128)
    assert T % q_block == 0, "q_block must tile the target sequence length"
    n_q = T // q_block

    # ---- Host-side weight prep: bf16 + head-major layouts. ----
    def head_major_in(w):   # (H, H) [in, out] -> (heads, H, head_size)
        return w.reshape(H, heads, head_size).transpose(1, 0, 2).astype(cd)

    def head_major_out(w):  # (H, H) [in, out] -> (heads, head_size, H)
        return w.reshape(heads, head_size, H).astype(cd)

    w_args = [
        head_major_in(params["wq_s"]), head_major_in(params["wk_s"]),
        head_major_in(params["wv_s"]), head_major_out(params["wo_s"]),
        params["bo_s"],
        head_major_in(params["wq_e"]), head_major_in(params["wk_e"]),
        head_major_in(params["wv_e"]), head_major_out(params["wo_e"]),
        params["bo_e"],
        params["g1"], params["be1"], params["g2"], params["be2"],
        params["g3"], params["be3"],
        params["w1"].astype(cd), params["bb1"],
        params["w2"].astype(cd), params["bb2"],
    ]

    def const_spec(arr):
        # Weight/bias: one block covering the whole array, constant index map ->
        # fetched once (block index never changes across the grid).
        shape = arr.shape
        return pl.BlockSpec(shape, lambda b, q, _s=shape: (0,) * len(_s))

    w_specs = [const_spec(a) for a in w_args]

    in_specs = [
        pl.BlockSpec((1, T, H), lambda b, q: (b, 0, 0)),        # trg (full sequence)
        pl.BlockSpec((1, S, H), lambda b, q: (b, 0, 0)),        # enc_src (full sequence)
        pl.BlockSpec((1, q_block, T), lambda b, q: (b, q, 0)),  # trg_mask rows (bf16)
        pl.BlockSpec((1, q_block, S), lambda b, q: (b, q, 0)),  # src_mask rows (bf16)
    ] + w_specs

    kernel = functools.partial(
        _decoder_layer_kernel, heads=heads, head_size=head_size,
        q_block=q_block, compute_dtype=cd)

    out = pl.pallas_call(
        kernel,
        out_shape=jax.ShapeDtypeStruct((B, T, H), jnp.float32),
        grid_spec=pltpu.PrefetchScalarGridSpec(
            num_scalar_prefetch=0,
            grid=(B, n_q),
            in_specs=in_specs,
            out_specs=pl.BlockSpec((1, q_block, H), lambda b, q: (b, q, 0)),
            scratch_shapes=[
                pltpu.VMEM((heads, T, head_size), cd),   # cached self-attn K
                pltpu.VMEM((heads, T, head_size), cd),   # cached self-attn V
                pltpu.VMEM((heads, S, head_size), cd),   # cached cross-attn K
                pltpu.VMEM((heads, S, head_size), cd),   # cached cross-attn V
            ],
        ),
        compiler_params=pltpu.CompilerParams(
            # B parallel (megacore / 2-TC sharding); q arbitrary so the K/V scratch
            # cache is valid across query tiles of the same batch element.
            dimension_semantics=("parallel", "arbitrary"),
            vmem_limit_bytes=48 * 1024 * 1024,
        ),
    )(trg, enc_src, trg_mask.astype(cd), src_mask.astype(cd), *w_args)
    return out


def _reference(trg, enc_src, trg_mask, src_mask, params, *, heads,
               compute_dtype=jnp.bfloat16):
    """Plain-JAX reference mirroring the PyTorch forward (eval mode), using the same
    bf16-operand / f32-accumulation discipline as the kernel."""
    H = trg.shape[-1]
    hd = H // heads
    cd = compute_dtype
    inv = jnp.float32(1.0 / math.sqrt(hd))

    def mm(a, b):
        return jnp.dot(a.astype(cd), b.astype(cd), preferred_element_type=jnp.float32)

    def ln(x, g, b):
        mu = jnp.mean(x, -1, keepdims=True)
        var = jnp.mean((x - mu) ** 2, -1, keepdims=True)
        return (x - mu) / jnp.sqrt(var + 1e-5) * g[0] + b[0]

    def mha(q_in, kv_in, mask, wq, wk, wv, wo, bo):
        B, Tq, _ = q_in.shape
        Tk = kv_in.shape[1]
        Q = (mm(q_in, wq) * inv).reshape(B, Tq, heads, hd).transpose(0, 2, 1, 3)
        K = mm(kv_in, wk).reshape(B, Tk, heads, hd).transpose(0, 2, 1, 3)
        V = mm(kv_in, wv).reshape(B, Tk, heads, hd).transpose(0, 2, 1, 3)
        s = jnp.einsum("bhqd,bhkd->bhqk", Q.astype(cd), K.astype(cd),
                       preferred_element_type=jnp.float32)
        s = s + (1.0 - mask[:, None, :, :]) * jnp.float32(-1e9)
        p = jax.nn.softmax(s, axis=-1)
        x = jnp.einsum("bhqk,bhkd->bhqd", p.astype(cd), V.astype(cd),
                       preferred_element_type=jnp.float32)
        x = x.transpose(0, 2, 1, 3).reshape(B, Tq, H)
        return mm(x, wo) + bo[0]

    a = mha(trg, trg, trg_mask, params["wq_s"], params["wk_s"], params["wv_s"],
            params["wo_s"], params["bo_s"])
    x = ln(trg + a, params["g1"], params["be1"])
    a = mha(x, enc_src, src_mask, params["wq_e"], params["wk_e"], params["wv_e"],
            params["wo_e"], params["bo_e"])
    x = ln(x + a, params["g2"], params["be2"])
    h = jax.nn.relu(mm(x, params["w1"]) + params["bb1"][0])
    f = mm(h, params["w2"]) + params["bb2"][0]
    return ln(x + f, params["g3"], params["be3"])


if __name__ == "__main__":
    B, T, S, H, HEADS, PF = 2, 32, 32, 128, 4, 256
    TQ = 16   # query-block tile: grid = (B, T // TQ) = (2, 2)

    key = jax.random.PRNGKey(0)
    keys = jax.random.split(key, 16)

    def w(k, shape, scale=0.1):
        return jax.random.normal(k, shape, jnp.float32) * scale

    params = {
        # attention projection weights stored as [in, out] (already transposed vs torch)
        "wq_s": w(keys[0], (H, H)), "wk_s": w(keys[1], (H, H)), "wv_s": w(keys[2], (H, H)),
        "wo_s": w(keys[3], (H, H)), "bo_s": w(keys[4], (1, H)),
        "wq_e": w(keys[5], (H, H)), "wk_e": w(keys[6], (H, H)), "wv_e": w(keys[7], (H, H)),
        "wo_e": w(keys[8], (H, H)), "bo_e": w(keys[9], (1, H)),
        "g1": jnp.ones((1, H), jnp.float32), "be1": jnp.zeros((1, H), jnp.float32),
        "g2": jnp.ones((1, H), jnp.float32), "be2": jnp.zeros((1, H), jnp.float32),
        "g3": jnp.ones((1, H), jnp.float32), "be3": jnp.zeros((1, H), jnp.float32),
        "w1": w(keys[10], (H, PF)), "bb1": w(keys[11], (1, PF)),
        "w2": w(keys[12], (PF, H)), "bb2": w(keys[13], (1, H)),
    }

    trg = jax.random.normal(keys[14], (B, T, H), jnp.float32)
    enc_src = jax.random.normal(keys[15], (B, S, H), jnp.float32)

    # causal mask for self-attention, all-ones mask for cross-attention
    trg_mask = jnp.tril(jnp.ones((T, T), jnp.float32))[None].repeat(B, axis=0)  # (B, T, T)
    src_mask = jnp.ones((B, T, S), jnp.float32)                                 # (B, T, S)

    out = decoder_layer(trg, enc_src, trg_mask, src_mask, params,
                        heads=HEADS, q_block=TQ)
    out = jax.block_until_ready(out)

    ref = _reference(trg, enc_src, trg_mask, src_mask, params, heads=HEADS)
    assert out.shape == (B, T, H)
    assert jnp.allclose(out, ref, atol=1e-2, rtol=1e-2), "mismatch vs reference"

    print("KERNEL_OK")
</pallas_src>

<mosaic_0001>
module attributes {stable_mosaic.version = 11 : i64} {
  func.func @_decoder_layer_kernel(%arg0: i32, %arg1: i32, %arg2: memref<1x32x128xf32, #tpu.memory_space<vmem>>, %arg3: memref<1x32x128xf32, #tpu.memory_space<vmem>>, %arg4: memref<1x16x32xbf16, #tpu.memory_space<vmem>>, %arg5: memref<1x16x32xbf16, #tpu.memory_space<vmem>>, %arg6: memref<4x128x32xbf16, #tpu.memory_space<vmem>>, %arg7: memref<4x128x32xbf16, #tpu.memory_space<vmem>>, %arg8: memref<4x128x32xbf16, #tpu.memory_space<vmem>>, %arg9: memref<4x32x128xbf16, #tpu.memory_space<vmem>>, %arg10: memref<1x128xf32, #tpu.memory_space<vmem>>, %arg11: memref<4x128x32xbf16, #tpu.memory_space<vmem>>, %arg12: memref<4x128x32xbf16, #tpu.memory_space<vmem>>, %arg13: memref<4x128x32xbf16, #tpu.memory_space<vmem>>, %arg14: memref<4x32x128xbf16, #tpu.memory_space<vmem>>, %arg15: memref<1x128xf32, #tpu.memory_space<vmem>>, %arg16: memref<1x128xf32, #tpu.memory_space<vmem>>, %arg17: memref<1x128xf32, #tpu.memory_space<vmem>>, %arg18: memref<1x128xf32, #tpu.memory_space<vmem>>, %arg19: memref<1x128xf32, #tpu.memory_space<vmem>>, %arg20: memref<1x128xf32, #tpu.memory_space<vmem>>, %arg21: memref<1x128xf32, #tpu.memory_space<vmem>>, %arg22: memref<128x256xbf16, #tpu.memory_space<vmem>>, %arg23: memref<1x256xf32, #tpu.memory_space<vmem>>, %arg24: memref<256x128xbf16, #tpu.memory_space<vmem>>, %arg25: memref<1x128xf32, #tpu.memory_space<vmem>>, %arg26: memref<1x16x128xf32, #tpu.memory_space<vmem>>, %arg27: memref<4x32x32xbf16, #tpu.memory_space<vmem>>, %arg28: memref<4x32x32xbf16, #tpu.memory_space<vmem>>, %arg29: memref<4x32x32xbf16, #tpu.memory_space<vmem>>, %arg30: memref<4x32x32xbf16, #tpu.memory_space<vmem>>) attributes {dimension_semantics = [#tpu.dimension_semantics<parallel>, #tpu.dimension_semantics<arbitrary>], iteration_bounds = array<i64: 2, 2>, scalar_prefetch = 0 : i64, scratch_operands = 4 : i64, tpu.core_type = #tpu.core_type<tc>, window_params = [{transform_indices = @transform_0, window_bounds = array<i64: 1, 32, 128>}, {transform_indices = @transform_1, window_bounds = array<i64: 1, 32, 128>}, {transform_indices = @transform_2, window_bounds = array<i64: 1, 16, 32>}, {transform_indices = @transform_3, window_bounds = array<i64: 1, 16, 32>}, {pipeline_mode = #tpu.pipeline_mode<synchronous>, transform_indices = @transform_4, window_bounds = array<i64: 4, 128, 32>}, {pipeline_mode = #tpu.pipeline_mode<synchronous>, transform_indices = @transform_5, window_bounds = array<i64: 4, 128, 32>}, {pipeline_mode = #tpu.pipeline_mode<synchronous>, transform_indices = @transform_6, window_bounds = array<i64: 4, 128, 32>}, {pipeline_mode = #tpu.pipeline_mode<synchronous>, transform_indices = @transform_7, window_bounds = array<i64: 4, 32, 128>}, {pipeline_mode = #tpu.pipeline_mode<synchronous>, transform_indices = @transform_8, window_bounds = array<i64: 1, 128>}, {pipeline_mode = #tpu.pipeline_mode<synchronous>, transform_indices = @transform_9, window_bounds = array<i64: 4, 128, 32>}, {pipeline_mode = #tpu.pipeline_mode<synchronous>, transform_indices = @transform_10, window_bounds = array<i64: 4, 128, 32>}, {pipeline_mode = #tpu.pipeline_mode<synchronous>, transform_indices = @transform_11, window_bounds = array<i64: 4, 128, 32>}, {pipeline_mode = #tpu.pipeline_mode<synchronous>, transform_indices = @transform_12, window_bounds = array<i64: 4, 32, 128>}, {pipeline_mode = #tpu.pipeline_mode<synchronous>, transform_indices = @transform_13, window_bounds = array<i64: 1, 128>}, {pipeline_mode = #tpu.pipeline_mode<synchronous>, transform_indices = @transform_14, window_bounds = array<i64: 1, 128>}, {pipeline_mode = #tpu.pipeline_mode<synchronous>, transform_indices = @transform_15, window_bounds = array<i64: 1, 128>}, {pipeline_mode = #tpu.pipeline_mode<synchronous>, transform_indices = @transform_16, window_bounds = array<i64: 1, 128>}, {pipeline_mode = #tpu.pipeline_mode<synchronous>, transform_indices = @transform_17, window_bounds = array<i64: 1, 128>}, {pipeline_mode = #tpu.pipeline_mode<synchronous>, transform_indices = @transform_18, window_bounds = array<i64: 1, 128>}, {pipeline_mode = #tpu.pipeline_mode<synchronous>, transform_indices = @transform_19, window_bounds = array<i64: 1, 128>}, {pipeline_mode = #tpu.pipeline_mode<synchronous>, transform_indices = @transform_20, window_bounds = array<i64: 128, 256>}, {pipeline_mode = #tpu.pipeline_mode<synchronous>, transform_indices = @transform_21, window_bounds = array<i64: 1, 256>}, {pipeline_mode = #tpu.pipeline_mode<synchronous>, transform_indices = @transform_22, window_bounds = array<i64: 256, 128>}, {pipeline_mode = #tpu.pipeline_mode<synchronous>, transform_indices = @transform_23, window_bounds = array<i64: 1, 128>}, {transform_indices = @transform_24, window_bounds = array<i64: 1, 16, 128>}]} {
    %c16_i32 = arith.constant 16 : i32
    %0 = arith.muli %arg1, %c16_i32 : i32
    %1 = tpu.assume_multiple %0, 16 : i32
    %c0_i32 = arith.constant 0 : i32
    %2 = arith.cmpi eq, %arg1, %c0_i32 : i32
    %3 = arith.extui %2 : i1 to i32
    %c0_i32_0 = arith.constant 0 : i32
    %4 = arith.cmpi ne, %3, %c0_i32_0 : i32
    scf.if %4 {
      %c0_147 = arith.constant 0 : index
      %c0_148 = arith.constant 0 : index
      %c0_149 = arith.constant 0 : index
      %286 = vector.load %arg2[%c0_147, %c0_148, %c0_149] : memref<1x32x128xf32, #tpu.memory_space<vmem>>, vector<1x32x128xf32>
      %287 = vector.shape_cast %286 : vector<1x32x128xf32> to vector<32x128xf32>
      %288 = arith.truncf %287 : vector<32x128xf32> to vector<32x128xbf16>
      %c0_150 = arith.constant 0 : index
      %c0_151 = arith.constant 0 : index
      %c0_152 = arith.constant 0 : index
      %289 = vector.load %arg3[%c0_150, %c0_151, %c0_152] : memref<1x32x128xf32, #tpu.memory_space<vmem>>, vector<1x32x128xf32>
      %290 = vector.shape_cast %289 : vector<1x32x128xf32> to vector<32x128xf32>
      %291 = arith.truncf %290 : vector<32x128xf32> to vector<32x128xbf16>
      %c0_153 = arith.constant 0 : index
      %c0_154 = arith.constant 0 : index
      %c0_155 = arith.constant 0 : index
      %292 = vector.load %arg7[%c0_153, %c0_154, %c0_155] : memref<4x128x32xbf16, #tpu.memory_space<vmem>>, vector<1x128x32xbf16>
      %293 = vector.shape_cast %292 : vector<1x128x32xbf16> to vector<128x32xbf16>
      %cst_156 = arith.constant dense<0.000000e+00> : vector<32x32xf32>
      %294 = tpu.matmul %288, %293, %cst_156 {dimension_numbers = #tpu.dot_dimension_numbers<[1], [0], [0], [1], [0, 0, 1, 1], [], []>} : vector<32x128xbf16>, vector<128x32xbf16>, vector<32x32xf32> -> vector<32x32xf32>
      %295 = arith.truncf %294 : vector<32x32xf32> to vector<32x32xbf16>
      %c0_157 = arith.constant 0 : index
      %c0_158 = arith.constant 0 : index
      %c0_159 = arith.constant 0 : index
      %296 = vector.load %arg27[%c0_157, %c0_158, %c0_159] : memref<4x32x32xbf16, #tpu.memory_space<vmem>>, vector<1x32x32xbf16>
      %297 = vector.shape_cast %296 : vector<1x32x32xbf16> to vector<32x32xbf16>
      %298 = vector.shape_cast %295 : vector<32x32xbf16> to vector<1x32x32xbf16>
      tpu.vector_store %arg27[%c0_157, %c0_158, %c0_159], %298 {strides = array<i32>} : memref<4x32x32xbf16, #tpu.memory_space<vmem>>, vector<1x32x32xbf16>,
      %c0_160 = arith.constant 0 : index
      %c0_161 = arith.constant 0 : index
      %c0_162 = arith.constant 0 : index
      %299 = vector.load %arg8[%c0_160, %c0_161, %c0_162] : memref<4x128x32xbf16, #tpu.memory_space<vmem>>, vector<1x128x32xbf16>
      %300 = vector.shape_cast %299 : vector<1x128x32xbf16> to vector<128x32xbf16>
      %cst_163 = arith.constant dense<0.000000e+00> : vector<32x32xf32>
      %301 = tpu.matmul %288, %300, %cst_163 {dimension_numbers = #tpu.dot_dimension_numbers<[1], [0], [0], [1], [0, 0, 1, 1], [], []>} : vector<32x128xbf16>, vector<128x32xbf16>, vector<32x32xf32> -> vector<32x32xf32>
      %302 = arith.truncf %301 : vector<32x32xf32> to vector<32x32xbf16>
      %c0_164 = arith.constant 0 : index
      %c0_165 = arith.constant 0 : index
      %c0_166 = arith.constant 0 : index
      %303 = vector.load %arg28[%c0_164, %c0_165, %c0_166] : memref<4x32x32xbf16, #tpu.memory_space<vmem>>, vector<1x32x32xbf16>
      %304 = vector.shape_cast %303 : vector<1x32x32xbf16> to vector<32x32xbf16>
      %305 = vector.shape_cast %302 : vector<32x32xbf16> to vector<1x32x32xbf16>
      tpu.vector_store %arg28[%c0_164, %c0_165, %c0_166], %305 {strides = array<i32>} : memref<4x32x32xbf16, #tpu.memory_space<vmem>>, vector<1x32x32xbf16>,
      %c0_167 = arith.constant 0 : index
      %c0_168 = arith.constant 0 : index
      %c0_169 = arith.constant 0 : index
      %306 = vector.load %arg12[%c0_167, %c0_168, %c0_169] : memref<4x128x32xbf16, #tpu.memory_space<vmem>>, vector<1x128x32xbf16>
      %307 = vector.shape_cast %306 : vector<1x128x32xbf16> to vector<128x32xbf16>
      %cst_170 = arith.constant dense<0.000000e+00> : vector<32x32xf32>
      %308 = tpu.matmul %291, %307, %cst_170 {dimension_numbers = #tpu.dot_dimension_numbers<[1], [0], [0], [1], [0, 0, 1, 1], [], []>} : vector<32x128xbf16>, vector<128x32xbf16>, vector<32x32xf32> -> vector<32x32xf32>
      %309 = arith.truncf %308 : vector<32x32xf32> to vector<32x32xbf16>
      %c0_171 = arith.constant 0 : index
      %c0_172 = arith.constant 0 : index
      %c0_173 = arith.constant 0 : index
      %310 = vector.load %arg29[%c0_171, %c0_172, %c0_173] : memref<4x32x32xbf16, #tpu.memory_space<vmem>>, vector<1x32x32xbf16>
      %311 = vector.shape_cast %310 : vector<1x32x32xbf16> to vector<32x32xbf16>
      %312 = vector.shape_cast %309 : vector<32x32xbf16> to vector<1x32x32xbf16>
      tpu.vector_store %arg29[%c0_171, %c0_172, %c0_173], %312 {strides = array<i32>} : memref<4x32x32xbf16, #tpu.memory_space<vmem>>, vector<1x32x32xbf16>,
      %c0_174 = arith.constant 0 : index
      %c0_175 = arith.constant 0 : index
      %c0_176 = arith.constant 0 : index
      %313 = vector.load %arg13[%c0_174, %c0_175, %c0_176] : memref<4x128x32xbf16, #tpu.memory_space<vmem>>, vector<1x128x32xbf16>
      %314 = vector.shape_cast %313 : vector<1x128x32xbf16> to vector<128x32xbf16>
      %cst_177 = arith.constant dense<0.000000e+00> : vector<32x32xf32>
      %315 = tpu.matmul %291, %314, %cst_177 {dimension_numbers = #tpu.dot_dimension_numbers<[1], [0], [0], [1], [0, 0, 1, 1], [], []>} : vector<32x128xbf16>, vector<128x32xbf16>, vector<32x32xf32> -> vector<32x32xf32>
      %316 = arith.truncf %315 : vector<32x32xf32> to vector<32x32xbf16>
      %c0_178 = arith.constant 0 : index
      %c0_179 = arith.constant 0 : index
      %c0_180 = arith.constant 0 : index
      %317 = vector.load %arg30[%c0_178, %c0_179, %c0_180] : memref<4x32x32xbf16, #tpu.memory_space<vmem>>, vector<1x32x32xbf16>
      %318 = vector.shape_cast %317 : vector<1x32x32xbf16> to vector<32x32xbf16>
      %319 = vector.shape_cast %316 : vector<32x32xbf16> to vector<1x32x32xbf16>
      tpu.vector_store %arg30[%c0_178, %c0_179, %c0_180], %319 {strides = array<i32>} : memref<4x32x32xbf16, #tpu.memory_space<vmem>>, vector<1x32x32xbf16>,
      %c1_181 = arith.constant 1 : index
      %c0_182 = arith.constant 0 : index
      %c0_183 = arith.constant 0 : index
      %320 = vector.load %arg7[%c1_181, %c0_182, %c0_183] : memref<4x128x32xbf16, #tpu.memory_space<vmem>>, vector<1x128x32xbf16>
      %321 = vector.shape_cast %320 : vector<1x128x32xbf16> to vector<128x32xbf16>
      %cst_184 = arith.constant dense<0.000000e+00> : vector<32x32xf32>
      %322 = tpu.matmul %288, %321, %cst_184 {dimension_numbers = #tpu.dot_dimension_numbers<[1], [0], [0], [1], [0, 0, 1, 1], [], []>} : vector<32x128xbf16>, vector<128x32xbf16>, vector<32x32xf32> -> vector<32x32xf32>
      %323 = arith.truncf %322 : vector<32x32xf32> to vector<32x32xbf16>
      %c1_185 = arith.constant 1 : index
      %c0_186 = arith.constant 0 : index
      %c0_187 = arith.constant 0 : index
      %324 = vector.load %arg27[%c1_185, %c0_186, %c0_187] : memref<4x32x32xbf16, #tpu.memory_space<vmem>>, vector<1x32x32xbf16>
      %325 = vector.shape_cast %324 : vector<1x32x32xbf16> to vector<32x32xbf16>
      %326 = vector.shape_cast %323 : vector<32x32xbf16> to vector<1x32x32xbf16>
      tpu.vector_store %arg27[%c1_185, %c0_186, %c0_187], %326 {strides = array<i32>} : memref<4x32x32xbf16, #tpu.memory_space<vmem>>, vector<1x32x32xbf16>,
      %c1_188 = arith.constant 1 : index
      %c0_189 = arith.constant 0 : index
      %c0_190 = arith.constant 0 : index
      %327 = vector.load %arg8[%c1_188, %c0_189, %c0_190] : memref<4x128x32xbf16, #tpu.memory_space<vmem>>, vector<1x128x32xbf16>
      %328 = vector.shape_cast %327 : vector<1x128x32xbf16> to vector<128x32xbf16>
      %cst_191 = arith.constant dense<0.000000e+00> : vector<32x32xf32>
      %329 = tpu.matmul %288, %328, %cst_191 {dimension_numbers = #tpu.dot_dimension_numbers<[1], [0], [0], [1], [0, 0, 1, 1], [], []>} : vector<32x128xbf16>, vector<128x32xbf16>, vector<32x32xf32> -> vector<32x32xf32>
      %330 = arith.truncf %329 : vector<32x32xf32> to vector<32x32xbf16>
      %c1_192 = arith.constant 1 : index
      %c0_193 = arith.constant 0 : index
      %c0_194 = arith.constant 0 : index
      %331 = vector.load %arg28[%c1_192, %c0_193, %c0_194] : memref<4x32x32xbf16, #tpu.memory_space<vmem>>, vector<1x32x32xbf16>
      %332 = vector.shape_cast %331 : vector<1x32x32xbf16> to vector<32x32xbf16>
      %333 = vector.shape_cast %330 : vector<32x32xbf16> to vector<1x32x32xbf16>
      tpu.vector_store %arg28[%c1_192, %c0_193, %c0_194], %333 {strides = array<i32>} : memref<4x32x32xbf16, #tpu.memory_space<vmem>>, vector<1x32x32xbf16>,
      %c1_195 = arith.constant 1 : index
      %c0_196 = arith.constant 0 : index
      %c0_197 = arith.constant 0 : index
      %334 = vector.load %arg12[%c1_195, %c0_196, %c0_197] : memref<4x128x32xbf16, #tpu.memory_space<vmem>>, vector<1x128x32xbf16>
      %335 = vector.shape_cast %334 : vector<1x128x32xbf16> to vector<128x32xbf16>
      %cst_198 = arith.constant dense<0.000000e+00> : vector<32x32xf32>
      %336 = tpu.matmul %291, %335, %cst_198 {dimension_numbers = #tpu.dot_dimension_numbers<[1], [0], [0], [1], [0, 0, 1, 1], [], []>} : vector<32x128xbf16>, vector<128x32xbf16>, vector<32x32xf32> -> vector<32x32xf32>
      %337 = arith.truncf %336 : vector<32x32xf32> to vector<32x32xbf16>
      %c1_199 = arith.constant 1 : index
      %c0_200 = arith.constant 0 : index
      %c0_201 = arith.constant 0 : index
      %338 = vector.load %arg29[%c1_199, %c0_200, %c0_201] : memref<4x32x32xbf16, #tpu.memory_space<vmem>>, vector<1x32x32xbf16>
      %339 = vector.shape_cast %338 : vector<1x32x32xbf16> to vector<32x32xbf16>
      %340 = vector.shape_cast %337 : vector<32x32xbf16> to vector<1x32x32xbf16>
      tpu.vector_store %arg29[%c1_199, %c0_200, %c0_201], %340 {strides = array<i32>} : memref<4x32x32xbf16, #tpu.memory_space<vmem>>, vector<1x32x32xbf16>,
      %c1_202 = arith.constant 1 : index
      %c0_203 = arith.constant 0 : index
      %c0_204 = arith.constant 0 : index
      %341 = vector.load %arg13[%c1_202, %c0_203, %c0_204] : memref<4x128x32xbf16, #tpu.memory_space<vmem>>, vector<1x128x32xbf16>
      %342 = vector.shape_cast %341 : vector<1x128x32xbf16> to vector<128x32xbf16>
      %cst_205 = arith.constant dense<0.000000e+00> : vector<32x32xf32>
      %343 = tpu.matmul %291, %342, %cst_205 {dimension_numbers = #tpu.dot_dimension_numbers<[1], [0], [0], [1], [0, 0, 1, 1], [], []>} : vector<32x128xbf16>, vector<128x32xbf16>, vector<32x32xf32> -> vector<32x32xf32>
      %344 = arith.truncf %343 : vector<32x32xf32> to vector<32x32xbf16>
      %c1_206 = arith.constant 1 : index
      %c0_207 = arith.constant 0 : index
      %c0_208 = arith.constant 0 : index
      %345 = vector.load %arg30[%c1_206, %c0_207, %c0_208] : memref<4x32x32xbf16, #tpu.memory_space<vmem>>, vector<1x32x32xbf16>
      %346 = vector.shape_cast %345 : vector<1x32x32xbf16> to vector<32x32xbf16>
      %347 = vector.shape_cast %344 : vector<32x32xbf16> to vector<1x32x32xbf16>
      tpu.vector_store %arg30[%c1_206, %c0_207, %c0_208], %347 {strides = array<i32>} : memref<4x32x32xbf16, #tpu.memory_space<vmem>>, vector<1x32x32xbf16>,
      %c2_209 = arith.constant 2 : index
      %c0_210 = arith.constant 0 : index
      %c0_211 = arith.constant 0 : index
      %348 = vector.load %arg7[%c2_209, %c0_210, %c0_211] : memref<4x128x32xbf16, #tpu.memory_space<vmem>>, vector<1x128x32xbf16>
      %349 = vector.shape_cast %348 : vector<1x128x32xbf16> to vector<128x32xbf16>
      %cst_212 = arith.constant dense<0.000000e+00> : vector<32x32xf32>
      %350 = tpu.matmul %288, %349, %cst_212 {dimension_numbers = #tpu.dot_dimension_numbers<[1], [0], [0], [1], [0, 0, 1, 1], [], []>} : vector<32x128xbf16>, vector<128x32xbf16>, vector<32x32xf32> -> vector<32x32xf32>
      %351 = arith.truncf %350 : vector<32x32xf32> to vector<32x32xbf16>
      %c2_213 = arith.constant 2 : index
      %c0_214 = arith.constant 0 : index
      %c0_215 = arith.constant 0 : index
      %352 = vector.load %arg27[%c2_213, %c0_214, %c0_215] : memref<4x32x32xbf16, #tpu.memory_space<vmem>>, vector<1x32x32xbf16>
      %353 = vector.shape_cast %352 : vector<1x32x32xbf16> to vector<32x32xbf16>
      %354 = vector.shape_cast %351 : vector<32x32xbf16> to vector<1x32x32xbf16>
      tpu.vector_store %arg27[%c2_213, %c0_214, %c0_215], %354 {strides = array<i32>} : memref<4x32x32xbf16, #tpu.memory_space<vmem>>, vector<1x32x32xbf16>,
      %c2_216 = arith.constant 2 : index
      %c0_217 = arith.constant 0 : index
      %c0_218 = arith.constant 0 : index
      %355 = vector.load %arg8[%c2_216, %c0_217, %c0_218] : memref<4x128x32xbf16, #tpu.memory_space<vmem>>, vector<1x128x32xbf16>
      %356 = vector.shape_cast %355 : vector<1x128x32xbf16> to vector<128x32xbf16>
      %cst_219 = arith.constant dense<0.000000e+00> : vector<32x32xf32>
      %357 = tpu.matmul %288, %356, %cst_219 {dimension_numbers = #tpu.dot_dimension_numbers<[1], [0], [0], [1], [0, 0, 1, 1], [], []>} : vector<32x128xbf16>, vector<128x32xbf16>, vector<32x32xf32> -> vector<32x32xf32>
      %358 = arith.truncf %357 : vector<32x32xf32> to vector<32x32xbf16>
      %c2_220 = arith.constant 2 : index
      %c0_221 = arith.constant 0 : index
      %c0_222 = arith.constant 0 : index
      %359 = vector.load %arg28[%c2_220, %c0_221, %c0_222] : memref<4x32x32xbf16, #tpu.memory_space<vmem>>, vector<1x32x32xbf16>
      %360 = vector.shape_cast %359 : vector<1x32x32xbf16> to vector<32x32xbf16>
      %361 = vector.shape_cast %358 : vector<32x32xbf16> to vector<1x32x32xbf16>
      tpu.vector_store %arg28[%c2_220, %c0_221, %c0_222], %361 {strides = array<i32>} : memref<4x32x32xbf16, #tpu.memory_space<vmem>>, vector<1x32x32xbf16>,
      %c2_223 = arith.constant 2 : index
      %c0_224 = arith.constant 0 : index
      %c0_225 = arith.constant 0 : index
      %362 = vector.load %arg12[%c2_223, %c0_224, %c0_225] : memref<4x128x32xbf16, #tpu.memory_space<vmem>>, vector<1x128x32xbf16>
      %363 = vector.shape_cast %362 : vector<1x128x32xbf16> to vector<128x32xbf16>
      %cst_226 = arith.constant dense<0.000000e+00> : vector<32x32xf32>
      %364 = tpu.matmul %291, %363, %cst_226 {dimension_numbers = #tpu.dot_dimension_numbers<[1], [0], [0], [1], [0, 0, 1, 1], [], []>} : vector<32x128xbf16>, vector<128x32xbf16>, vector<32x32xf32> -> vector<32x32xf32>
      %365 = arith.truncf %364 : vector<32x32xf32> to vector<32x32xbf16>
      %c2_227 = arith.constant 2 : index
      %c0_228 = arith.constant 0 : index
      %c0_229 = arith.constant 0 : index
      %366 = vector.load %arg29[%c2_227, %c0_228, %c0_229] : memref<4x32x32xbf16, #tpu.memory_space<vmem>>, vector<1x32x32xbf16>
      %367 = vector.shape_cast %366 : vector<1x32x32xbf16> to vector<32x32xbf16>
      %368 = vector.shape_cast %365 : vector<32x32xbf16> to vector<1x32x32xbf16>
      tpu.vector_store %arg29[%c2_227, %c0_228, %c0_229], %368 {strides = array<i32>} : memref<4x32x32xbf16, #tpu.memory_space<vmem>>, vector<1x32x32xbf16>,
      %c2_230 = arith.constant 2 : index
      %c0_231 = arith.constant 0 : index
      %c0_232 = arith.constant 0 : index
      %369 = vector.load %arg13[%c2_230, %c0_231, %c0_232] : memref<4x128x32xbf16, #tpu.memory_space<vmem>>, vector<1x128x32xbf16>
      %370 = vector.shape_cast %369 : vector<1x128x32xbf16> to vector<128x32xbf16>
      %cst_233 = arith.constant dense<0.000000e+00> : vector<32x32xf32>
      %371 = tpu.matmul %291, %370, %cst_233 {dimension_numbers = #tpu.dot_dimension_numbers<[1], [0], [0], [1], [0, 0, 1, 1], [], []>} : vector<32x128xbf16>, vector<128x32xbf16>, vector<32x32xf32> -> vector<32x32xf32>
      %372 = arith.truncf %371 : vector<32x32xf32> to vector<32x32xbf16>
      %c2_234 = arith.constant 2 : index
      %c0_235 = arith.constant 0 : index
      %c0_236 = arith.constant 0 : index
      %373 = vector.load %arg30[%c2_234, %c0_235, %c0_236] : memref<4x32x32xbf16, #tpu.memory_space<vmem>>, vector<1x32x32xbf16>
      %374 = vector.shape_cast %373 : vector<1x32x32xbf16> to vector<32x32xbf16>
      %375 = vector.shape_cast %372 : vector<32x32xbf16> to vector<1x32x32xbf16>
      tpu.vector_store %arg30[%c2_234, %c0_235, %c0_236], %375 {strides = array<i32>} : memref<4x32x32xbf16, #tpu.memory_space<vmem>>, vector<1x32x32xbf16>,
      %c3_237 = arith.constant 3 : index
      %c0_238 = arith.constant 0 : index
      %c0_239 = arith.constant 0 : index
      %376 = vector.load %arg7[%c3_237, %c0_238, %c0_239] : memref<4x128x32xbf16, #tpu.memory_space<vmem>>, vector<1x128x32xbf16>
      %377 = vector.shape_cast %376 : vector<1x128x32xbf16> to vector<128x32xbf16>
      %cst_240 = arith.constant dense<0.000000e+00> : vector<32x32xf32>
      %378 = tpu.matmul %288, %377, %cst_240 {dimension_numbers = #tpu.dot_dimension_numbers<[1], [0], [0], [1], [0, 0, 1, 1], [], []>} : vector<32x128xbf16>, vector<128x32xbf16>, vector<32x32xf32> -> vector<32x32xf32>
      %379 = arith.truncf %378 : vector<32x32xf32> to vector<32x32xbf16>
      %c3_241 = arith.constant 3 : index
      %c0_242 = arith.constant 0 : index
      %c0_243 = arith.constant 0 : index
      %380 = vector.load %arg27[%c3_241, %c0_242, %c0_243] : memref<4x32x32xbf16, #tpu.memory_space<vmem>>, vector<1x32x32xbf16>
      %381 = vector.shape_cast %380 : vector<1x32x32xbf16> to vector<32x32xbf16>
      %382 = vector.shape_cast %379 : vector<32x32xbf16> to vector<1x32x32xbf16>
      tpu.vector_store %arg27[%c3_241, %c0_242, %c0_243], %382 {strides = array<i32>} : memref<4x32x32xbf16, #tpu.memory_space<vmem>>, vector<1x32x32xbf16>,
      %c3_244 = arith.constant 3 : index
      %c0_245 = arith.constant 0 : index
      %c0_246 = arith.constant 0 : index
      %383 = vector.load %arg8[%c3_244, %c0_245, %c0_246] : memref<4x128x32xbf16, #tpu.memory_space<vmem>>, vector<1x128x32xbf16>
      %384 = vector.shape_cast %383 : vector<1x128x32xbf16> to vector<128x32xbf16>
      %cst_247 = arith.constant dense<0.000000e+00> : vector<32x32xf32>
      %385 = tpu.matmul %288, %384, %cst_247 {dimension_numbers = #tpu.dot_dimension_numbers<[1], [0], [0], [1], [0, 0, 1, 1], [], []>} : vector<32x128xbf16>, vector<128x32xbf16>, vector<32x32xf32> -> vector<32x32xf32>
      %386 = arith.truncf %385 : vector<32x32xf32> to vector<32x32xbf16>
      %c3_248 = arith.constant 3 : index
      %c0_249 = arith.constant 0 : index
      %c0_250 = arith.constant 0 : index
      %387 = vector.load %arg28[%c3_248, %c0_249, %c0_250] : memref<4x32x32xbf16, #tpu.memory_space<vmem>>, vector<1x32x32xbf16>
      %388 = vector.shape_cast %387 : vector<1x32x32xbf16> to vector<32x32xbf16>
      %389 = vector.shape_cast %386 : vector<32x32xbf16> to vector<1x32x32xbf16>
      tpu.vector_store %arg28[%c3_248, %c0_249, %c0_250], %389 {strides = array<i32>} : memref<4x32x32xbf16, #tpu.memory_space<vmem>>, vector<1x32x32xbf16>,
      %c3_251 = arith.constant 3 : index
      %c0_252 = arith.constant 0 : index
      %c0_253 = arith.constant 0 : index
      %390 = vector.load %arg12[%c3_251, %c0_252, %c0_253] : memref<4x128x32xbf16, #tpu.memory_space<vmem>>, vector<1x128x32xbf16>
      %391 = vector.shape_cast %390 : vector<1x128x32xbf16> to vector<128x32xbf16>
      %cst_254 = arith.constant dense<0.000000e+00> : vector<32x32xf32>
      %392 = tpu.matmul %291, %391, %cst_254 {dimension_numbers = #tpu.dot_dimension_numbers<[1], [0], [0], [1], [0, 0, 1, 1], [], []>} : vector<32x128xbf16>, vector<128x32xbf16>, vector<32x32xf32> -> vector<32x32xf32>
      %393 = arith.truncf %392 : vector<32x32xf32> to vector<32x32xbf16>
      %c3_255 = arith.constant 3 : index
      %c0_256 = arith.constant 0 : index
      %c0_257 = arith.constant 0 : index
      %394 = vector.load %arg29[%c3_255, %c0_256, %c0_257] : memref<4x32x32xbf16, #tpu.memory_space<vmem>>, vector<1x32x32xbf16>
      %395 = vector.shape_cast %394 : vector<1x32x32xbf16> to vector<32x32xbf16>
      %396 = vector.shape_cast %393 : vector<32x32xbf16> to vector<1x32x32xbf16>
      tpu.vector_store %arg29[%c3_255, %c0_256, %c0_257], %396 {strides = array<i32>} : memref<4x32x32xbf16, #tpu.memory_space<vmem>>, vector<1x32x32xbf16>,
      %c3_258 = arith.constant 3 : index
      %c0_259 = arith.constant 0 : index
      %c0_260 = arith.constant 0 : index
      %397 = vector.load %arg13[%c3_258, %c0_259, %c0_260] : memref<4x128x32xbf16, #tpu.memory_space<vmem>>, vector<1x128x32xbf16>
      %398 = vector.shape_cast %397 : vector<1x128x32xbf16> to vector<128x32xbf16>
      %cst_261 = arith.constant dense<0.000000e+00> : vector<32x32xf32>
      %399 = tpu.matmul %291, %398, %cst_261 {dimension_numbers = #tpu.dot_dimension_numbers<[1], [0], [0], [1], [0, 0, 1, 1], [], []>} : vector<32x128xbf16>, vector<128x32xbf16>, vector<32x32xf32> -> vector<32x32xf32>
      %400 = arith.truncf %399 : vector<32x32xf32> to vector<32x32xbf16>
      %c3_262 = arith.constant 3 : index
      %c0_263 = arith.constant 0 : index
      %c0_264 = arith.constant 0 : index
      %401 = vector.load %arg30[%c3_262, %c0_263, %c0_264] : memref<4x32x32xbf16, #tpu.memory_space<vmem>>, vector<1x32x32xbf16>
      %402 = vector.shape_cast %401 : vector<1x32x32xbf16> to vector<32x32xbf16>
      %403 = vector.shape_cast %400 : vector<32x32xbf16> to vector<1x32x32xbf16>
      tpu.vector_store %arg30[%c3_262, %c0_263, %c0_264], %403 {strides = array<i32>} : memref<4x32x32xbf16, #tpu.memory_space<vmem>>, vector<1x32x32xbf16>,
    } else {
    }
    %c0 = arith.constant 0 : index
    %5 = arith.index_cast %1 : i32 to index
    %c0_1 = arith.constant 0 : index
    %6 = vector.load %arg2[%c0, %5, %c0_1] : memref<1x32x128xf32, #tpu.memory_space<vmem>>, vector<1x16x128xf32>
    %7 = vector.shape_cast %6 : vector<1x16x128xf32> to vector<16x128xf32>
    %c0_2 = arith.constant 0 : index
    %c0_3 = arith.constant 0 : index
    %c0_4 = arith.constant 0 : index
    %8 = vector.load %arg4[%c0_2, %c0_3, %c0_4] : memref<1x16x32xbf16, #tpu.memory_space<vmem>>, vector<1x16x32xbf16>
    %9 = vector.shape_cast %8 : vector<1x16x32xbf16> to vector<16x32xbf16>
    %10 = arith.extf %9 : vector<16x32xbf16> to vector<16x32xf32>
    %cst = arith.constant 1.000000e+00 : f32
    %11 = vector.broadcast %cst : f32 to vector<16x32xf32>
    %12 = arith.subf %11, %10 : vector<16x32xf32>
    %cst_5 = arith.constant -1.000000e+09 : f32
    %13 = vector.broadcast %cst_5 : f32 to vector<16x32xf32>
    %14 = arith.mulf %12, %13 : vector<16x32xf32>
    %c0_6 = arith.constant 0 : index
    %c0_7 = arith.constant 0 : index
    %c0_8 = arith.constant 0 : index
    %15 = vector.load %arg5[%c0_6, %c0_7, %c0_8] : memref<1x16x32xbf16, #tpu.memory_space<vmem>>, vector<1x16x32xbf16>
    %16 = vector.shape_cast %15 : vector<1x16x32xbf16> to vector<16x32xbf16>
    %17 = arith.extf %16 : vector<16x32xbf16> to vector<16x32xf32>
    %cst_9 = arith.constant 1.000000e+00 : f32
    %18 = vector.broadcast %cst_9 : f32 to vector<16x32xf32>
    %19 = arith.subf %18, %17 : vector<16x32xf32>
    %cst_10 = arith.constant -1.000000e+09 : f32
    %20 = vector.broadcast %cst_10 : f32 to vector<16x32xf32>
    %21 = arith.mulf %19, %20 : vector<16x32xf32>
    %22 = arith.truncf %7 : vector<16x128xf32> to vector<16x128xbf16>
    %c0_11 = arith.constant 0 : index
    %c0_12 = arith.constant 0 : index
    %c0_13 = arith.constant 0 : index
    %23 = vector.load %arg6[%c0_11, %c0_12, %c0_13] : memref<4x128x32xbf16, #tpu.memory_space<vmem>>, vector<1x128x32xbf16>
    %24 = vector.shape_cast %23 : vector<1x128x32xbf16> to vector<128x32xbf16>
    %cst_14 = arith.constant dense<0.000000e+00> : vector<16x32xf32>
    %25 = tpu.matmul %22, %24, %cst_14 {dimension_numbers = #tpu.dot_dimension_numbers<[1], [0], [0], [1], [0, 0, 1, 1], [], []>} : vector<16x128xbf16>, vector<128x32xbf16>, vector<16x32xf32> -> vector<16x32xf32>
    %cst_15 = arith.constant 0.176776692 : f32
    %26 = vector.broadcast %cst_15 : f32 to vector<16x32xf32>
    %27 = arith.mulf %25, %26 : vector<16x32xf32>
    %c1 = arith.constant 1 : index
    %c0_16 = arith.constant 0 : index
    %c0_17 = arith.constant 0 : index
    %28 = vector.load %arg6[%c1, %c0_16, %c0_17] : memref<4x128x32xbf16, #tpu.memory_space<vmem>>, vector<1x128x32xbf16>
    %29 = vector.shape_cast %28 : vector<1x128x32xbf16> to vector<128x32xbf16>
    %cst_18 = arith.constant dense<0.000000e+00> : vector<16x32xf32>
    %30 = tpu.matmul %22, %29, %cst_18 {dimension_numbers = #tpu.dot_dimension_numbers<[1], [0], [0], [1], [0, 0, 1, 1], [], []>} : vector<16x128xbf16>, vector<128x32xbf16>, vector<16x32xf32> -> vector<16x32xf32>
    %cst_19 = arith.constant 0.176776692 : f32
    %31 = vector.broadcast %cst_19 : f32 to vector<16x32xf32>
    %32 = arith.mulf %30, %31 : vector<16x32xf32>
    %c2 = arith.constant 2 : index
    %c0_20 = arith.constant 0 : index
    %c0_21 = arith.constant 0 : index
    %33 = vector.load %arg6[%c2, %c0_20, %c0_21] : memref<4x128x32xbf16, #tpu.memory_space<vmem>>, vector<1x128x32xbf16>
    %34 = vector.shape_cast %33 : vector<1x128x32xbf16> to vector<128x32xbf16>
    %cst_22 = arith.constant dense<0.000000e+00> : vector<16x32xf32>
    %35 = tpu.matmul %22, %34, %cst_22 {dimension_numbers = #tpu.dot_dimension_numbers<[1], [0], [0], [1], [0, 0, 1, 1], [], []>} : vector<16x128xbf16>, vector<128x32xbf16>, vector<16x32xf32> -> vector<16x32xf32>
    %cst_23 = arith.constant 0.176776692 : f32
    %36 = vector.broadcast %cst_23 : f32 to vector<16x32xf32>
    %37 = arith.mulf %35, %36 : vector<16x32xf32>
    %c3 = arith.constant 3 : index
    %c0_24 = arith.constant 0 : index
    %c0_25 = arith.constant 0 : index
    %38 = vector.load %arg6[%c3, %c0_24, %c0_25] : memref<4x128x32xbf16, #tpu.memory_space<vmem>>, vector<1x128x32xbf16>
    %39 = vector.shape_cast %38 : vector<1x128x32xbf16> to vector<128x32xbf16>
    %cst_26 = arith.constant dense<0.000000e+00> : vector<16x32xf32>
    %40 = tpu.matmul %22, %39, %cst_26 {dimension_numbers = #tpu.dot_dimension_numbers<[1], [0], [0], [1], [0, 0, 1, 1], [], []>} : vector<16x128xbf16>, vector<128x32xbf16>, vector<16x32xf32> -> vector<16x32xf32>
    %cst_27 = arith.constant 0.176776692 : f32
    %41 = vector.broadcast %cst_27 : f32 to vector<16x32xf32>
    %42 = arith.mulf %40, %41 : vector<16x32xf32>
    %43 = vector.shape_cast %27 : vector<16x32xf32> to vector<1x16x32xf32>
    %44 = vector.shape_cast %32 : vector<16x32xf32> to vector<1x16x32xf32>
    %45 = vector.shape_cast %37 : vector<16x32xf32> to vector<1x16x32xf32>
    %46 = vector.shape_cast %42 : vector<16x32xf32> to vector<1x16x32xf32>
    %47 = tpu.concatenate %43, %44, %45, %46 in 0 : vector<1x16x32xf32>, vector<1x16x32xf32>, vector<1x16x32xf32>, vector<1x16x32xf32> -> vector<4x16x32xf32>
    %48 = arith.truncf %47 : vector<4x16x32xf32> to vector<4x16x32xbf16>
    %c0_28 = arith.constant 0 : index
    %c0_29 = arith.constant 0 : index
    %c0_30 = arith.constant 0 : index
    %49 = vector.load %arg27[%c0_28, %c0_29, %c0_30] : memref<4x32x32xbf16, #tpu.memory_space<vmem>>, vector<4x32x32xbf16>
    %c0_31 = arith.constant 0 : index
    %c0_32 = arith.constant 0 : index
    %c0_33 = arith.constant 0 : index
    %50 = vector.load %arg28[%c0_31, %c0_32, %c0_33] : memref<4x32x32xbf16, #tpu.memory_space<vmem>>, vector<4x32x32xbf16>
    "tpu.trace_start"() <{level = 10 : i32, message = "hqd,hkd->hqk"}> : () -> ()
    %cst_34 = arith.constant dense<0.000000e+00> : vector<4x16x32xf32>
    %51 = tpu.matmul %48, %49, %cst_34 {dimension_numbers = #tpu.dot_dimension_numbers<[2], [2], [1], [1], [0, 0, 0, 1, 1, 1], [0], [0]>} : vector<4x16x32xbf16>, vector<4x32x32xbf16>, vector<4x16x32xf32> -> vector<4x16x32xf32>
    "tpu.trace_stop"() : () -> ()
    %52 = vector.shape_cast %14 : vector<16x32xf32> to vector<1x16x32xf32>
    %53 = vector.broadcast %52 : vector<1x16x32xf32> to vector<4x16x32xf32>
    %54 = arith.addf %51, %53 : vector<4x16x32xf32>
    %cst_35 = arith.constant dense<0xFF800000> : vector<4x16xf32>
    %55 = vector.multi_reduction <maximumf>, %54, %cst_35 [2] : vector<4x16x32xf32> to vector<4x16xf32>
    %56 = vector.shape_cast %55 : vector<4x16xf32> to vector<4x16x1xf32>
    %57 = vector.broadcast %56 : vector<4x16x1xf32> to vector<4x16x32xf32>
    %58 = arith.subf %54, %57 : vector<4x16x32xf32>
    %59 = math.exp %58 : vector<4x16x32xf32>
    %cst_36 = arith.constant dense<0.000000e+00> : vector<4x16xf32>
    %60 = vector.multi_reduction <add>, %59, %cst_36 [2] : vector<4x16x32xf32> to vector<4x16xf32>
    %61 = vector.shape_cast %60 : vector<4x16xf32> to vector<4x16x1xf32>
    %62 = tpu.reciprocal %61 {approx = true} : vector<4x16x1xf32> -> vector<4x16x1xf32>
    %63 = arith.mulf %61, %62 : vector<4x16x1xf32>
    %cst_37 = arith.constant 2.000000e+00 : f32
    %64 = vector.broadcast %cst_37 : f32 to vector<4x16x1xf32>
    %65 = arith.subf %64, %63 : vector<4x16x1xf32>
    %66 = arith.mulf %62, %65 : vector<4x16x1xf32>
    %67 = vector.broadcast %66 : vector<4x16x1xf32> to vector<4x16x32xf32>
    %68 = arith.mulf %59, %67 : vector<4x16x32xf32>
    %69 = arith.truncf %68 : vector<4x16x32xf32> to vector<4x16x32xbf16>
    "tpu.trace_start"() <{level = 10 : i32, message = "hqk,hkd->hqd"}> : () -> ()
    %cst_38 = arith.constant dense<0.000000e+00> : vector<4x16x32xf32>
    %70 = tpu.matmul %69, %50, %cst_38 {dimension_numbers = #tpu.dot_dimension_numbers<[2], [1], [1], [2], [0, 0, 0, 1, 1, 2], [0], [0]>} : vector<4x16x32xbf16>, vector<4x32x32xbf16>, vector<4x16x32xf32> -> vector<4x16x32xf32>
    "tpu.trace_stop"() : () -> ()
    %71 = arith.truncf %70 : vector<4x16x32xf32> to vector<4x16x32xbf16>
    %72 = vector.extract_strided_slice %71 {offsets = [0, 0, 0], sizes = [1, 16, 32], strides = [1, 1, 1]} : vector<4x16x32xbf16> to vector<1x16x32xbf16>
    %73 = vector.shape_cast %72 : vector<1x16x32xbf16> to vector<16x32xbf16>
    %c0_39 = arith.constant 0 : index
    %c0_40 = arith.constant 0 : index
    %c0_41 = arith.constant 0 : index
    %74 = vector.load %arg9[%c0_39, %c0_40, %c0_41] : memref<4x32x128xbf16, #tpu.memory_space<vmem>>, vector<1x32x128xbf16>
    %75 = vector.shape_cast %74 : vector<1x32x128xbf16> to vector<32x128xbf16>
    %cst_42 = arith.constant dense<0.000000e+00> : vector<16x128xf32>
    %76 = tpu.matmul %73, %75, %cst_42 {dimension_numbers = #tpu.dot_dimension_numbers<[1], [0], [0], [1], [0, 0, 1, 1], [], []>} : vector<16x32xbf16>, vector<32x128xbf16>, vector<16x128xf32> -> vector<16x128xf32>
    %77 = vector.extract_strided_slice %71 {offsets = [1, 0, 0], sizes = [1, 16, 32], strides = [1, 1, 1]} : vector<4x16x32xbf16> to vector<1x16x32xbf16>
    %78 = vector.shape_cast %77 : vector<1x16x32xbf16> to vector<16x32xbf16>
    %c1_43 = arith.constant 1 : index
    %c0_44 = arith.constant 0 : index
    %c0_45 = arith.constant 0 : index
    %79 = vector.load %arg9[%c1_43, %c0_44, %c0_45] : memref<4x32x128xbf16, #tpu.memory_space<vmem>>, vector<1x32x128xbf16>
    %80 = vector.shape_cast %79 : vector<1x32x128xbf16> to vector<32x128xbf16>
    %cst_46 = arith.constant dense<0.000000e+00> : vector<16x128xf32>
    %81 = tpu.matmul %78, %80, %cst_46 {dimension_numbers = #tpu.dot_dimension_numbers<[1], [0], [0], [1], [0, 0, 1, 1], [], []>} : vector<16x32xbf16>, vector<32x128xbf16>, vector<16x128xf32> -> vector<16x128xf32>
    %82 = arith.addf %76, %81 : vector<16x128xf32>
    %83 = vector.extract_strided_slice %71 {offsets = [2, 0, 0], sizes = [1, 16, 32], strides = [1, 1, 1]} : vector<4x16x32xbf16> to vector<1x16x32xbf16>
    %84 = vector.shape_cast %83 : vector<1x16x32xbf16> to vector<16x32xbf16>
    %c2_47 = arith.constant 2 : index
    %c0_48 = arith.constant 0 : index
    %c0_49 = arith.constant 0 : index
    %85 = vector.load %arg9[%c2_47, %c0_48, %c0_49] : memref<4x32x128xbf16, #tpu.memory_space<vmem>>, vector<1x32x128xbf16>
    %86 = vector.shape_cast %85 : vector<1x32x128xbf16> to vector<32x128xbf16>
    %cst_50 = arith.constant dense<0.000000e+00> : vector<16x128xf32>
    %87 = tpu.matmul %84, %86, %cst_50 {dimension_numbers = #tpu.dot_dimension_numbers<[1], [0], [0], [1], [0, 0, 1, 1], [], []>} : vector<16x32xbf16>, vector<32x128xbf16>, vector<16x128xf32> -> vector<16x128xf32>
    %88 = arith.addf %82, %87 : vector<16x128xf32>
    %89 = vector.extract_strided_slice %71 {offsets = [3, 0, 0], sizes = [1, 16, 32], strides = [1, 1, 1]} : vector<4x16x32xbf16> to vector<1x16x32xbf16>
    %90 = vector.shape_cast %89 : vector<1x16x32xbf16> to vector<16x32xbf16>
    %c3_51 = arith.constant 3 : index
    %c0_52 = arith.constant 0 : index
    %c0_53 = arith.constant 0 : index
    %91 = vector.load %arg9[%c3_51, %c0_52, %c0_53] : memref<4x32x128xbf16, #tpu.memory_space<vmem>>, vector<1x32x128xbf16>
    %92 = vector.shape_cast %91 : vector<1x32x128xbf16> to vector<32x128xbf16>
    %cst_54 = arith.constant dense<0.000000e+00> : vector<16x128xf32>
    %93 = tpu.matmul %90, %92, %cst_54 {dimension_numbers = #tpu.dot_dimension_numbers<[1], [0], [0], [1], [0, 0, 1, 1], [], []>} : vector<16x32xbf16>, vector<32x128xbf16>, vector<16x128xf32> -> vector<16x128xf32>
    %94 = arith.addf %88, %93 : vector<16x128xf32>
    %c0_55 = arith.constant 0 : index
    %c0_56 = arith.constant 0 : index
    %95 = vector.load %arg10[%c0_55, %c0_56] : memref<1x128xf32, #tpu.memory_space<vmem>>, vector<1x128xf32>
    %96 = vector.shape_cast %95 : vector<1x128xf32> to vector<128xf32>
    %97 = vector.shape_cast %96 : vector<128xf32> to vector<1x128xf32>
    %98 = vector.broadcast %97 : vector<1x128xf32> to vector<16x128xf32>
    %99 = arith.addf %94, %98 : vector<16x128xf32>
    %100 = arith.addf %7, %99 : vector<16x128xf32>
    %cst_57 = arith.constant dense<0.000000e+00> : vector<16xf32>
    %101 = vector.multi_reduction <add>, %100, %cst_57 [1] : vector<16x128xf32> to vector<16xf32>
    %102 = vector.shape_cast %101 : vector<16xf32> to vector<16x1xf32>
    %cst_58 = arith.constant 1.280000e+02 : f32
    %103 = vector.broadcast %cst_58 : f32 to vector<16x1xf32>
    %104 = arith.divf %102, %103 : vector<16x1xf32>
    %105 = vector.broadcast %104 : vector<16x1xf32> to vector<16x128xf32>
    %106 = arith.subf %100, %105 : vector<16x128xf32>
    %107 = arith.mulf %106, %106 : vector<16x128xf32>
    %cst_59 = arith.constant dense<0.000000e+00> : vector<16xf32>
    %108 = vector.multi_reduction <add>, %107, %cst_59 [1] : vector<16x128xf32> to vector<16xf32>
    %109 = vector.shape_cast %108 : vector<16xf32> to vector<16x1xf32>
    %cst_60 = arith.constant 1.280000e+02 : f32
    %110 = vector.broadcast %cst_60 : f32 to vector<16x1xf32>
    %111 = arith.divf %109, %110 : vector<16x1xf32>
    %112 = vector.broadcast %104 : vector<16x1xf32> to vector<16x128xf32>
    %113 = arith.subf %100, %112 : vector<16x128xf32>
    %cst_61 = arith.constant 9.99999974E-6 : f32
    %114 = vector.broadcast %cst_61 : f32 to vector<16x1xf32>
    %115 = arith.addf %111, %114 : vector<16x1xf32>
    %116 = math.rsqrt %115 : vector<16x1xf32>
    %117 = vector.broadcast %116 : vector<16x1xf32> to vector<16x128xf32>
    %118 = arith.mulf %113, %117 : vector<16x128xf32>
    %c0_62 = arith.constant 0 : index
    %c0_63 = arith.constant 0 : index
    %119 = vector.load %arg16[%c0_62, %c0_63] : memref<1x128xf32, #tpu.memory_space<vmem>>, vector<1x128xf32>
    %120 = vector.shape_cast %119 : vector<1x128xf32> to vector<128xf32>
    %121 = vector.shape_cast %120 : vector<128xf32> to vector<1x128xf32>
    %122 = vector.broadcast %121 : vector<1x128xf32> to vector<16x128xf32>
    %123 = arith.mulf %118, %122 : vector<16x128xf32>
    %c0_64 = arith.constant 0 : index
    %c0_65 = arith.constant 0 : index
    %124 = vector.load %arg17[%c0_64, %c0_65] : memref<1x128xf32, #tpu.memory_space<vmem>>, vector<1x128xf32>
    %125 = vector.shape_cast %124 : vector<1x128xf32> to vector<128xf32>
    %126 = vector.shape_cast %125 : vector<128xf32> to vector<1x128xf32>
    %127 = vector.broadcast %126 : vector<1x128xf32> to vector<16x128xf32>
    %128 = arith.addf %123, %127 : vector<16x128xf32>
    %129 = arith.truncf %128 : vector<16x128xf32> to vector<16x128xbf16>
    %c0_66 = arith.constant 0 : index
    %c0_67 = arith.constant 0 : index
    %c0_68 = arith.constant 0 : index
    %130 = vector.load %arg11[%c0_66, %c0_67, %c0_68] : memref<4x128x32xbf16, #tpu.memory_space<vmem>>, vector<1x128x32xbf16>
    %131 = vector.shape_cast %130 : vector<1x128x32xbf16> to vector<128x32xbf16>
    %cst_69 = arith.constant dense<0.000000e+00> : vector<16x32xf32>
    %132 = tpu.matmul %129, %131, %cst_69 {dimension_numbers = #tpu.dot_dimension_numbers<[1], [0], [0], [1], [0, 0, 1, 1], [], []>} : vector<16x128xbf16>, vector<128x32xbf16>, vector<16x32xf32> -> vector<16x32xf32>
    %cst_70 = arith.constant 0.176776692 : f32
    %133 = vector.broadcast %cst_70 : f32 to vector<16x32xf32>
    %134 = arith.mulf %132, %133 : vector<16x32xf32>
    %c1_71 = arith.constant 1 : index
    %c0_72 = arith.constant 0 : index
    %c0_73 = arith.constant 0 : index
    %135 = vector.load %arg11[%c1_71, %c0_72, %c0_73] : memref<4x128x32xbf16, #tpu.memory_space<vmem>>, vector<1x128x32xbf16>
    %136 = vector.shape_cast %135 : vector<1x128x32xbf16> to vector<128x32xbf16>
    %cst_74 = arith.constant dense<0.000000e+00> : vector<16x32xf32>
    %137 = tpu.matmul %129, %136, %cst_74 {dimension_numbers = #tpu.dot_dimension_numbers<[1], [0], [0], [1], [0, 0, 1, 1], [], []>} : vector<16x128xbf16>, vector<128x32xbf16>, vector<16x32xf32> -> vector<16x32xf32>
    %cst_75 = arith.constant 0.176776692 : f32
    %138 = vector.broadcast %cst_75 : f32 to vector<16x32xf32>
    %139 = arith.mulf %137, %138 : vector<16x32xf32>
    %c2_76 = arith.constant 2 : index
    %c0_77 = arith.constant 0 : index
    %c0_78 = arith.constant 0 : index
    %140 = vector.load %arg11[%c2_76, %c0_77, %c0_78] : memref<4x128x32xbf16, #tpu.memory_space<vmem>>, vector<1x128x32xbf16>
    %141 = vector.shape_cast %140 : vector<1x128x32xbf16> to vector<128x32xbf16>
    %cst_79 = arith.constant dense<0.000000e+00> : vector<16x32xf32>
    %142 = tpu.matmul %129, %141, %cst_79 {dimension_numbers = #tpu.dot_dimension_numbers<[1], [0], [0], [1], [0, 0, 1, 1], [], []>} : vector<16x128xbf16>, vector<128x32xbf16>, vector<16x32xf32> -> vector<16x32xf32>
    %cst_80 = arith.constant 0.176776692 : f32
    %143 = vector.broadcast %cst_80 : f32 to vector<16x32xf32>
    %144 = arith.mulf %142, %143 : vector<16x32xf32>
    %c3_81 = arith.constant 3 : index
    %c0_82 = arith.constant 0 : index
    %c0_83 = arith.constant 0 : index
    %145 = vector.load %arg11[%c3_81, %c0_82, %c0_83] : memref<4x128x32xbf16, #tpu.memory_space<vmem>>, vector<1x128x32xbf16>
    %146 = vector.shape_cast %145 : vector<1x128x32xbf16> to vector<128x32xbf16>
    %cst_84 = arith.constant dense<0.000000e+00> : vector<16x32xf32>
    %147 = tpu.matmul %129, %146, %cst_84 {dimension_numbers = #tpu.dot_dimension_numbers<[1], [0], [0], [1], [0, 0, 1, 1], [], []>} : vector<16x128xbf16>, vector<128x32xbf16>, vector<16x32xf32> -> vector<16x32xf32>
    %cst_85 = arith.constant 0.176776692 : f32
    %148 = vector.broadcast %cst_85 : f32 to vector<16x32xf32>
    %149 = arith.mulf %147, %148 : vector<16x32xf32>
    %150 = vector.shape_cast %134 : vector<16x32xf32> to vector<1x16x32xf32>
    %151 = vector.shape_cast %139 : vector<16x32xf32> to vector<1x16x32xf32>
    %152 = vector.shape_cast %144 : vector<16x32xf32> to vector<1x16x32xf32>
    %153 = vector.shape_cast %149 : vector<16x32xf32> to vector<1x16x32xf32>
    %154 = tpu.concatenate %150, %151, %152, %153 in 0 : vector<1x16x32xf32>, vector<1x16x32xf32>, vector<1x16x32xf32>, vector<1x16x32xf32> -> vector<4x16x32xf32>
    %155 = arith.truncf %154 : vector<4x16x32xf32> to vector<4x16x32xbf16>
    %c0_86 = arith.constant 0 : index
    %c0_87 = arith.constant 0 : index
    %c0_88 = arith.constant 0 : index
    %156 = vector.load %arg29[%c0_86, %c0_87, %c0_88] : memref<4x32x32xbf16, #tpu.memory_space<vmem>>, vector<4x32x32xbf16>
    %c0_89 = arith.constant 0 : index
    %c0_90 = arith.constant 0 : index
    %c0_91 = arith.constant 0 : index
    %157 = vector.load %arg30[%c0_89, %c0_90, %c0_91] : memref<4x32x32xbf16, #tpu.memory_space<vmem>>, vector<4x32x32xbf16>
    "tpu.trace_start"() <{level = 10 : i32, message = "hqd,hkd->hqk"}> : () -> ()
    %cst_92 = arith.constant dense<0.000000e+00> : vector<4x16x32xf32>
    %158 = tpu.matmul %155, %156, %cst_92 {dimension_numbers = #tpu.dot_dimension_numbers<[2], [2], [1], [1], [0, 0, 0, 1, 1, 1], [0], [0]>} : vector<4x16x32xbf16>, vector<4x32x32xbf16>, vector<4x16x32xf32> -> vector<4x16x32xf32>
    "tpu.trace_stop"() : () -> ()
    %159 = vector.shape_cast %21 : vector<16x32xf32> to vector<1x16x32xf32>
    %160 = vector.broadcast %159 : vector<1x16x32xf32> to vector<4x16x32xf32>
    %161 = arith.addf %158, %160 : vector<4x16x32xf32>
    %cst_93 = arith.constant dense<0xFF800000> : vector<4x16xf32>
    %162 = vector.multi_reduction <maximumf>, %161, %cst_93 [2] : vector<4x16x32xf32> to vector<4x16xf32>
    %163 = vector.shape_cast %162 : vector<4x16xf32> to vector<4x16x1xf32>
    %164 = vector.broadcast %163 : vector<4x16x1xf32> to vector<4x16x32xf32>
    %165 = arith.subf %161, %164 : vector<4x16x32xf32>
    %166 = math.exp %165 : vector<4x16x32xf32>
    %cst_94 = arith.constant dense<0.000000e+00> : vector<4x16xf32>
    %167 = vector.multi_reduction <add>, %166, %cst_94 [2] : vector<4x16x32xf32> to vector<4x16xf32>
    %168 = vector.shape_cast %167 : vector<4x16xf32> to vector<4x16x1xf32>
    %169 = tpu.reciprocal %168 {approx = true} : vector<4x16x1xf32> -> vector<4x16x1xf32>
    %170 = arith.mulf %168, %169 : vector<4x16x1xf32>
    %cst_95 = arith.constant 2.000000e+00 : f32
    %171 = vector.broadcast %cst_95 : f32 to vector<4x16x1xf32>
    %172 = arith.subf %171, %170 : vector<4x16x1xf32>
    %173 = arith.mulf %169, %172 : vector<4x16x1xf32>
    %174 = vector.broadcast %173 : vector<4x16x1xf32> to vector<4x16x32xf32>
    %175 = arith.mulf %166, %174 : vector<4x16x32xf32>
    %176 = arith.truncf %175 : vector<4x16x32xf32> to vector<4x16x32xbf16>
    "tpu.trace_start"() <{level = 10 : i32, message = "hqk,hkd->hqd"}> : () -> ()
    %cst_96 = arith.constant dense<0.000000e+00> : vector<4x16x32xf32>
    %177 = tpu.matmul %176, %157, %cst_96 {dimension_numbers = #tpu.dot_dimension_numbers<[2], [1], [1], [2], [0, 0, 0, 1, 1, 2], [0], [0]>} : vector<4x16x32xbf16>, vector<4x32x32xbf16>, vector<4x16x32xf32> -> vector<4x16x32xf32>
    "tpu.trace_stop"() : () -> ()
    %178 = arith.truncf %177 : vector<4x16x32xf32> to vector<4x16x32xbf16>
    %179 = vector.extract_strided_slice %178 {offsets = [0, 0, 0], sizes = [1, 16, 32], strides = [1, 1, 1]} : vector<4x16x32xbf16> to vector<1x16x32xbf16>
    %180 = vector.shape_cast %179 : vector<1x16x32xbf16> to vector<16x32xbf16>
    %c0_97 = arith.constant 0 : index
    %c0_98 = arith.constant 0 : index
    %c0_99 = arith.constant 0 : index
    %181 = vector.load %arg14[%c0_97, %c0_98, %c0_99] : memref<4x32x128xbf16, #tpu.memory_space<vmem>>, vector<1x32x128xbf16>
    %182 = vector.shape_cast %181 : vector<1x32x128xbf16> to vector<32x128xbf16>
    %cst_100 = arith.constant dense<0.000000e+00> : vector<16x128xf32>
    %183 = tpu.matmul %180, %182, %cst_100 {dimension_numbers = #tpu.dot_dimension_numbers<[1], [0], [0], [1], [0, 0, 1, 1], [], []>} : vector<16x32xbf16>, vector<32x128xbf16>, vector<16x128xf32> -> vector<16x128xf32>
    %184 = vector.extract_strided_slice %178 {offsets = [1, 0, 0], sizes = [1, 16, 32], strides = [1, 1, 1]} : vector<4x16x32xbf16> to vector<1x16x32xbf16>
    %185 = vector.shape_cast %184 : vector<1x16x32xbf16> to vector<16x32xbf16>
    %c1_101 = arith.constant 1 : index
    %c0_102 = arith.constant 0 : index
    %c0_103 = arith.constant 0 : index
    %186 = vector.load %arg14[%c1_101, %c0_102, %c0_103] : memref<4x32x128xbf16, #tpu.memory_space<vmem>>, vector<1x32x128xbf16>
    %187 = vector.shape_cast %186 : vector<1x32x128xbf16> to vector<32x128xbf16>
    %cst_104 = arith.constant dense<0.000000e+00> : vector<16x128xf32>
    %188 = tpu.matmul %185, %187, %cst_104 {dimension_numbers = #tpu.dot_dimension_numbers<[1], [0], [0], [1], [0, 0, 1, 1], [], []>} : vector<16x32xbf16>, vector<32x128xbf16>, vector<16x128xf32> -> vector<16x128xf32>
    %189 = arith.addf %183, %188 : vector<16x128xf32>
    %190 = vector.extract_strided_slice %178 {offsets = [2, 0, 0], sizes = [1, 16, 32], strides = [1, 1, 1]} : vector<4x16x32xbf16> to vector<1x16x32xbf16>
    %191 = vector.shape_cast %190 : vector<1x16x32xbf16> to vector<16x32xbf16>
    %c2_105 = arith.constant 2 : index
    %c0_106 = arith.constant 0 : index
    %c0_107 = arith.constant 0 : index
    %192 = vector.load %arg14[%c2_105, %c0_106, %c0_107] : memref<4x32x128xbf16, #tpu.memory_space<vmem>>, vector<1x32x128xbf16>
    %193 = vector.shape_cast %192 : vector<1x32x128xbf16> to vector<32x128xbf16>
    %cst_108 = arith.constant dense<0.000000e+00> : vector<16x128xf32>
    %194 = tpu.matmul %191, %193, %cst_108 {dimension_numbers = #tpu.dot_dimension_numbers<[1], [0], [0], [1], [0, 0, 1, 1], [], []>} : vector<16x32xbf16>, vector<32x128xbf16>, vector<16x128xf32> -> vector<16x128xf32>
    %195 = arith.addf %189, %194 : vector<16x128xf32>
    %196 = vector.extract_strided_slice %178 {offsets = [3, 0, 0], sizes = [1, 16, 32], strides = [1, 1, 1]} : vector<4x16x32xbf16> to vector<1x16x32xbf16>
    %197 = vector.shape_cast %196 : vector<1x16x32xbf16> to vector<16x32xbf16>
    %c3_109 = arith.constant 3 : index
    %c0_110 = arith.constant 0 : index
    %c0_111 = arith.constant 0 : index
    %198 = vector.load %arg14[%c3_109, %c0_110, %c0_111] : memref<4x32x128xbf16, #tpu.memory_space<vmem>>, vector<1x32x128xbf16>
    %199 = vector.shape_cast %198 : vector<1x32x128xbf16> to vector<32x128xbf16>
    %cst_112 = arith.constant dense<0.000000e+00> : vector<16x128xf32>
    %200 = tpu.matmul %197, %199, %cst_112 {dimension_numbers = #tpu.dot_dimension_numbers<[1], [0], [0], [1], [0, 0, 1, 1], [], []>} : vector<16x32xbf16>, vector<32x128xbf16>, vector<16x128xf32> -> vector<16x128xf32>
    %201 = arith.addf %195, %200 : vector<16x128xf32>
    %c0_113 = arith.constant 0 : index
    %c0_114 = arith.constant 0 : index
    %202 = vector.load %arg15[%c0_113, %c0_114] : memref<1x128xf32, #tpu.memory_space<vmem>>, vector<1x128xf32>
    %203 = vector.shape_cast %202 : vector<1x128xf32> to vector<128xf32>
    %204 = vector.shape_cast %203 : vector<128xf32> to vector<1x128xf32>
    %205 = vector.broadcast %204 : vector<1x128xf32> to vector<16x128xf32>
    %206 = arith.addf %201, %205 : vector<16x128xf32>
    %207 = arith.addf %128, %206 : vector<16x128xf32>
    %cst_115 = arith.constant dense<0.000000e+00> : vector<16xf32>
    %208 = vector.multi_reduction <add>, %207, %cst_115 [1] : vector<16x128xf32> to vector<16xf32>
    %209 = vector.shape_cast %208 : vector<16xf32> to vector<16x1xf32>
    %cst_116 = arith.constant 1.280000e+02 : f32
    %210 = vector.broadcast %cst_116 : f32 to vector<16x1xf32>
    %211 = arith.divf %209, %210 : vector<16x1xf32>
    %212 = vector.broadcast %211 : vector<16x1xf32> to vector<16x128xf32>
    %213 = arith.subf %207, %212 : vector<16x128xf32>
    %214 = arith.mulf %213, %213 : vector<16x128xf32>
    %cst_117 = arith.constant dense<0.000000e+00> : vector<16xf32>
    %215 = vector.multi_reduction <add>, %214, %cst_117 [1] : vector<16x128xf32> to vector<16xf32>
    %216 = vector.shape_cast %215 : vector<16xf32> to vector<16x1xf32>
    %cst_118 = arith.constant 1.280000e+02 : f32
    %217 = vector.broadcast %cst_118 : f32 to vector<16x1xf32>
    %218 = arith.divf %216, %217 : vector<16x1xf32>
    %219 = vector.broadcast %211 : vector<16x1xf32> to vector<16x128xf32>
    %220 = arith.subf %207, %219 : vector<16x128xf32>
    %cst_119 = arith.constant 9.99999974E-6 : f32
    %221 = vector.broadcast %cst_119 : f32 to vector<16x1xf32>
    %222 = arith.addf %218, %221 : vector<16x1xf32>
    %223 = math.rsqrt %222 : vector<16x1xf32>
    %224 = vector.broadcast %223 : vector<16x1xf32> to vector<16x128xf32>
    %225 = arith.mulf %220, %224 : vector<16x128xf32>
    %c0_120 = arith.constant 0 : index
    %c0_121 = arith.constant 0 : index
    %226 = vector.load %arg18[%c0_120, %c0_121] : memref<1x128xf32, #tpu.memory_space<vmem>>, vector<1x128xf32>
    %227 = vector.shape_cast %226 : vector<1x128xf32> to vector<128xf32>
    %228 = vector.shape_cast %227 : vector<128xf32> to vector<1x128xf32>
    %229 = vector.broadcast %228 : vector<1x128xf32> to vector<16x128xf32>
    %230 = arith.mulf %225, %229 : vector<16x128xf32>
    %c0_122 = arith.constant 0 : index
    %c0_123 = arith.constant 0 : index
    %231 = vector.load %arg19[%c0_122, %c0_123] : memref<1x128xf32, #tpu.memory_space<vmem>>, vector<1x128xf32>
    %232 = vector.shape_cast %231 : vector<1x128xf32> to vector<128xf32>
    %233 = vector.shape_cast %232 : vector<128xf32> to vector<1x128xf32>
    %234 = vector.broadcast %233 : vector<1x128xf32> to vector<16x128xf32>
    %235 = arith.addf %230, %234 : vector<16x128xf32>
    %236 = arith.truncf %235 : vector<16x128xf32> to vector<16x128xbf16>
    %c0_124 = arith.constant 0 : index
    %c0_125 = arith.constant 0 : index
    %237 = vector.load %arg22[%c0_124, %c0_125] : memref<128x256xbf16, #tpu.memory_space<vmem>>, vector<128x256xbf16>
    %cst_126 = arith.constant dense<0.000000e+00> : vector<16x256xf32>
    %238 = tpu.matmul %236, %237, %cst_126 {dimension_numbers = #tpu.dot_dimension_numbers<[1], [0], [0], [1], [0, 0, 1, 1], [], []>} : vector<16x128xbf16>, vector<128x256xbf16>, vector<16x256xf32> -> vector<16x256xf32>
    %c0_127 = arith.constant 0 : index
    %c0_128 = arith.constant 0 : index
    %239 = vector.load %arg23[%c0_127, %c0_128] : memref<1x256xf32, #tpu.memory_space<vmem>>, vector<1x256xf32>
    %240 = vector.shape_cast %239 : vector<1x256xf32> to vector<256xf32>
    %241 = vector.shape_cast %240 : vector<256xf32> to vector<1x256xf32>
    %242 = vector.broadcast %241 : vector<1x256xf32> to vector<16x256xf32>
    %243 = arith.addf %238, %242 : vector<16x256xf32>
    %cst_129 = arith.constant 0.000000e+00 : f32
    %244 = vector.broadcast %cst_129 : f32 to vector<16x256xf32>
    %245 = arith.maximumf %243, %244 : vector<16x256xf32>
    %246 = arith.truncf %245 : vector<16x256xf32> to vector<16x256xbf16>
    %c0_130 = arith.constant 0 : index
    %c0_131 = arith.constant 0 : index
    %247 = vector.load %arg24[%c0_130, %c0_131] : memref<256x128xbf16, #tpu.memory_space<vmem>>, vector<256x128xbf16>
    %cst_132 = arith.constant dense<0.000000e+00> : vector<16x128xf32>
    %248 = tpu.matmul %246, %247, %cst_132 {dimension_numbers = #tpu.dot_dimension_numbers<[1], [0], [0], [1], [0, 0, 1, 1], [], []>} : vector<16x256xbf16>, vector<256x128xbf16>, vector<16x128xf32> -> vector<16x128xf32>
    %c0_133 = arith.constant 0 : index
    %c0_134 = arith.constant 0 : index
    %249 = vector.load %arg25[%c0_133, %c0_134] : memref<1x128xf32, #tpu.memory_space<vmem>>, vector<1x128xf32>
    %250 = vector.shape_cast %249 : vector<1x128xf32> to vector<128xf32>
    %251 = vector.shape_cast %250 : vector<128xf32> to vector<1x128xf32>
    %252 = vector.broadcast %251 : vector<1x128xf32> to vector<16x128xf32>
    %253 = arith.addf %248, %252 : vector<16x128xf32>
    %254 = arith.addf %235, %253 : vector<16x128xf32>
    %cst_135 = arith.constant dense<0.000000e+00> : vector<16xf32>
    %255 = vector.multi_reduction <add>, %254, %cst_135 [1] : vector<16x128xf32> to vector<16xf32>
    %256 = vector.shape_cast %255 : vector<16xf32> to vector<16x1xf32>
    %cst_136 = arith.constant 1.280000e+02 : f32
    %257 = vector.broadcast %cst_136 : f32 to vector<16x1xf32>
    %258 = arith.divf %256, %257 : vector<16x1xf32>
    %259 = vector.broadcast %258 : vector<16x1xf32> to vector<16x128xf32>
    %260 = arith.subf %254, %259 : vector<16x128xf32>
    %261 = arith.mulf %260, %260 : vector<16x128xf32>
    %cst_137 = arith.constant dense<0.000000e+00> : vector<16xf32>
    %262 = vector.multi_reduction <add>, %261, %cst_137 [1] : vector<16x128xf32> to vector<16xf32>
    %263 = vector.shape_cast %262 : vector<16xf32> to vector<16x1xf32>
    %cst_138 = arith.constant 1.280000e+02 : f32
    %264 = vector.broadcast %cst_138 : f32 to vector<16x1xf32>
    %265 = arith.divf %263, %264 : vector<16x1xf32>
    %266 = vector.broadcast %258 : vector<16x1xf32> to vector<16x128xf32>
    %267 = arith.subf %254, %266 : vector<16x128xf32>
    %cst_139 = arith.constant 9.99999974E-6 : f32
    %268 = vector.broadcast %cst_139 : f32 to vector<16x1xf32>
    %269 = arith.addf %265, %268 : vector<16x1xf32>
    %270 = math.rsqrt %269 : vector<16x1xf32>
    %271 = vector.broadcast %270 : vector<16x1xf32> to vector<16x128xf32>
    %272 = arith.mulf %267, %271 : vector<16x128xf32>
    %c0_140 = arith.constant 0 : index
    %c0_141 = arith.constant 0 : index
    %273 = vector.load %arg20[%c0_140, %c0_141] : memref<1x128xf32, #tpu.memory_space<vmem>>, vector<1x128xf32>
    %274 = vector.shape_cast %273 : vector<1x128xf32> to vector<128xf32>
    %275 = vector.shape_cast %274 : vector<128xf32> to vector<1x128xf32>
    %276 = vector.broadcast %275 : vector<1x128xf32> to vector<16x128xf32>
    %277 = arith.mulf %272, %276 : vector<16x128xf32>
    %c0_142 = arith.constant 0 : index
    %c0_143 = arith.constant 0 : index
    %278 = vector.load %arg21[%c0_142, %c0_143] : memref<1x128xf32, #tpu.memory_space<vmem>>, vector<1x128xf32>
    %279 = vector.shape_cast %278 : vector<1x128xf32> to vector<128xf32>
    %280 = vector.shape_cast %279 : vector<128xf32> to vector<1x128xf32>
    %281 = vector.broadcast %280 : vector<1x128xf32> to vector<16x128xf32>
    %282 = arith.addf %277, %281 : vector<16x128xf32>
    %c0_144 = arith.constant 0 : index
    %c0_145 = arith.constant 0 : index
    %c0_146 = arith.constant 0 : index
    %283 = vector.load %arg26[%c0_144, %c0_145, %c0_146] : memref<1x16x128xf32, #tpu.memory_space<vmem>>, vector<1x16x128xf32>
    %284 = vector.shape_cast %283 : vector<1x16x128xf32> to vector<16x128xf32>
    %285 = vector.shape_cast %282 : vector<16x128xf32> to vector<1x16x128xf32>
    tpu.vector_store %arg26[%c0_144, %c0_145, %c0_146], %285 {strides = array<i32>} : memref<1x16x128xf32, #tpu.memory_space<vmem>>, vector<1x16x128xf32>,
    return
  }
  func.func @transform_0(%arg0: i32, %arg1: i32) -> (i32, i32, i32) {
    %c0_i32 = arith.constant 0 : i32
    %c0_i32_0 = arith.constant 0 : i32
    %c0_i32_1 = arith.constant 0 : i32
    return %arg0, %c0_i32, %c0_i32_0 : i32, i32, i32
  }
  func.func @transform_1(%arg0: i32, %arg1: i32) -> (i32, i32, i32) {
    %c0_i32 = arith.constant 0 : i32
    %c0_i32_0 = arith.constant 0 : i32
    %c0_i32_1 = arith.constant 0 : i32
    return %arg0, %c0_i32, %c0_i32_0 : i32, i32, i32
  }
  func.func @transform_2(%arg0: i32, %arg1: i32) -> (i32, i32, i32) {
    %c0_i32 = arith.constant 0 : i32
    %c0_i32_0 = arith.constant 0 : i32
    return %arg0, %arg1, %c0_i32 : i32, i32, i32
  }
  func.func @transform_3(%arg0: i32, %arg1: i32) -> (i32, i32, i32) {
    %c0_i32 = arith.constant 0 : i32
    %c0_i32_0 = arith.constant 0 : i32
    return %arg0, %arg1, %c0_i32 : i32, i32, i32
  }
  func.func @transform_4(%arg0: i32, %arg1: i32) -> (i32, i32, i32) {
    %c0_i32 = arith.constant 0 : i32
    %c0_i32_0 = arith.constant 0 : i32
    %c0_i32_1 = arith.constant 0 : i32
    %c0_i32_2 = arith.constant 0 : i32
    return %c0_i32, %c0_i32_0, %c0_i32_1 : i32, i32, i32
  }
  func.func @transform_5(%arg0: i32, %arg1: i32) -> (i32, i32, i32) {
    %c0_i32 = arith.constant 0 : i32
    %c0_i32_0 = arith.constant 0 : i32
    %c0_i32_1 = arith.constant 0 : i32
    %c0_i32_2 = arith.constant 0 : i32
    return %c0_i32, %c0_i32_0, %c0_i32_1 : i32, i32, i32
  }
  func.func @transform_6(%arg0: i32, %arg1: i32) -> (i32, i32, i32) {
    %c0_i32 = arith.constant 0 : i32
    %c0_i32_0 = arith.constant 0 : i32
    %c0_i32_1 = arith.constant 0 : i32
    %c0_i32_2 = arith.constant 0 : i32
    return %c0_i32, %c0_i32_0, %c0_i32_1 : i32, i32, i32
  }
  func.func @transform_7(%arg0: i32, %arg1: i32) -> (i32, i32, i32) {
    %c0_i32 = arith.constant 0 : i32
    %c0_i32_0 = arith.constant 0 : i32
    %c0_i32_1 = arith.constant 0 : i32
    %c0_i32_2 = arith.constant 0 : i32
    return %c0_i32, %c0_i32_0, %c0_i32_1 : i32, i32, i32
  }
  func.func @transform_8(%arg0: i32, %arg1: i32) -> (i32, i32) {
    %c0_i32 = arith.constant 0 : i32
    %c0_i32_0 = arith.constant 0 : i32
    %c0_i32_1 = arith.constant 0 : i32
    return %c0_i32, %c0_i32_0 : i32, i32
  }
  func.func @transform_9(%arg0: i32, %arg1: i32) -> (i32, i32, i32) {
    %c0_i32 = arith.constant 0 : i32
    %c0_i32_0 = arith.constant 0 : i32
    %c0_i32_1 = arith.constant 0 : i32
    %c0_i32_2 = arith.constant 0 : i32
    return %c0_i32, %c0_i32_0, %c0_i32_1 : i32, i32, i32
  }
  func.func @transform_10(%arg0: i32, %arg1: i32) -> (i32, i32, i32) {
    %c0_i32 = arith.constant 0 : i32
    %c0_i32_0 = arith.constant 0 : i32
    %c0_i32_1 = arith.constant 0 : i32
    %c0_i32_2 = arith.constant 0 : i32
    return %c0_i32, %c0_i32_0, %c0_i32_1 : i32, i32, i32
  }
  func.func @transform_11(%arg0: i32, %arg1: i32) -> (i32, i32, i32) {
    %c0_i32 = arith.constant 0 : i32
    %c0_i32_0 = arith.constant 0 : i32
    %c0_i32_1 = arith.constant 0 : i32
    %c0_i32_2 = arith.constant 0 : i32
    return %c0_i32, %c0_i32_0, %c0_i32_1 : i32, i32, i32
  }
  func.func @transform_12(%arg0: i32, %arg1: i32) -> (i32, i32, i32) {
    %c0_i32 = arith.constant 0 : i32
    %c0_i32_0 = arith.constant 0 : i32
    %c0_i32_1 = arith.constant 0 : i32
    %c0_i32_2 = arith.constant 0 : i32
    return %c0_i32, %c0_i32_0, %c0_i32_1 : i32, i32, i32
  }
  func.func @transform_13(%arg0: i32, %arg1: i32) -> (i32, i32) {
    %c0_i32 = arith.constant 0 : i32
    %c0_i32_0 = arith.constant 0 : i32
    %c0_i32_1 = arith.constant 0 : i32
    return %c0_i32, %c0_i32_0 : i32, i32
  }
  func.func @transform_14(%arg0: i32, %arg1: i32) -> (i32, i32) {
    %c0_i32 = arith.constant 0 : i32
    %c0_i32_0 = arith.constant 0 : i32
    %c0_i32_1 = arith.constant 0 : i32
    return %c0_i32, %c0_i32_0 : i32, i32
  }
  func.func @transform_15(%arg0: i32, %arg1: i32) -> (i32, i32) {
    %c0_i32 = arith.constant 0 : i32
    %c0_i32_0 = arith.constant 0 : i32
    %c0_i32_1 = arith.constant 0 : i32
    return %c0_i32, %c0_i32_0 : i32, i32
  }
  func.func @transform_16(%arg0: i32, %arg1: i32) -> (i32, i32) {
    %c0_i32 = arith.constant 0 : i32
    %c0_i32_0 = arith.constant 0 : i32
    %c0_i32_1 = arith.constant 0 : i32
    return %c0_i32, %c0_i32_0 : i32, i32
  }
  func.func @transform_17(%arg0: i32, %arg1: i32) -> (i32, i32) {
    %c0_i32 = arith.constant 0 : i32
    %c0_i32_0 = arith.constant 0 : i32
    %c0_i32_1 = arith.constant 0 : i32
    return %c0_i32, %c0_i32_0 : i32, i32
  }
  func.func @transform_18(%arg0: i32, %arg1: i32) -> (i32, i32) {
    %c0_i32 = arith.constant 0 : i32
    %c0_i32_0 = arith.constant 0 : i32
    %c0_i32_1 = arith.constant 0 : i32
    return %c0_i32, %c0_i32_0 : i32, i32
  }
  func.func @transform_19(%arg0: i32, %arg1: i32) -> (i32, i32) {
    %c0_i32 = arith.constant 0 : i32
    %c0_i32_0 = arith.constant 0 : i32
    %c0_i32_1 = arith.constant 0 : i32
    return %c0_i32, %c0_i32_0 : i32, i32
  }
  func.func @transform_20(%arg0: i32, %arg1: i32) -> (i32, i32) {
    %c0_i32 = arith.constant 0 : i32
    %c0_i32_0 = arith.constant 0 : i32
    %c0_i32_1 = arith.constant 0 : i32
    return %c0_i32, %c0_i32_0 : i32, i32
  }
  func.func @transform_21(%arg0: i32, %arg1: i32) -> (i32, i32) {
    %c0_i32 = arith.constant 0 : i32
    %c0_i32_0 = arith.constant 0 : i32
    %c0_i32_1 = arith.constant 0 : i32
    return %c0_i32, %c0_i32_0 : i32, i32
  }
  func.func @transform_22(%arg0: i32, %arg1: i32) -> (i32, i32) {
    %c0_i32 = arith.constant 0 : i32
    %c0_i32_0 = arith.constant 0 : i32
    %c0_i32_1 = arith.constant 0 : i32
    return %c0_i32, %c0_i32_0 : i32, i32
  }
  func.func @transform_23(%arg0: i32, %arg1: i32) -> (i32, i32) {
    %c0_i32 = arith.constant 0 : i32
    %c0_i32_0 = arith.constant 0 : i32
    %c0_i32_1 = arith.constant 0 : i32
    return %c0_i32, %c0_i32_0 : i32, i32
  }
  func.func @transform_24(%arg0: i32, %arg1: i32) -> (i32, i32, i32) {
    %c0_i32 = arith.constant 0 : i32
    %c0_i32_0 = arith.constant 0 : i32
    return %arg0, %arg1, %c0_i32 : i32, i32, i32
  }
}

</mosaic_0001>

<bundles_post_ra>
// kernel: tpu_custom_call.1
= control target key start
LH: loop header
LB: loop body
LE: loop exit
PB: predicated region body
PF: predicated region fallthrough
CT: control target
= control target key end

     0   :  { %s9379_s0 = inlined_call_operand.vmem [shape: f32[2,32,128], index: 0, kind: input, shape index: {}]   ;;  %s9380_s1 = inlined_call_operand.vmem [shape: f32[2,32,128], index: 1, kind: input, shape index: {}]   ;;  %s9381_s2 = inlined_call_operand.vmem [shape: bf16[2,32,32], index: 2, kind: input, shape index: {}]   ;;  %s9382_s3 = inlined_call_operand.vmem [shape: bf16[2,32,32], index: 3, kind: input, shape index: {}]   ;;  %s9383_s4 = inlined_call_operand.vmem [shape: bf16[4,128,32], index: 4, kind: input, shape index: {}]   ;;  %s9384_s5 = inlined_call_operand.vmem [shape: bf16[4,128,32], index: 5, kind: input, shape index: {}]   ;;  %s9385_s6 = inlined_call_operand.vmem [shape: bf16[4,128,32], index: 6, kind: input, shape index: {}]   ;;  %s9386_s7 = inlined_call_operand.vmem [shape: bf16[4,32,128], index: 7, kind: input, shape index: {}]   ;;  %s9387_s8 = inlined_call_operand.vmem [shape: f32[1,128], index: 8, kind: input, shape index: {}]   ;;  %s9388_s9 = inlined_call_operand.vmem [shape: bf16[4,128,32], index: 9, kind: input, shape index: {}]   ;;  %s9389_s10 = inlined_call_operand.vmem [shape: bf16[4,128,32], index: 10, kind: input, shape index: {}]   ;;  %s9390_s11 = inlined_call_operand.vmem [shape: bf16[4,128,32], index: 11, kind: input, shape index: {}]   ;;  %s9391_s12 = inlined_call_operand.vmem [shape: bf16[4,32,128], index: 12, kind: input, shape index: {}]   ;;  %s9392_s13 = inlined_call_operand.vmem [shape: f32[1,128], index: 13, kind: input, shape index: {}]   ;;  %s9393_s14 = inlined_call_operand.vmem [shape: f32[1,128], index: 14, kind: input, shape index: {}]   ;;  %s9394_s15 = inlined_call_operand.vmem [shape: f32[1,128], index: 15, kind: input, shape index: {}]   ;;  %s9395_s16 = inlined_call_operand.vmem [shape: f32[1,128], index: 16, kind: input, shape index: {}]   ;;  %s9396_s17 = inlined_call_operand.vmem [shape: f32[1,128], index: 17, kind: input, shape index: {}]   ;;  %s9397_s18 = inlined_call_operand.vmem [shape: f32[1,128], index: 18, kind: input, shape index: {}]   ;;  %s9398_s19 = inlined_call_operand.vmem [shape: f32[1,128], index: 19, kind: input, shape index: {}]   ;;  %s9399_s20 = inlined_call_operand.vmem [shape: bf16[128,256], index: 20, kind: input, shape index: {}]   ;;  %s9400_s21 = inlined_call_operand.vmem [shape: f32[1,256], index: 21, kind: input, shape index: {}]   ;;  %s9401_s22 = inlined_call_operand.vmem [shape: bf16[256,128], index: 22, kind: input, shape index: {}]   ;;  %s9402_s23 = inlined_call_operand.vmem [shape: f32[1,128], index: 23, kind: input, shape index: {}]   ;;  %s9403_s24 = inlined_call_operand.hbm [shape: f32[2,32,128], index: 24, kind: output, shape index: {}]  }
   0x1   :  { %9426 = sst [smem:[#allocation22_spill]] %s9379_s0 }
   0x2   :  { %9427 = sst [smem:[#allocation23_spill]] %s9380_s1 }
   0x3   :  { %9428 = sst [smem:[#allocation24_spill]] %s9381_s2 }
   0x4   :  { %9429 = sst [smem:[#allocation25_spill]] %s9382_s3 }
   0x5   :  { %9430 = sst [smem:[#allocation26_spill]] %s9383_s4 }
   0x6   :  { %9431 = sst [smem:[#allocation27_spill]] %s9384_s5 }
   0x7   :  { %9432 = sst [smem:[#allocation28_spill]] %s9385_s6 }
   0x8   :  { %9433 = sst [smem:[#allocation29_spill]] %s9386_s7 }
   0x9   :  { %9434 = sst [smem:[#allocation30_spill]] %s9387_s8 }
   0xa   :  { %9435 = sst [smem:[#allocation31_spill]] %s9395_s16 }
   0xb   :  { %9436 = sst [smem:[#allocation32_spill]] %s9396_s17 }
   0xc   :  { %9437 = sst [smem:[#allocation33_spill]] %s9397_s18 }
   0xd   :  { %9438 = sst [smem:[#allocation34_spill]] %s9398_s19 }
   0xe   :  { %9439 = sst [smem:[#allocation35_spill]] %s9399_s20 }
   0xf   :  { %9440 = sst [smem:[#allocation36_spill]] %s9400_s21 }
  0x10   :  { %9441 = sst [smem:[#allocation37_spill]] %s9401_s22 }
  0x11   :  { %9442 = sst [smem:[#allocation38_spill]] %s9402_s23 }
  0x12   :  { %9443 = sst [smem:[#allocation39_spill]] %s9403_s24 }
  0x13   :  { %29 = vsyncpa [#allocation7], 0 }
  0x14   :  { %31 = vsyncpa [#allocation7 + $0x1], 0  ;;  %s8037_s5 = smov 0   ;;  %s8039_s26 = smov 0  }
  0x15   :  { %s8041_s27 = smov 0   ;;  %s8043_s28 = smov 0  }
  0x16   :  { %s8045_s6 = smov 0   ;;  %s8047_s2 = smov 0  }
  0x17   :  { %s8049_s29 = smov 0   ;;  %s8051_s0 = smov 0  }
  0x18 LB: > { %9444 = sst [smem:[#allocation9_spill]] %s7876_s5  ;;  %s5791_s7 = sadd.s32 4294967295, %s7904_s0   ;;  %s7904_s0 = sphi %s8051_s0, %s37_s0   ;;  %s7900_s29 = sphi %s8049_s29, %s9493_s29   ;;  %s7896_s2 = sphi %s8047_s2, %s9492_s2   ;;  %s7892_s6 = sphi %s8045_s6, %s9491_s6   ;;  %s7888_s28 = sphi %s8043_s28, %s9490_s28   ;;  %s7884_s27 = sphi %s8041_s27, %s9489_s27   ;;  %s7880_s26 = sphi %s8039_s26, %s9488_s26   ;;  %s7876_s5 = sphi %s8037_s5, %s9487_s5  }
  0x19   : > { %9445 = sst [smem:[#allocation10_spill]] %s7880_s26  ;;  %s5792_s30 = sadd.s32 4294967294, %s7904_s0  }
  0x1a   : > { %9446 = sst [smem:[#allocation11_spill]] %s7884_s27  ;;  %s46_s3 = sadd.s32 1, %s7896_s2 }
  0x1b   : > { %9447 = sst [smem:[#allocation12_spill]] %s7892_s6  ;;  %p47_p0 = scmp.ge.s32.totalorder %s46_s3, 2 }
  0x1c   : > { %9448 = sst [smem:[#allocation13_spill]] %s7896_s2  ;;  %s49_s25 = sadd.s32 1, %s7900_s29 }
  0x1d   : > { %9449 = sst [smem:[#allocation14_spill]] %s7900_s29  ;;  %p596_p1 = scmp.ne.s32.totalorder %s7884_s27, %s7880_s26 }
  0x1e   : > { %9450 = sst [smem:[#allocation15_spill]] %s7904_s0  ;;  %p597_p2 = scmp.eq.s32.totalorder %s5791_s7, 3 }
  0x1f   : > { %s9495_s3 = smov (%p47_p0, %s46_s3), 0  ;;  %s9497_s25 = smov (!%p47_p0, %s49_s25), %s7900_s29 }
  0x20   : > { %9451 = sst [smem:[#allocation16_spill]] %s9495_s3  ;;  %s582_s8 = ssub.s32 %s7896_s2, %s9495_s3 }
  0x21   : > { %p8088_p3 = por %p597_p2, %p596_p1  ;;  %p51_p4 = scmp.ge.s32.totalorder %s9497_s25, 2 }
  0x22   : > { %p602_p5 = scmp.ne.s32.totalorder %s7880_s26, %s7876_s5  ;;  %p603_p6 = scmp.eq.s32.totalorder %s5792_s30, 3 }
  0x23   : > { %s9452_s4 = scalar_select %p8088_p3, 1, 0 }
  0x24   : > { %p5795_p7 = scmp.ge.s32.totalorder %s7904_s0, 1  ;;  %s9499_s25 = smov (%p51_p4, %s9497_s25), 0 }
  0x25   : > { %9453 = sst [smem:[#allocation17_spill]] %s9452_s4  ;;  %p8097_p8 = por %p603_p6, %p602_p5 }
  0x26   : > { %9454 = sst [smem:[#allocation18_spill]] %s9499_s25  ;;  %p723_p9 = scmp.lt.s32.totalorder %s7904_s0, 5 }
  0x27   : > { %s9455_s1 = scalar_select %p8097_p8, 1, 0 }
  0x28   : > { %s581_s7 = ssub.s32 %s7900_s29, %s9499_s25  ;;  %s586_s24 = sadd.s32 1, %s7884_s27 }
  0x29   : > { %9456 = sst [smem:[#allocation19_spill]] %s9455_s1  ;;  %s583_s19 = sor.u32 %s582_s8, %s581_s7 }
  0x2a   : > { %p724_p10 = pnand %p5795_p7, %p723_p9  ;;  %p584_p11 = scmp.eq.s32.totalorder %s583_s19, 0 }
  0x2c   : > { %s8106_s3 = scalar_select %p584_p11, %s7884_s27, %s586_s24  }
  0x2d   : > { %727 = sbr.rel (%p724_p10) target bundleno = 4435 (0x1153), region = 116 }
  0x2e   : > { %9457 = sst [smem:[#allocation20_spill]] %s8106_s3 }
  0x34   : > { %s9420_s30 = sand.u32 1, %s7880_s26   ;;  %p812_p12 = scmp.lt.s32.totalorder %s7892_s6, 1 }
  0x35   : > { %s5796_s2 = sshll.u32 %s9420_s30, 4  ;;  %s8113_s1 = sshll.u32 %s7888_s28, 1 }
  0x36   : > { %9458 = sst [smem:[#allocation21_spill]] %s8113_s1  ;;  %p825_p13 = scmp.lt.s32.totalorder %s8113_s1, 3 }
  0x37   : > { %s813_s8 = scalar_select %p812_p12, %s7892_s6, 1 }
  0x38   : > { %s826_s19 = scalar_select %p825_p13, %s8113_s1, 3 }
  0x39   : > { %s6400_s24 = sshll.u32 %s813_s8, 5  ;;  %s5802_s7 = sshll.u32 %s813_s8, 2 }
  0x3a   : > { %s9459_s3 = sld [smem:[#allocation22_spill]]  ;;  %s9460_s4 = sld [smem:[#allocation23_spill]] }
  0x3b   : > { %s828_s30 = sadd.s32 %s5802_s7, %s826_s19  ;;  %s5807_s26 = sshll.u32 %s7888_s28, 4 }
  0x3c   : > { %s5803_s23 = sshll.u32 %s828_s30, 2  ;;  %s9461_s16 = sld [smem:[#allocation24_spill]] }
  0x3d   : > { %s9462_s22 = sld [smem:[#allocation25_spill]]  ;;  %s8139_s29 = scalar_lea.vmem [#allocation6], %s5796_s2 }
  0x3e   : > { %p5808_p0 = scmp.ne.s32.totalorder %s7888_s28, 0 }
  0x3f   : > { %s9464_s30 = sld [smem:[#allocation28_spill]] (!%p5808_p0)  ;;  %v7500_v21 = vld [vmem:[%s9389_s10] sm:$0xff] (!%p5808_p0)   ;;  %v7502_v24 = vld [vmem:[%s9389_s10 + $0x8] sm:$0xff] (!%p5808_p0)   ;;  %v7504_v29 = vld [vmem:[%s9389_s10 + $0x10] sm:$0xff] (!%p5808_p0)   ;;  %vm976_vm0 = vcmask (!%p5808_p0), 261120  }
  0x40   : > { %s8121_s27 = scalar_lea.vmem %s9459_s3, %s6400_s24  ;;  %s8126_s18 = scalar_lea.vmem %s9460_s4, %s6400_s24  ;;  %v7501_v22 = vld [vmem:[%s9390_s11] sm:$0xff] (!%p5808_p0)   ;;  %v7503_v25 = vld [vmem:[%s9390_s11 + $0x8] sm:$0xff] (!%p5808_p0)   ;;  %v7505_v30 = vld [vmem:[%s9390_s11 + $0x10] sm:$0xff] (!%p5808_p0)  }
  0x41   : > { %848 = sbr.rel (%p5808_p0) target bundleno = 546 (0x222), region = 120  ;;  %s9463_s3 = sld [smem:[#allocation27_spill]] (!%p5808_p0)  ;;  %v849_v11 = vld [vmem:[%s8121_s27] sm:$0xff] (!%p5808_p0)  ;;  %v850_v12 = vld [vmem:[%s8121_s27 + $0x8] sm:$0xff] (!%p5808_p0)  ;;  %v851_v19 = vld [vmem:[%s8121_s27 + $0x10] sm:$0xff] (!%p5808_p0) }
  0x42   : > { %s8132_s6 = scalar_lea.vmem %s9461_s16, %s5803_s23  ;;  %v8180_v14 = vpack.c.bf16 (!%p5808_p0), %v850_v12, %v849_v11  ;;  %v852_v20 = vld [vmem:[%s8121_s27 + $0x18] sm:$0xff] (!%p5808_p0)  ;;  %v855_v26 = vld [vmem:[%s8126_s18] sm:$0xff] (!%p5808_p0)  ;;  %v856_v27 = vld [vmem:[%s8126_s18 + $0x8] sm:$0xff] (!%p5808_p0) }
  0x43   : > { %s8137_s20 = scalar_lea.vmem %s9462_s22, %s5803_s23  ;;  %v8204_v23 = vpack.c.bf16 (!%p5808_p0), %v852_v20, %v851_v19  ;;  %v8215_v28 = vpack.c.bf16 (!%p5808_p0), %v856_v27, %v855_v26  ;;  %v7506_v31 = vld [vmem:[%s9389_s10 + $0x18] sm:$0xff] (!%p5808_p0)   ;;  %v7508_v33 = vld [vmem:[%s9389_s10 + $0x20] sm:$0xff] (!%p5808_p0)   ;;  %v7510_v35 = vld [vmem:[%s9389_s10 + $0x28] sm:$0xff] (!%p5808_p0)  }
  0x44   : > { %6752 = vmatprep.mubr.bf16.mxu0 (!%p5808_p0), %v8180_v14  ;;  %6772 = vmatprep.mubr.bf16.mxu1 (!%p5808_p0), %v8180_v14  ;;  %v7507_v32 = vld [vmem:[%s9390_s11 + $0x18] sm:$0xff] (!%p5808_p0)   ;;  %v7509_v34 = vld [vmem:[%s9390_s11 + $0x20] sm:$0xff] (!%p5808_p0)   ;;  %v7511_v36 = vld [vmem:[%s9390_s11 + $0x28] sm:$0xff] (!%p5808_p0)  }
  0x45   : > { %v7485_v1 = vld [vmem:[%s9464_s30] sm:$0xff] (!%p5808_p0)   ;;  %v7487_v3 = vld [vmem:[%s9464_s30 + $0x8] sm:$0xff] (!%p5808_p0)   ;;  %v7489_v5 = vld [vmem:[%s9464_s30 + $0x10] sm:$0xff] (!%p5808_p0)  }
  0x46   : > { %6756 = vmatprep.subr.bf16.mxu1 (!%p5808_p0), %v7485_v1  ;;  %v7491_v7 = vld [vmem:[%s9464_s30 + $0x18] sm:$0xff] (!%p5808_p0)   ;;  %v7493_v9 = vld [vmem:[%s9464_s30 + $0x20] sm:$0xff] (!%p5808_p0)   ;;  %v7495_v13 = vld [vmem:[%s9464_s30 + $0x28] sm:$0xff] (!%p5808_p0)  }
  0x47   : > { %v7484_v0 = vld [vmem:[%s9463_s3] sm:$0xff] (!%p5808_p0)   ;;  %v7486_v2 = vld [vmem:[%s9463_s3 + $0x8] sm:$0xff] (!%p5808_p0)   ;;  %6757 = vmatpush3.bf16.msra.mxu1 (!%p5808_p0), %v7485_v1  ;;  %v7488_v4 = vld [vmem:[%s9463_s3 + $0x10] sm:$0xff] (!%p5808_p0)  }
  0x48   : > { %6736 = vmatprep.subr.bf16.mxu0 %v7484_v0  ;;  %6758 = vmatprep.subr.bf16.mxu1 %v7487_v3  ;;  %v7490_v6 = vld [vmem:[%s9463_s3 + $0x18] sm:$0xff]   ;;  %v7492_v8 = vld [vmem:[%s9463_s3 + $0x20] sm:$0xff]   ;;  %v7494_v10 = vld [vmem:[%s9463_s3 + $0x28] sm:$0xff]  }
  0x49   : > { %6737 = vmatpush3.bf16.msra.mxu0 %v7484_v0  ;;  %v7496_v15 = vld [vmem:[%s9463_s3 + $0x30] sm:$0xff]   ;;  %v7498_v17 = vld [vmem:[%s9463_s3 + $0x38] sm:$0xff]   ;;  %v7516_v43 = vld [vmem:[%s9463_s3 + $0x40] sm:$0xff]  }
  0x4a   : > { %6738 = vmatprep.subr.bf16.mxu0 %v7486_v2  ;;  %v7497_v16 = vld [vmem:[%s9464_s30 + $0x30] sm:$0xff]   ;;  %v7499_v18 = vld [vmem:[%s9464_s30 + $0x38] sm:$0xff]   ;;  %v7517_v44 = vld [vmem:[%s9464_s30 + $0x40] sm:$0xff]  }
  0x4b   : > { %6759 = vmatpush3.bf16.msra.mxu1 %v7487_v3  ;;  %v7512_v37 = vld [vmem:[%s9389_s10 + $0x30] sm:$0xff]   ;;  %v7514_v39 = vld [vmem:[%s9389_s10 + $0x38] sm:$0xff]   ;;  %v7518_v46 = vld [vmem:[%s9463_s3 + $0x48] sm:$0xff]  }
  0x4c   : > { %6760 = vmatprep.subr.bf16.mxu1 %v7489_v5  ;;  %v7513_v38 = vld [vmem:[%s9390_s11 + $0x30] sm:$0xff]   ;;  %v7515_v40 = vld [vmem:[%s9390_s11 + $0x38] sm:$0xff]   ;;  %v7519_v47 = vld [vmem:[%s9464_s30 + $0x48] sm:$0xff]  }
  0x4d   : > { %6739 = vmatpush3.bf16.msra.mxu0 %v7486_v2  ;;  %v857_v41 = vld [vmem:[%s8126_s18 + $0x10] sm:$0xff]  ;;  %v858_v42 = vld [vmem:[%s8126_s18 + $0x18] sm:$0xff]  ;;  %v7524_v52 = vld [vmem:[%s9463_s3 + $0x60] sm:$0xff]  }
  0x4e   : > { %6740 = vmatprep.subr.bf16.mxu0 %v7488_v4  ;;  %v8264_v45 = vpack.c.bf16 %v858_v42, %v857_v41  ;;  %v7520_v48 = vld [vmem:[%s9463_s3 + $0x50] sm:$0xff]   ;;  %v7522_v50 = vld [vmem:[%s9463_s3 + $0x58] sm:$0xff]   ;;  %v7525_v53 = vld [vmem:[%s9464_s30 + $0x60] sm:$0xff]  }
  0x4f   : > { %6761 = vmatpush3.bf16.msra.mxu1 %v7489_v5  ;;  %v7521_v49 = vld [vmem:[%s9464_s30 + $0x50] sm:$0xff]   ;;  %v7523_v51 = vld [vmem:[%s9464_s30 + $0x58] sm:$0xff]   ;;  %v7526_v54 = vld [vmem:[%s9463_s3 + $0x68] sm:$0xff]  }
  0x50   : > { %6762 = vmatprep.subr.bf16.mxu1 %v7491_v7  ;;  %v7527_v55 = vld [vmem:[%s9464_s30 + $0x68] sm:$0xff]   ;;  %v7528_v56 = vld [vmem:[%s9463_s3 + $0x70] sm:$0xff]   ;;  %v7530_v58 = vld [vmem:[%s9463_s3 + $0x78] sm:$0xff]  }
  0x51   : > { %6741 = vmatpush3.bf16.msra.mxu0 %v7488_v4  ;;  %v7529_v57 = vld [vmem:[%s9464_s30 + $0x70] sm:$0xff]   ;;  %v7531_v59 = vld [vmem:[%s9464_s30 + $0x78] sm:$0xff]   ;;  %v7532_v60 = vld [vmem:[%s9389_s10 + $0x40] sm:$0xff]  }
  0x52   : > { %6742 = vmatprep.subr.bf16.mxu0 %v7490_v6  ;;  %v7533_v61 = vld [vmem:[%s9390_s11 + $0x40] sm:$0xff]   ;;  %v7534_v62 = vld [vmem:[%s9389_s10 + $0x48] sm:$0xff]   ;;  %v7536_v0 = vld [vmem:[%s9389_s10 + $0x50] sm:$0xff]  }
  0x53   : > { %6763 = vmatpush3.bf16.msra.mxu1 %v7491_v7  ;;  %v7535_v63 = vld [vmem:[%s9390_s11 + $0x48] sm:$0xff]   ;;  %v7537_v1 = vld [vmem:[%s9390_s11 + $0x50] sm:$0xff]   ;;  %v7538_v2 = vld [vmem:[%s9389_s10 + $0x58] sm:$0xff]  }
  0x54   : > { %6764 = vmatprep.subr.bf16.mxu1 %v7493_v9  ;;  %v7539_v3 = vld [vmem:[%s9390_s11 + $0x58] sm:$0xff]   ;;  %v7540_v4 = vld [vmem:[%s9389_s10 + $0x60] sm:$0xff]   ;;  %v7543_v7 = vld [vmem:[%s9390_s11 + $0x68] sm:$0xff]  }
  0x55   : > { %6743 = vmatpush3.bf16.msra.mxu0 %v7490_v6  ;;  %v7541_v5 = vld [vmem:[%s9390_s11 + $0x60] sm:$0xff]   ;;  %v7542_v6 = vld [vmem:[%s9389_s10 + $0x68] sm:$0xff]   ;;  %v7547_v11 = vld [vmem:[%s9390_s11 + $0x78] sm:$0xff]  }
  0x56   : > { %6744 = vmatprep.subr.bf16.mxu0 %v7492_v8  ;;  %v7548_v12 = vld [vmem:[%s9463_s3 + $0x80] sm:$0xff]   ;;  %v7554_v19 = vld [vmem:[%s9463_s3 + $0x98] sm:$0xff]   ;;  %v7560_v26 = vld [vmem:[%s9463_s3 + $0xb0] sm:$0xff]  }
  0x57   : > { %6765 = vmatpush3.bf16.msra.mxu1 %v7493_v9  ;;  %v7545_v9 = vld [vmem:[%s9390_s11 + $0x70] sm:$0xff]   ;;  %v7555_v20 = vld [vmem:[%s9464_s30 + $0x98] sm:$0xff]   ;;  %v7574_v41 = vld [vmem:[%s9389_s10 + $0xa8] sm:$0xff]  }
  0x58   : > { %6766 = vmatprep.subr.bf16.mxu1 %v7495_v13  ;;  %v7561_v27 = vld [vmem:[%s9464_s30 + $0xb0] sm:$0xff]   ;;  %v7575_v42 = vld [vmem:[%s9390_s11 + $0xa8] sm:$0xff]  }
  0x59   : > { %6745 = vmatpush3.bf16.msra.mxu0 %v7492_v8  ;;  %v7544_v8 = vld [vmem:[%s9389_s10 + $0x70] sm:$0xff]  }
  0x5a   : > { %6746 = vmatprep.subr.bf16.mxu0 %v7494_v10 }
  0x5b   : > { %6767 = vmatpush3.bf16.msra.mxu1 %v7495_v13  ;;  %v7549_v13 = vld [vmem:[%s9464_s30 + $0x80] sm:$0xff]  }
  0x5c   : > { %6768 = vmatprep.subr.bf16.mxu1 %v7497_v16 }
  0x5d   : > { %6747 = vmatpush3.bf16.msra.mxu0 %v7494_v10  ;;  %v7546_v10 = vld [vmem:[%s9389_s10 + $0x78] sm:$0xff]  }
  0x5e   : > { %6748 = vmatprep.subr.bf16.mxu0 %v7496_v15 }
  0x5f   : > { %6769 = vmatpush3.bf16.msra.mxu1 %v7497_v16  ;;  %v7551_v16 = vld [vmem:[%s9464_s30 + $0x88] sm:$0xff]  }
  0x60   : > { %6770 = vmatprep.subr.bf16.mxu1 %v7499_v18 }
  0x61   : > { %6749 = vmatpush3.bf16.msra.mxu0 %v7496_v15  ;;  %v7550_v15 = vld [vmem:[%s9463_s3 + $0x88] sm:$0xff]  }
  0x62   : > { %6750 = vmatprep.subr.bf16.mxu0 %v7498_v17 }
  0x63   : > { %6771 = vmatpush3.bf16.msra.mxu1 %v7499_v18  ;;  %v7553_v18 = vld [vmem:[%s9464_s30 + $0x90] sm:$0xff]  }
  0x64   : > { %6796 = vmatprep.subr.bf16.mxu1 %v7501_v22 }
  0x65   : > { %6751 = vmatpush3.bf16.msra.mxu0 %v7498_v17  ;;  %v7552_v17 = vld [vmem:[%s9463_s3 + $0x90] sm:$0xff]  }
  0x66   : > { %6776 = vmatprep.subr.bf16.mxu0 %v7500_v21  ;;  %6773 = vmatmul.mubr.bf16.vlgmr.msra.gmra.mrb[0].mxu1 %v8204_v23 }
  0x67   : > { %6797 = vmatpush3.bf16.msra.mxu1 %v7501_v22  ;;  %6812 = vmatprep.mubr.bf16.mxu1 %v8215_v28  ;;  %v7557_v22 = vld [vmem:[%s9464_s30 + $0xa0] sm:$0xff]  }
  0x68   : > { %6753 = vmatmul.mubr.bf16.vlgmr.msra.gmra.mrb[0].mxu0 %v8204_v23  ;;  %6798 = vmatprep.subr.bf16.mxu1 %v7503_v25 }
  0x69   : > { %6777 = vmatpush3.bf16.msra.mxu0 %v7500_v21  ;;  %6792 = vmatprep.mubr.bf16.mxu0 %v8215_v28  ;;  %v7556_v21 = vld [vmem:[%s9463_s3 + $0xa0] sm:$0xff]  }
  0x6a   : > { %6778 = vmatprep.subr.bf16.mxu0 %v7502_v24 }
  0x6b   : > { %6799 = vmatpush3.bf16.msra.mxu1 %v7503_v25  ;;  %v7559_v25 = vld [vmem:[%s9464_s30 + $0xa8] sm:$0xff]  }
  0x6c   : > { %6800 = vmatprep.subr.bf16.mxu1 %v7505_v30 }
  0x6d   : > { %6779 = vmatpush3.bf16.msra.mxu0 %v7502_v24  ;;  %v7558_v24 = vld [vmem:[%s9463_s3 + $0xa8] sm:$0xff]  }
  0x6e   : > { %6780 = vmatprep.subr.bf16.mxu0 %v7504_v29 }
  0x6f   : > { %6801 = vmatpush3.bf16.msra.mxu1 %v7505_v30  ;;  %v7563_v30 = vld [vmem:[%s9464_s30 + $0xb8] sm:$0xff]  }
  0x70   : > { %6802 = vmatprep.subr.bf16.mxu1 %v7507_v32 }
  0x71   : > { %6781 = vmatpush3.bf16.msra.mxu0 %v7504_v29  ;;  %v7562_v29 = vld [vmem:[%s9463_s3 + $0xb8] sm:$0xff]  }
  0x72   : > { %6782 = vmatprep.subr.bf16.mxu0 %v7506_v31 }
  0x73   : > { %6803 = vmatpush3.bf16.msra.mxu1 %v7507_v32  ;;  %v7565_v32 = vld [vmem:[%s9390_s11 + $0x80] sm:$0xff]  }
  0x74   : > { %6804 = vmatprep.subr.bf16.mxu1 %v7509_v34 }
  0x75   : > { %6783 = vmatpush3.bf16.msra.mxu0 %v7506_v31  ;;  %v7564_v31 = vld [vmem:[%s9389_s10 + $0x80] sm:$0xff]  }
  0x76   : > { %6784 = vmatprep.subr.bf16.mxu0 %v7508_v33 }
  0x77   : > { %6805 = vmatpush3.bf16.msra.mxu1 %v7509_v34  ;;  %v7567_v34 = vld [vmem:[%s9390_s11 + $0x88] sm:$0xff]  }
  0x78   : > { %6806 = vmatprep.subr.bf16.mxu1 %v7511_v36 }
  0x79   : > { %6785 = vmatpush3.bf16.msra.mxu0 %v7508_v33  ;;  %v7566_v33 = vld [vmem:[%s9389_s10 + $0x88] sm:$0xff]  }
  0x7a   : > { %6786 = vmatprep.subr.bf16.mxu0 %v7510_v35 }
  0x7b   : > { %6807 = vmatpush3.bf16.msra.mxu1 %v7511_v36  ;;  %v7569_v36 = vld [vmem:[%s9390_s11 + $0x90] sm:$0xff]  }
  0x7c   : > { %6808 = vmatprep.subr.bf16.mxu1 %v7513_v38 }
  0x7d   : > { %6787 = vmatpush3.bf16.msra.mxu0 %v7510_v35  ;;  %v7568_v35 = vld [vmem:[%s9389_s10 + $0x90] sm:$0xff]  }
  0x7e   : > { %6788 = vmatprep.subr.bf16.mxu0 %v7512_v37 }
  0x7f   : > { %6809 = vmatpush3.bf16.msra.mxu1 %v7513_v38  ;;  %v7571_v38 = vld [vmem:[%s9390_s11 + $0x98] sm:$0xff]  }
  0x80   : > { %6810 = vmatprep.subr.bf16.mxu1 %v7515_v40 }
  0x81   : > { %6789 = vmatpush3.bf16.msra.mxu0 %v7512_v37  ;;  %v7570_v37 = vld [vmem:[%s9389_s10 + $0x98] sm:$0xff]  }
  0x82   : > { %6790 = vmatprep.subr.bf16.mxu0 %v7514_v39 }
  0x83   : > { %6811 = vmatpush3.bf16.msra.mxu1 %v7515_v40  ;;  %v7573_v40 = vld [vmem:[%s9390_s11 + $0xa0] sm:$0xff]  }
  0x84   : > { %6836 = vmatprep.subr.bf16.mxu1 %v7517_v44 }
  0x85   : > { %6791 = vmatpush3.bf16.msra.mxu0 %v7514_v39  ;;  %v7572_v39 = vld [vmem:[%s9389_s10 + $0xa0] sm:$0xff]  }
  0x86   : > { %6816 = vmatprep.subr.bf16.mxu0 %v7516_v43  ;;  %6813 = vmatmul.mubr.bf16.vlgmr.msra.gmra.mrb[4].mxu1 %v8264_v45 }
  0x87   : > { %6837 = vmatpush3.bf16.msra.mxu1 %v7517_v44  ;;  %6852 = vmatprep.mubr.bf16.mxu1 %v8180_v14  ;;  %v7577_v44 = vld [vmem:[%s9390_s11 + $0xb0] sm:$0xff]  }
  0x88   : > { %6793 = vmatmul.mubr.bf16.vlgmr.msra.gmra.mrb[4].mxu0 %v8264_v45  ;;  %6838 = vmatprep.subr.bf16.mxu1 %v7519_v47 }
  0x89   : > { %6817 = vmatpush3.bf16.msra.mxu0 %v7516_v43  ;;  %6832 = vmatprep.mubr.bf16.mxu0 %v8180_v14  ;;  %v7576_v43 = vld [vmem:[%s9389_s10 + $0xb0] sm:$0xff]  }
  0x8a   : > { %6818 = vmatprep.subr.bf16.mxu0 %v7518_v46 }
  0x8b   : > { %6839 = vmatpush3.bf16.msra.mxu1 %v7519_v47  ;;  %v7579_v47 = vld [vmem:[%s9390_s11 + $0xb8] sm:$0xff]  }
  0x8c   : > { %6840 = vmatprep.subr.bf16.mxu1 %v7521_v49 }
  0x8d   : > { %6819 = vmatpush3.bf16.msra.mxu0 %v7518_v46  ;;  %v7578_v46 = vld [vmem:[%s9389_s10 + $0xb8] sm:$0xff]  }
  0x8e   : > { %6820 = vmatprep.subr.bf16.mxu0 %v7520_v48 }
  0x8f   : > { %6841 = vmatpush3.bf16.msra.mxu1 %v7521_v49  ;;  %v7581_v49 = vld [vmem:[%s9464_s30 + $0xc0] sm:$0xff]  }
  0x90   : > { %6842 = vmatprep.subr.bf16.mxu1 %v7523_v51 }
  0x91   : > { %6821 = vmatpush3.bf16.msra.mxu0 %v7520_v48  ;;  %v7580_v48 = vld [vmem:[%s9463_s3 + $0xc0] sm:$0xff]  }
  0x92   : > { %6822 = vmatprep.subr.bf16.mxu0 %v7522_v50 }
  0x93   : > { %6843 = vmatpush3.bf16.msra.mxu1 %v7523_v51  ;;  %v7583_v51 = vld [vmem:[%s9464_s30 + $0xc8] sm:$0xff]  }
  0x94   : > { %6844 = vmatprep.subr.bf16.mxu1 %v7525_v53 }
  0x95   : > { %6823 = vmatpush3.bf16.msra.mxu0 %v7522_v50  ;;  %v7582_v50 = vld [vmem:[%s9463_s3 + $0xc8] sm:$0xff]  }
  0x96   : > { %6824 = vmatprep.subr.bf16.mxu0 %v7524_v52 }
  0x97   : > { %6845 = vmatpush3.bf16.msra.mxu1 %v7525_v53  ;;  %v7585_v53 = vld [vmem:[%s9464_s30 + $0xd0] sm:$0xff]  }
  0x98   : > { %6846 = vmatprep.subr.bf16.mxu1 %v7527_v55 }
  0x99   : > { %6825 = vmatpush3.bf16.msra.mxu0 %v7524_v52  ;;  %v7584_v52 = vld [vmem:[%s9463_s3 + $0xd0] sm:$0xff]  }
  0x9a   : > { %6826 = vmatprep.subr.bf16.mxu0 %v7526_v54 }
  0x9b   : > { %6847 = vmatpush3.bf16.msra.mxu1 %v7527_v55  ;;  %v7587_v55 = vld [vmem:[%s9464_s30 + $0xd8] sm:$0xff]  }
  0x9c   : > { %6848 = vmatprep.subr.bf16.mxu1 %v7529_v57 }
  0x9d   : > { %6827 = vmatpush3.bf16.msra.mxu0 %v7526_v54  ;;  %v7586_v54 = vld [vmem:[%s9463_s3 + $0xd8] sm:$0xff]  }
  0x9e   : > { %6828 = vmatprep.subr.bf16.mxu0 %v7528_v56 }
  0x9f   : > { %6849 = vmatpush3.bf16.msra.mxu1 %v7529_v57  ;;  %v7590_v57 = vld [vmem:[%s9463_s3 + $0xe8] sm:$0xff]  }
  0xa0   : > { %6850 = vmatprep.subr.bf16.mxu1 %v7531_v59 }
  0xa1   : > { %6829 = vmatpush3.bf16.msra.mxu0 %v7528_v56  ;;  %v7588_v56 = vld [vmem:[%s9463_s3 + $0xe0] sm:$0xff]  }
  0xa2   : > { %6830 = vmatprep.subr.bf16.mxu0 %v7530_v58 }
  0xa3   : > { %6851 = vmatpush3.bf16.msra.mxu1 %v7531_v59  ;;  %v7592_v59 = vld [vmem:[%s9463_s3 + $0xf0] sm:$0xff]  }
  0xa4   : > { %6876 = vmatprep.subr.bf16.mxu1 %v7533_v61 }
  0xa5   : > { %6831 = vmatpush3.bf16.msra.mxu0 %v7530_v58  ;;  %v7591_v58 = vld [vmem:[%s9464_s30 + $0xe8] sm:$0xff]  }
  0xa6   : > { %6856 = vmatprep.subr.bf16.mxu0 %v7532_v60  ;;  %6853 = vmatmul.mubr.bf16.vlgmr.msra.gmra.mrb[8].mxu1 %v8204_v23 }
  0xa7   : > { %6877 = vmatpush3.bf16.msra.mxu1 %v7533_v61  ;;  %6892 = vmatprep.mubr.bf16.mxu1 %v8215_v28  ;;  %v7594_v61 = vld [vmem:[%s9463_s3 + $0xf8] sm:$0xff]  }
  0xa8   : > { %6833 = vmatmul.mubr.bf16.vlgmr.msra.gmra.mrb[8].mxu0 %v8204_v23  ;;  %6878 = vmatprep.subr.bf16.mxu1 %v7535_v63 }
  0xa9   : > { %6857 = vmatpush3.bf16.msra.mxu0 %v7532_v60  ;;  %6872 = vmatprep.mubr.bf16.mxu0 %v8215_v28  ;;  %v7593_v60 = vld [vmem:[%s9464_s30 + $0xf0] sm:$0xff]  }
  0xaa   : > { %6858 = vmatprep.subr.bf16.mxu0 %v7534_v62 }
  0xab   : > { %6879 = vmatpush3.bf16.msra.mxu1 %v7535_v63  ;;  %v7596_v63 = vld [vmem:[%s9389_s10 + $0xc0] sm:$0xff]  }
  0xac   : > { %6880 = vmatprep.subr.bf16.mxu1 %v7537_v1 }
  0xad   : > { %6859 = vmatpush3.bf16.msra.mxu0 %v7534_v62  ;;  %v7595_v62 = vld [vmem:[%s9464_s30 + $0xf8] sm:$0xff]  }
  0xae   : > { %6860 = vmatprep.subr.bf16.mxu0 %v7536_v0 }
  0xaf   : > { %6881 = vmatpush3.bf16.msra.mxu1 %v7537_v1  ;;  %v7598_v1 = vld [vmem:[%s9389_s10 + $0xc8] sm:$0xff]  }
  0xb0   : > { %6882 = vmatprep.subr.bf16.mxu1 %v7539_v3 }
  0xb1   : > { %6861 = vmatpush3.bf16.msra.mxu0 %v7536_v0  ;;  %v7597_v0 = vld [vmem:[%s9390_s11 + $0xc0] sm:$0xff]  }
  0xb2   : > { %6862 = vmatprep.subr.bf16.mxu0 %v7538_v2 }
  0xb3   : > { %6883 = vmatpush3.bf16.msra.mxu1 %v7539_v3  ;;  %v7600_v3 = vld [vmem:[%s9389_s10 + $0xd0] sm:$0xff]  }
  0xb4   : > { %6884 = vmatprep.subr.bf16.mxu1 %v7541_v5 }
  0xb5   : > { %6863 = vmatpush3.bf16.msra.mxu0 %v7538_v2  ;;  %v7599_v2 = vld [vmem:[%s9390_s11 + $0xc8] sm:$0xff]  }
  0xb6   : > { %6864 = vmatprep.subr.bf16.mxu0 %v7540_v4 }
  0xb7   : > { %6885 = vmatpush3.bf16.msra.mxu1 %v7541_v5  ;;  %v7603_v5 = vld [vmem:[%s9390_s11 + $0xd8] sm:$0xff]  }
  0xb8   : > { %6886 = vmatprep.subr.bf16.mxu1 %v7543_v7 }
  0xb9   : > { %6865 = vmatpush3.bf16.msra.mxu0 %v7540_v4  ;;  %v7601_v4 = vld [vmem:[%s9390_s11 + $0xd0] sm:$0xff]  }
  0xba   : > { %6866 = vmatprep.subr.bf16.mxu0 %v7542_v6 }
  0xbb   : > { %6887 = vmatpush3.bf16.msra.mxu1 %v7543_v7  ;;  %v7606_v7 = vld [vmem:[%s9389_s10 + $0xe8] sm:$0xff]  }
  0xbc   : > { %6888 = vmatprep.subr.bf16.mxu1 %v7545_v9 }
  0xbd   : > { %6867 = vmatpush3.bf16.msra.mxu0 %v7542_v6  ;;  %v7604_v6 = vld [vmem:[%s9389_s10 + $0xe0] sm:$0xff]  }
  0xbe   : > { %6868 = vmatprep.subr.bf16.mxu0 %v7544_v8 }
  0xbf   : > { %6889 = vmatpush3.bf16.msra.mxu1 %v7545_v9  ;;  %v7608_v9 = vld [vmem:[%s9389_s10 + $0xf0] sm:$0xff]  }
  0xc0   : > { %6890 = vmatprep.subr.bf16.mxu1 %v7547_v11 }
  0xc1   : > { %6869 = vmatpush3.bf16.msra.mxu0 %v7544_v8  ;;  %v7607_v8 = vld [vmem:[%s9390_s11 + $0xe8] sm:$0xff]  }
  0xc2   : > { %6870 = vmatprep.subr.bf16.mxu0 %v7546_v10 }
  0xc3   : > { %6891 = vmatpush3.bf16.msra.mxu1 %v7547_v11  ;;  %v7609_v11 = vld [vmem:[%s9390_s11 + $0xf0] sm:$0xff]  }
  0xc4   : > { %6916 = vmatprep.subr.bf16.mxu1 %v7549_v13 }
  0xc5   : > { %6871 = vmatpush3.bf16.msra.mxu0 %v7546_v10 }
  0xc6   : > { %6896 = vmatprep.subr.bf16.mxu0 %v7548_v12  ;;  %6893 = vmatmul.mubr.bf16.vlgmr.msra.gmra.mrb[12].mxu1 %v8264_v45 }
  0xc7   : > { %6917 = vmatpush3.bf16.msra.mxu1 %v7549_v13  ;;  %6932 = vmatprep.mubr.bf16.mxu1 %v8180_v14 }
  0xc8   : > { %6873 = vmatmul.mubr.bf16.vlgmr.msra.gmra.mrb[12].mxu0 %v8264_v45  ;;  %6918 = vmatprep.subr.bf16.mxu1 %v7551_v16 }
  0xc9   : > { %6897 = vmatpush3.bf16.msra.mxu0 %v7548_v12  ;;  %6912 = vmatprep.mubr.bf16.mxu0 %v8180_v14 }
  0xca   : > { %6898 = vmatprep.subr.bf16.mxu0 %v7550_v15 }
  0xcb   : > { %6919 = vmatpush3.bf16.msra.mxu1 %v7551_v16 }
  0xcc   : > { %6920 = vmatprep.subr.bf16.mxu1 %v7553_v18 }
  0xcd   : > { %6899 = vmatpush3.bf16.msra.mxu0 %v7550_v15 }
  0xce   : > { %6900 = vmatprep.subr.bf16.mxu0 %v7552_v17 }
  0xcf   : > { %6921 = vmatpush3.bf16.msra.mxu1 %v7553_v18 }
  0xd0   : > { %6922 = vmatprep.subr.bf16.mxu1 %v7555_v20 }
  0xd1   : > { %6901 = vmatpush3.bf16.msra.mxu0 %v7552_v17 }
  0xd2   : > { %6902 = vmatprep.subr.bf16.mxu0 %v7554_v19 }
  0xd3   : > { %6923 = vmatpush3.bf16.msra.mxu1 %v7555_v20  ;;  %v7610_v20 = vld [vmem:[%s9389_s10 + $0xf8] sm:$0xff]  }
  0xd4   : > { %6924 = vmatprep.subr.bf16.mxu1 %v7557_v22 }
  0xd5   : > { %6903 = vmatpush3.bf16.msra.mxu0 %v7554_v19 }
  0xd6   : > { %6904 = vmatprep.subr.bf16.mxu0 %v7556_v21 }
  0xd7   : > { %6925 = vmatpush3.bf16.msra.mxu1 %v7557_v22 }
  0xd8   : > { %6926 = vmatprep.subr.bf16.mxu1 %v7559_v25 }
  0xd9   : > { %6905 = vmatpush3.bf16.msra.mxu0 %v7556_v21 }
  0xda   : > { %6906 = vmatprep.subr.bf16.mxu0 %v7558_v24 }
  0xdb   : > { %6927 = vmatpush3.bf16.msra.mxu1 %v7559_v25  ;;  %v7611_v25 = vld [vmem:[%s9390_s11 + $0xf8] sm:$0xff]  }
  0xdc   : > { %6928 = vmatprep.subr.bf16.mxu1 %v7561_v27 }
  0xdd   : > { %6907 = vmatpush3.bf16.msra.mxu0 %v7558_v24 }
  0xde   : > { %6908 = vmatprep.subr.bf16.mxu0 %v7560_v26 }
  0xdf   : > { %6929 = vmatpush3.bf16.msra.mxu1 %v7561_v27 }
  0xe0   : > { %6930 = vmatprep.subr.bf16.mxu1 %v7563_v30 }
  0xe1   : > { %6909 = vmatpush3.bf16.msra.mxu0 %v7560_v26 }
  0xe2   : > { %6910 = vmatprep.subr.bf16.mxu0 %v7562_v29 }
  0xe3   : > { %6931 = vmatpush3.bf16.msra.mxu1 %v7563_v30 }
  0xe4   : > { %6956 = vmatprep.subr.bf16.mxu1 %v7565_v32 }
  0xe5   : > { %6911 = vmatpush3.bf16.msra.mxu0 %v7562_v29 }
  0xe6   : > { %6936 = vmatprep.subr.bf16.mxu0 %v7564_v31  ;;  %6933 = vmatmul.mubr.bf16.vlgmr.msra.gmra.mrb[16].mxu1 %v8204_v23 }
  0xe7   : > { %6957 = vmatpush3.bf16.msra.mxu1 %v7565_v32  ;;  %6972 = vmatprep.mubr.bf16.mxu1 %v8215_v28 }
  0xe8   : > { %6913 = vmatmul.mubr.bf16.vlgmr.msra.gmra.mrb[16].mxu0 %v8204_v23  ;;  %6958 = vmatprep.subr.bf16.mxu1 %v7567_v34 }
  0xe9   : > { %6937 = vmatpush3.bf16.msra.mxu0 %v7564_v31  ;;  %6952 = vmatprep.mubr.bf16.mxu0 %v8215_v28 }
  0xea   : > { %6938 = vmatprep.subr.bf16.mxu0 %v7566_v33 }
  0xeb   : > { %6959 = vmatpush3.bf16.msra.mxu1 %v7567_v34 }
  0xec   : > { %6960 = vmatprep.subr.bf16.mxu1 %v7569_v36 }
  0xed   : > { %6939 = vmatpush3.bf16.msra.mxu0 %v7566_v33 }
  0xee   : > { %6940 = vmatprep.subr.bf16.mxu0 %v7568_v35 }
  0xef   : > { %6961 = vmatpush3.bf16.msra.mxu1 %v7569_v36 }
  0xf0   : > { %6962 = vmatprep.subr.bf16.mxu1 %v7571_v38 }
  0xf1   : > { %6941 = vmatpush3.bf16.msra.mxu0 %v7568_v35 }
  0xf2   : > { %6942 = vmatprep.subr.bf16.mxu0 %v7570_v37 }
  0xf3   : > { %6963 = vmatpush3.bf16.msra.mxu1 %v7571_v38 }
  0xf4   : > { %6964 = vmatprep.subr.bf16.mxu1 %v7573_v40 }
  0xf5   : > { %6943 = vmatpush3.bf16.msra.mxu0 %v7570_v37 }
  0xf6   : > { %6944 = vmatprep.subr.bf16.mxu0 %v7572_v39 }
  0xf7   : > { %6965 = vmatpush3.bf16.msra.mxu1 %v7573_v40 }
  0xf8   : > { %6966 = vmatprep.subr.bf16.mxu1 %v7575_v42 }
  0xf9   : > { %6945 = vmatpush3.bf16.msra.mxu0 %v7572_v39 }
  0xfa   : > { %6946 = vmatprep.subr.bf16.mxu0 %v7574_v41 }
  0xfb   : > { %6967 = vmatpush3.bf16.msra.mxu1 %v7575_v42 }
  0xfc   : > { %6968 = vmatprep.subr.bf16.mxu1 %v7577_v44 }
  0xfd   : > { %6947 = vmatpush3.bf16.msra.mxu0 %v7574_v41 }
  0xfe   : > { %6948 = vmatprep.subr.bf16.mxu0 %v7576_v43 }
  0xff   : > { %6969 = vmatpush3.bf16.msra.mxu1 %v7577_v44 }
 0x100   : > { %6970 = vmatprep.subr.bf16.mxu1 %v7579_v47 }
 0x101   : > { %6949 = vmatpush3.bf16.msra.mxu0 %v7576_v43 }
 0x102   : > { %6950 = vmatprep.subr.bf16.mxu0 %v7578_v46 }
 0x103   : > { %6971 = vmatpush3.bf16.msra.mxu1 %v7579_v47 }
 0x104   : > { %6996 = vmatprep.subr.bf16.mxu1 %v7581_v49 }
 0x105   : > { %6951 = vmatpush3.bf16.msra.mxu0 %v7578_v46 }
 0x106   : > { %6976 = vmatprep.subr.bf16.mxu0 %v7580_v48  ;;  %6973 = vmatmul.mubr.bf16.vlgmr.msra.gmra.mrb[20].mxu1 %v8264_v45 }
 0x107   : > { %6997 = vmatpush3.bf16.msra.mxu1 %v7581_v49  ;;  %7012 = vmatprep.mubr.bf16.mxu1 %v8180_v14 }
 0x108   : > { %6953 = vmatmul.mubr.bf16.vlgmr.msra.gmra.mrb[20].mxu0 %v8264_v45  ;;  %6998 = vmatprep.subr.bf16.mxu1 %v7583_v51 }
 0x109   : > { %6977 = vmatpush3.bf16.msra.mxu0 %v7580_v48  ;;  %6992 = vmatprep.mubr.bf16.mxu0 %v8180_v14  ;;  %v7589_v14 = vld [vmem:[%s9464_s30 + $0xe0] sm:$0xff]  }
 0x10a   : > { %6978 = vmatprep.subr.bf16.mxu0 %v7582_v50 }
 0x10b   : > { %6999 = vmatpush3.bf16.msra.mxu1 %v7583_v51 }
 0x10c   : > { %7000 = vmatprep.subr.bf16.mxu1 %v7585_v53 }
 0x10d   : > { %6979 = vmatpush3.bf16.msra.mxu0 %v7582_v50 }
 0x10e   : > { %6980 = vmatprep.subr.bf16.mxu0 %v7584_v52 }
 0x10f   : > { %7001 = vmatpush3.bf16.msra.mxu1 %v7585_v53 }
 0x110   : > { %7002 = vmatprep.subr.bf16.mxu1 %v7587_v55 }
 0x111   : > { %6981 = vmatpush3.bf16.msra.mxu0 %v7584_v52 }
 0x112   : > { %6982 = vmatprep.subr.bf16.mxu0 %v7586_v54 }
 0x113   : > { %7003 = vmatpush3.bf16.msra.mxu1 %v7587_v55 }
 0x114   : > { %7004 = vmatprep.subr.bf16.mxu1 %v7589_v14 }
 0x115   : > { %6983 = vmatpush3.bf16.msra.mxu0 %v7586_v54 }
 0x116   : > { %6984 = vmatprep.subr.bf16.mxu0 %v7588_v56 }
 0x117   : > { %7005 = vmatpush3.bf16.msra.mxu1 %v7589_v14 }
 0x118   : > { %7006 = vmatprep.subr.bf16.mxu1 %v7591_v58 }
 0x119   : > { %6985 = vmatpush3.bf16.msra.mxu0 %v7588_v56 }
 0x11a   : > { %6986 = vmatprep.subr.bf16.mxu0 %v7590_v57 }
 0x11b   : > { %7007 = vmatpush3.bf16.msra.mxu1 %v7591_v58 }
 0x11c   : > { %7008 = vmatprep.subr.bf16.mxu1 %v7593_v60 }
 0x11d   : > { %6987 = vmatpush3.bf16.msra.mxu0 %v7590_v57 }
 0x11e   : > { %6988 = vmatprep.subr.bf16.mxu0 %v7592_v59 }
 0x11f   : > { %7009 = vmatpush3.bf16.msra.mxu1 %v7593_v60 }
 0x120   : > { %7010 = vmatprep.subr.bf16.mxu1 %v7595_v62 }
 0x121   : > { %6989 = vmatpush3.bf16.msra.mxu0 %v7592_v59 }
 0x122   : > { %6990 = vmatprep.subr.bf16.mxu0 %v7594_v61 }
 0x123   : > { %7011 = vmatpush3.bf16.msra.mxu1 %v7595_v62 }
 0x124   : > { %7036 = vmatprep.subr.bf16.mxu1 %v7597_v0 }
 0x125   : > { %6991 = vmatpush3.bf16.msra.mxu0 %v7594_v61 }
 0x126   : > { %7016 = vmatprep.subr.bf16.mxu0 %v7596_v63  ;;  %7013 = vmatmul.mubr.bf16.vlgmr.msra.gmra.mrb[24].mxu1 %v8204_v23 }
 0x127   : > { %7037 = vmatpush3.bf16.msra.mxu1 %v7597_v0  ;;  %7052 = vmatprep.mubr.bf16.mxu1 %v8215_v28 }
 0x128   : > { %6993 = vmatmul.mubr.bf16.vlgmr.msra.gmra.mrb[24].mxu0 %v8204_v23  ;;  %7038 = vmatprep.subr.bf16.mxu1 %v7599_v2  ;;  %v7602_v23 = vld [vmem:[%s9389_s10 + $0xd8] sm:$0xff]  }
 0x129   : > { %7017 = vmatpush3.bf16.msra.mxu0 %v7596_v63  ;;  %7032 = vmatprep.mubr.bf16.mxu0 %v8215_v28  ;;  %v7605_v28 = vld [vmem:[%s9390_s11 + $0xe0] sm:$0xff]  }
 0x12a   : > { %7018 = vmatprep.subr.bf16.mxu0 %v7598_v1 }
 0x12b   : > { %7039 = vmatpush3.bf16.msra.mxu1 %v7599_v2 }
 0x12c   : > { %7040 = vmatprep.subr.bf16.mxu1 %v7601_v4 }
 0x12d   : > { %7019 = vmatpush3.bf16.msra.mxu0 %v7598_v1 }
 0x12e   : > { %7020 = vmatprep.subr.bf16.mxu0 %v7600_v3 }
 0x12f   : > { %7041 = vmatpush3.bf16.msra.mxu1 %v7601_v4 }
 0x130   : > { %7042 = vmatprep.subr.bf16.mxu1 %v7603_v5 }
 0x131   : > { %7021 = vmatpush3.bf16.msra.mxu0 %v7600_v3 }
 0x132   : > { %7022 = vmatprep.subr.bf16.mxu0 %v7602_v23 }
 0x133   : > { %7043 = vmatpush3.bf16.msra.mxu1 %v7603_v5 }
 0x134   : > { %7044 = vmatprep.subr.bf16.mxu1 %v7605_v28 }
 0x135   : > { %7023 = vmatpush3.bf16.msra.mxu0 %v7602_v23 }
 0x136   : > { %7024 = vmatprep.subr.bf16.mxu0 %v7604_v6 }
 0x137   : > { %7045 = vmatpush3.bf16.msra.mxu1 %v7605_v28 }
 0x138   : > { %7046 = vmatprep.subr.bf16.mxu1 %v7607_v8 }
 0x139   : > { %7025 = vmatpush3.bf16.msra.mxu0 %v7604_v6  ;;  %v6774_v12 = vpop.f32.mrb[0].mxu1 }
 0x13a   : > { %7026 = vmatprep.subr.bf16.mxu0 %v7606_v7  ;;  %v1077_v15 = vpop.f32.mrb[1].mxu1 }
 0x13b   : > { %v6754_v10 = vpop.f32.mrb[0].mxu0  ;;  %v6775_v18 = vpop.f32.mrb[2].mxu1  ;;  %7047 = vmatpush3.bf16.msra.mxu1 %v7607_v8 }
 0x13c   : > { %v959_v13 = vpop.f32.mrb[1].mxu0  ;;  %v1093_v21 = vpack.c.bf16 %v6775_v18, %v6774_v12  ;;  %v1080_v24 = vpop.f32.mrb[3].mxu1  ;;  %7048 = vmatprep.subr.bf16.mxu1 %v7609_v11 }
 0x13d   : > { %v6755_v16 = vpop.f32.mrb[2].mxu0  ;;  %7027 = vmatpush3.bf16.msra.mxu0 %v7606_v7  ;;  %v1092_v26 = vpack.c.bf16 %v1080_v24, %v1077_v15 }
 0x13e   : > { %v975_v17 = vpack.c.bf16 %v6755_v16, %v6754_v10  ;;  %v962_v19 = vpop.f32.mrb[3].mxu0  ;;  %7028 = vmatprep.subr.bf16.mxu0 %v7608_v9  ;;  %1095 = vst.msk [vmem:[#allocation3 + $0x8] sm:$0xff] %vm976_vm0, %v1093_v21 }
 0x13f   : > { %v974_v22 = vpack.c.bf16 %v962_v19, %v959_v13  ;;  %1094 = vst.msk [vmem:[#allocation3] sm:$0xff] %vm976_vm0, %v1092_v26  ;;  %7049 = vmatpush3.bf16.msra.mxu1 %v7609_v11 }
 0x140   : > { %978 = vst.msk [vmem:[#allocation2 + $0x8] sm:$0xff] %vm976_vm0, %v975_v17  ;;  %7050 = vmatprep.subr.bf16.mxu1 %v7611_v25 }
 0x141   : > { %977 = vst.msk [vmem:[#allocation2] sm:$0xff] %vm976_vm0, %v974_v22  ;;  %7029 = vmatpush3.bf16.msra.mxu0 %v7608_v9 }
 0x142   : > { %7030 = vmatprep.subr.bf16.mxu0 %v7610_v20 }
 0x143   : > { %7051 = vmatpush3.bf16.msra.mxu1 %v7611_v25 }
 0x145   : > { %7031 = vmatpush3.bf16.msra.mxu0 %v7610_v20 }
 0x146   : > { %7053 = vmatmul.mubr.bf16.vlgmr.msra.gmra.mrb[28].mxu1 %v8264_v45 }
 0x148   : > { %7033 = vmatmul.mubr.bf16.vlgmr.msra.gmra.mrb[28].mxu0 %v8264_v45 }
 0x159   : > { %v6814_v29 = vpop.f32.mrb[4].mxu1 }
 0x15a   : > { %v1311_v31 = vpop.f32.mrb[5].mxu1 }
 0x15b   : > { %v6794_v27 = vpop.f32.mrb[4].mxu0  ;;  %v6815_v34 = vpop.f32.mrb[6].mxu1 }
 0x15c   : > { %v1194_v30 = vpop.f32.mrb[5].mxu0  ;;  %v1327_v36 = vpack.c.bf16 %v6815_v34, %v6814_v29  ;;  %v1314_v38 = vpop.f32.mrb[7].mxu1 }
 0x15d   : > { %v6795_v32 = vpop.f32.mrb[6].mxu0  ;;  %v1326_v39 = vpack.c.bf16 %v1314_v38, %v1311_v31 }
 0x15e   : > { %v1210_v33 = vpack.c.bf16 %v6795_v32, %v6794_v27  ;;  %v1197_v35 = vpop.f32.mrb[7].mxu0  ;;  %1329 = vst.msk [vmem:[#allocation5 + $0x8] sm:$0xff] %vm976_vm0, %v1327_v36 }
 0x15f   : > { %v1209_v37 = vpack.c.bf16 %v1197_v35, %v1194_v30  ;;  %1328 = vst.msk [vmem:[#allocation5] sm:$0xff] %vm976_vm0, %v1326_v39 }
 0x160   : > { %1212 = vst.msk [vmem:[#allocation4 + $0x8] sm:$0xff] %vm976_vm0, %v1210_v33 }
 0x161   : > { %1211 = vst.msk [vmem:[#allocation4] sm:$0xff] %vm976_vm0, %v1209_v37 }
 0x179   : > { %v6854_v40 = vpop.f32.mrb[8].mxu1 }
 0x17a   : > { %v1548_v42 = vpop.f32.mrb[9].mxu1 }
 0x17b   : > { %v6834_v45 = vpop.f32.mrb[8].mxu0  ;;  %v6855_v46 = vpop.f32.mrb[10].mxu1 }
 0x17c   : > { %v1429_v41 = vpop.f32.mrb[9].mxu0  ;;  %v1564_v48 = vpack.c.bf16 %v6855_v46, %v6854_v40  ;;  %v1551_v50 = vpop.f32.mrb[11].mxu1 }
 0x17d   : > { %v6835_v43 = vpop.f32.mrb[10].mxu0  ;;  %v1563_v51 = vpack.c.bf16 %v1551_v50, %v1548_v42 }
 0x17e   : > { %v1445_v44 = vpack.c.bf16 %v6835_v43, %v6834_v45  ;;  %v1432_v47 = vpop.f32.mrb[11].mxu0  ;;  %1567 = vst.msk [vmem:[#allocation3 + $0x18] sm:$0xff] %vm976_vm0, %v1564_v48 }
 0x17f   : > { %v1444_v49 = vpack.c.bf16 %v1432_v47, %v1429_v41  ;;  %1566 = vst.msk [vmem:[#allocation3 + $0x10] sm:$0xff] %vm976_vm0, %v1563_v51 }
 0x180   : > { %1448 = vst.msk [vmem:[#allocation2 + $0x18] sm:$0xff] %vm976_vm0, %v1445_v44 }
 0x181   : > { %1447 = vst.msk [vmem:[#allocation2 + $0x10] sm:$0xff] %vm976_vm0, %v1444_v49 }
 0x199   : > { %v6894_v53 = vpop.f32.mrb[12].mxu1 }
 0x19a   : > { %v1786_v55 = vpop.f32.mrb[13].mxu1 }
 0x19b   : > { %v6874_v52 = vpop.f32.mrb[12].mxu0  ;;  %v6895_v57 = vpop.f32.mrb[14].mxu1 }
 0x19c   : > { %v1667_v54 = vpop.f32.mrb[13].mxu0  ;;  %v1802_v59 = vpack.c.bf16 %v6895_v57, %v6894_v53  ;;  %v1789_v61 = vpop.f32.mrb[15].mxu1 }
 0x19d   : > { %v6875_v56 = vpop.f32.mrb[14].mxu0  ;;  %v1801_v62 = vpack.c.bf16 %v1789_v61, %v1786_v55 }
 0x19e   : > { %v1683_v14 = vpack.c.bf16 %v6875_v56, %v6874_v52  ;;  %v1670_v58 = vpop.f32.mrb[15].mxu0  ;;  %1805 = vst.msk [vmem:[#allocation5 + $0x18] sm:$0xff] %vm976_vm0, %v1802_v59 }
 0x19f   : > { %v1682_v60 = vpack.c.bf16 %v1670_v58, %v1667_v54  ;;  %1804 = vst.msk [vmem:[#allocation5 + $0x10] sm:$0xff] %vm976_vm0, %v1801_v62 }
 0x1a0   : > { %1686 = vst.msk [vmem:[#allocation4 + $0x18] sm:$0xff] %vm976_vm0, %v1683_v14 }
 0x1a1   : > { %1685 = vst.msk [vmem:[#allocation4 + $0x10] sm:$0xff] %vm976_vm0, %v1682_v60 }
 0x1b9   : > { %v6934_v0 = vpop.f32.mrb[16].mxu1 }
 0x1ba   : > { %v2024_v2 = vpop.f32.mrb[17].mxu1 }
 0x1bb   : > { %v6914_v63 = vpop.f32.mrb[16].mxu0  ;;  %v6935_v23 = vpop.f32.mrb[18].mxu1 }
 0x1bc   : > { %v1905_v1 = vpop.f32.mrb[17].mxu0  ;;  %v2040_v6 = vpack.c.bf16 %v6935_v23, %v6934_v0  ;;  %v2027_v7 = vpop.f32.mrb[19].mxu1 }
 0x1bd   : > { %v6915_v3 = vpop.f32.mrb[18].mxu0  ;;  %v2039_v8 = vpack.c.bf16 %v2027_v7, %v2024_v2 }
 0x1be   : > { %v1921_v4 = vpack.c.bf16 %v6915_v3, %v6914_v63  ;;  %v1908_v5 = vpop.f32.mrb[19].mxu0  ;;  %2043 = vst.msk [vmem:[#allocation3 + $0x28] sm:$0xff] %vm976_vm0, %v2040_v6 }
 0x1bf   : > { %v1920_v28 = vpack.c.bf16 %v1908_v5, %v1905_v1  ;;  %2042 = vst.msk [vmem:[#allocation3 + $0x20] sm:$0xff] %vm976_vm0, %v2039_v8 }
 0x1c0   : > { %1924 = vst.msk [vmem:[#allocation2 + $0x28] sm:$0xff] %vm976_vm0, %v1921_v4 }
 0x1c1   : > { %1923 = vst.msk [vmem:[#allocation2 + $0x20] sm:$0xff] %vm976_vm0, %v1920_v28 }
 0x1d9   : > { %v6974_v10 = vpop.f32.mrb[20].mxu1 }
 0x1da   : > { %v2262_v12 = vpop.f32.mrb[21].mxu1 }
 0x1db   : > { %v6954_v9 = vpop.f32.mrb[20].mxu0  ;;  %v6975_v16 = vpop.f32.mrb[22].mxu1 }
 0x1dc   : > { %v2143_v11 = vpop.f32.mrb[21].mxu0  ;;  %v2278_v18 = vpack.c.bf16 %v6975_v16, %v6974_v10  ;;  %v2265_v20 = vpop.f32.mrb[23].mxu1 }
 0x1dd   : > { %v6955_v13 = vpop.f32.mrb[22].mxu0  ;;  %v2277_v21 = vpack.c.bf16 %v2265_v20, %v2262_v12 }
 0x1de   : > { %v2159_v15 = vpack.c.bf16 %v6955_v13, %v6954_v9  ;;  %v2146_v17 = vpop.f32.mrb[23].mxu0  ;;  %2281 = vst.msk [vmem:[#allocation5 + $0x28] sm:$0xff] %vm976_vm0, %v2278_v18 }
 0x1df   : > { %v2158_v19 = vpack.c.bf16 %v2146_v17, %v2143_v11  ;;  %2280 = vst.msk [vmem:[#allocation5 + $0x20] sm:$0xff] %vm976_vm0, %v2277_v21 }
 0x1e0   : > { %2162 = vst.msk [vmem:[#allocation4 + $0x28] sm:$0xff] %vm976_vm0, %v2159_v15 }
 0x1e1   : > { %2161 = vst.msk [vmem:[#allocation4 + $0x20] sm:$0xff] %vm976_vm0, %v2158_v19 }
 0x1f9   : > { %v7014_v24 = vpop.f32.mrb[24].mxu1 }
 0x1fa   : > { %v2500_v26 = vpop.f32.mrb[25].mxu1 }
 0x1fb   : > { %v6994_v22 = vpop.f32.mrb[24].mxu0  ;;  %v7015_v30 = vpop.f32.mrb[26].mxu1 }
 0x1fc   : > { %v2381_v25 = vpop.f32.mrb[25].mxu0  ;;  %v2516_v32 = vpack.c.bf16 %v7015_v30, %v7014_v24  ;;  %v2503_v34 = vpop.f32.mrb[27].mxu1 }
 0x1fd   : > { %v6995_v27 = vpop.f32.mrb[26].mxu0  ;;  %v2515_v35 = vpack.c.bf16 %v2503_v34, %v2500_v26 }
 0x1fe   : > { %v2397_v29 = vpack.c.bf16 %v6995_v27, %v6994_v22  ;;  %v2384_v31 = vpop.f32.mrb[27].mxu0  ;;  %2519 = vst.msk [vmem:[#allocation3 + $0x38] sm:$0xff] %vm976_vm0, %v2516_v32 }
 0x1ff   : > { %v2396_v33 = vpack.c.bf16 %v2384_v31, %v2381_v25  ;;  %2518 = vst.msk [vmem:[#allocation3 + $0x30] sm:$0xff] %vm976_vm0, %v2515_v35 }
 0x200   : > { %2400 = vst.msk [vmem:[#allocation2 + $0x38] sm:$0xff] %vm976_vm0, %v2397_v29 }
 0x201   : > { %2399 = vst.msk [vmem:[#allocation2 + $0x30] sm:$0xff] %vm976_vm0, %v2396_v33 }
 0x219   : > { %v7054_v37 = vpop.f32.mrb[28].mxu1 }
 0x21a   : > { %v2738_v39 = vpop.f32.mrb[29].mxu1 }
 0x21b   : > { %v7034_v36 = vpop.f32.mrb[28].mxu0  ;;  %v7055_v41 = vpop.f32.mrb[30].mxu1 }
 0x21c   : > { %v2619_v38 = vpop.f32.mrb[29].mxu0  ;;  %v2754_v43 = vpack.c.bf16 %v7055_v41, %v7054_v37  ;;  %v2741_v46 = vpop.f32.mrb[31].mxu1 }
 0x21d   : > { %v7035_v45 = vpop.f32.mrb[30].mxu0  ;;  %v2753_v47 = vpack.c.bf16 %v2741_v46, %v2738_v39 }
 0x21e   : > { %v2635_v40 = vpack.c.bf16 %v7035_v45, %v7034_v36  ;;  %v2622_v42 = vpop.f32.mrb[31].mxu0  ;;  %2757 = vst.msk [vmem:[#allocation5 + $0x38] sm:$0xff] %vm976_vm0, %v2754_v43 }
 0x21f   : > { %v2634_v44 = vpack.c.bf16 %v2622_v42, %v2619_v38  ;;  %2756 = vst.msk [vmem:[#allocation5 + $0x30] sm:$0xff] %vm976_vm0, %v2753_v47 }
 0x220   : > { %2638 = vst.msk [vmem:[#allocation4 + $0x38] sm:$0xff] %vm976_vm0, %v2635_v40 }
 0x221   : > { %2637 = vst.msk [vmem:[#allocation4 + $0x30] sm:$0xff] %vm976_vm0, %v2634_v44 }
 0x222 PF: > { %s9465_s21 = sld [smem:[#allocation26_spill]]  ;;  %v7906_v49 = vmov 0.0   ;;  %vm7907_vm1 = vmmov 0   ;;  %s8664_s5 = scalar_lea.vmem %s8121_s27, %s5807_s26  ;;  %v3213_v18 = vld [vmem:[#allocation2] sm:$0xff]  ;;  %v3215_v19 = vld [vmem:[#allocation2 + $0x10] sm:$0xff]  ;;  %vm3229_vm2 = vcmask 261120  }
 0x223   : > { %7056 = vmatprep.subr.bf16.mxu0 %v7906_v49  ;;  %7076 = vmatprep.subr.bf16.mxu1 %v7906_v49  ;;  %v2759_v63 = vld [vmem:[%s8664_s5] sm:$0xff]  ;;  %v2760_v0 = vld [vmem:[%s8664_s5 + $0x8] sm:$0xff]  ;;  %v3234_v20 = vsel %vm3229_vm2, %v3213_v18, 0  ;;  %v3284_v21 = vsel %vm3229_vm2, %v3215_v19, 0  ;;  %v3216_v24 = vld [vmem:[#allocation2 + $0x18] sm:$0xff]  ;;  %s9466_s27 = sld [smem:[#allocation29_spill]] }
 0x224   : > { %7072 = vmatprep.mubr.msk.bf16.mxu0 %vm7907_vm1, %v7906_v49  ;;  %7092 = vmatprep.mubr.msk.bf16.mxu1 %vm7907_vm1, %v7906_v49  ;;  %v2777_v2 = vpack.c.bf16 %v2760_v0, %v2759_v63  ;;  %v3214_v22 = vld [vmem:[#allocation2 + $0x8] sm:$0xff]  ;;  %v3287_v26 = vsel %vm3229_vm2, %v3216_v24, 0  ;;  %v3217_v35 = vld [vmem:[#allocation2 + $0x20] sm:$0xff]  ;;  %v3219_v39 = vld [vmem:[#allocation2 + $0x30] sm:$0xff]  ;;  %s9469_s16 = sld [smem:[#allocation35_spill]]  ;;  %s9470_s0 = sld [smem:[#allocation37_spill]] }
 0x225   : > { %v3237_v25 = vsel %vm3229_vm2, %v3214_v22, 0  ;;  %v3334_v42 = vsel %vm3229_vm2, %v3217_v35, 0  ;;  %v3384_v44 = vsel %vm3229_vm2, %v3219_v39, 0  ;;  %v3218_v46 = vld [vmem:[#allocation2 + $0x28] sm:$0xff]  ;;  %v3220_v47 = vld [vmem:[#allocation2 + $0x38] sm:$0xff]  ;;  %v6403_v0 = vld [vmem:[%s8132_s6] sm:$0xff]  }
 0x226   : > { %s9472_s28 = sld [smem:[#allocation31_spill]]  ;;  %s9473_s2 = sld [smem:[#allocation32_spill]] }
 0x227   : > { %s9475_s23 = sld [smem:[#allocation38_spill]]  ;;  %s9477_s18 = sld [smem:[#allocation21_spill]] }
 0x228   : > { %v7612_v48 = vld [vmem:[%s9465_s21] sm:$0xff]   ;;  %v7614_v51 = vld [vmem:[%s9465_s21 + $0x8] sm:$0xff]   ;;  %v7616_v53 = vld [vmem:[%s9465_s21 + $0x10] sm:$0xff]   ;;  %s9479_s7 = sld [smem:[#allocation10_spill]]  ;;  %s7909_s24 = smov [#allocation6]  }
 0x229   : > { %v7613_v50 = vld [vmem:[%s9465_s21 + $0x40] sm:$0xff]   ;;  %7057 = vmatpush3.bf16.msra.mxu0 %v7612_v48  ;;  %v7615_v52 = vld [vmem:[%s9465_s21 + $0x48] sm:$0xff]   ;;  %v7617_v54 = vld [vmem:[%s9465_s21 + $0x50] sm:$0xff]   ;;  %v3337_v48 = vsel %vm3229_vm2, %v3218_v46, 0  ;;  %s9467_s17 = smov %s9466_s27 }
 0x22a   : > { %7077 = vmatpush3.bf16.msra.mxu1 %v7613_v50  ;;  %7058 = vmatprep.subr.bf16.mxu0 %v7906_v49  ;;  %v7618_v55 = vld [vmem:[%s9465_s21 + $0x18] sm:$0xff]   ;;  %v7620_v14 = vld [vmem:[%s9465_s21 + $0x20] sm:$0xff]   ;;  %v7622_v58 = vld [vmem:[%s9465_s21 + $0x28] sm:$0xff]   ;;  %v3387_v50 = vsel %vm3229_vm2, %v3220_v47, 0  ;;  %s9471_s25 = smov %s9470_s0 }
 0x22b   : > { %7078 = vmatprep.subr.bf16.mxu1 %v7906_v49  ;;  %v7619_v56 = vld [vmem:[%s9465_s21 + $0x58] sm:$0xff]   ;;  %v7621_v57 = vld [vmem:[%s9465_s21 + $0x60] sm:$0xff]   ;;  %v7623_v59 = vld [vmem:[%s9465_s21 + $0x68] sm:$0xff]  }
 0x22c   : > { %v7624_v60 = vld [vmem:[%s9465_s21 + $0x30] sm:$0xff]   ;;  %v7626_v62 = vld [vmem:[%s9465_s21 + $0x38] sm:$0xff]   ;;  %v7628_v3 = vld [vmem:[%s9465_s21 + $0x80] sm:$0xff]  }
 0x22d   : > { %7059 = vmatpush3.bf16.msra.mxu0 %v7614_v51  ;;  %v7625_v61 = vld [vmem:[%s9465_s21 + $0x70] sm:$0xff]   ;;  %v7627_v1 = vld [vmem:[%s9465_s21 + $0x78] sm:$0xff]   ;;  %v7629_v4 = vld [vmem:[%s9465_s21 + $0xc0] sm:$0xff]  }
 0x22e   : > { %7079 = vmatpush3.bf16.msra.mxu1 %v7615_v52  ;;  %7060 = vmatprep.subr.bf16.mxu0 %v7906_v49  ;;  %v7630_v23 = vld [vmem:[%s9465_s21 + $0x88] sm:$0xff]   ;;  %v7632_v6 = vld [vmem:[%s9465_s21 + $0x90] sm:$0xff]   ;;  %v7634_v7 = vld [vmem:[%s9465_s21 + $0x98] sm:$0xff]  }
 0x22f   : > { %7080 = vmatprep.subr.bf16.mxu1 %v7906_v49  ;;  %v7631_v5 = vld [vmem:[%s9465_s21 + $0xc8] sm:$0xff]   ;;  %v7633_v28 = vld [vmem:[%s9465_s21 + $0xd0] sm:$0xff]   ;;  %v7635_v8 = vld [vmem:[%s9465_s21 + $0xd8] sm:$0xff]  }
 0x230   : > { %v7636_v9 = vld [vmem:[%s9465_s21 + $0xa0] sm:$0xff]   ;;  %v7638_v11 = vld [vmem:[%s9465_s21 + $0xa8] sm:$0xff]   ;;  %v7640_v13 = vld [vmem:[%s9465_s21 + $0xb0] sm:$0xff]  }
 0x231   : > { %7061 = vmatpush3.bf16.msra.mxu0 %v7616_v53  ;;  %v7637_v10 = vld [vmem:[%s9465_s21 + $0xe0] sm:$0xff]   ;;  %v7639_v12 = vld [vmem:[%s9465_s21 + $0xe8] sm:$0xff]   ;;  %v7641_v15 = vld [vmem:[%s9465_s21 + $0xf0] sm:$0xff]  }
 0x232   : > { %7081 = vmatpush3.bf16.msra.mxu1 %v7617_v54  ;;  %7062 = vmatprep.subr.bf16.mxu0 %v7906_v49  ;;  %v7642_v16 = vld [vmem:[%s9465_s21 + $0xb8] sm:$0xff]  }
 0x233   : > { %7082 = vmatprep.subr.bf16.mxu1 %v7906_v49  ;;  %v7643_v17 = vld [vmem:[%s9465_s21 + $0xf8] sm:$0xff]  }
 0x235   : > { %7063 = vmatpush3.bf16.msra.mxu0 %v7618_v55 }
 0x236   : > { %7083 = vmatpush3.bf16.msra.mxu1 %v7619_v56  ;;  %7064 = vmatprep.subr.bf16.mxu0 %v7906_v49 }
 0x237   : > { %7084 = vmatprep.subr.bf16.mxu1 %v7906_v49 }
 0x239   : > { %7065 = vmatpush3.bf16.msra.mxu0 %v7620_v14 }
 0x23a   : > { %7085 = vmatpush3.bf16.msra.mxu1 %v7621_v57  ;;  %7066 = vmatprep.subr.bf16.mxu0 %v7906_v49 }
 0x23b   : > { %7086 = vmatprep.subr.bf16.mxu1 %v7906_v49 }
 0x23d   : > { %7067 = vmatpush3.bf16.msra.mxu0 %v7622_v58 }
 0x23e   : > { %7087 = vmatpush3.bf16.msra.mxu1 %v7623_v59  ;;  %7068 = vmatprep.subr.bf16.mxu0 %v7906_v49 }
 0x23f   : > { %7088 = vmatprep.subr.bf16.mxu1 %v7906_v49 }
 0x241   : > { %7069 = vmatpush3.bf16.msra.mxu0 %v7624_v60 }
 0x242   : > { %7089 = vmatpush3.bf16.msra.mxu1 %v7625_v61  ;;  %7070 = vmatprep.subr.bf16.mxu0 %v7906_v49 }
 0x243   : > { %7090 = vmatprep.subr.bf16.mxu1 %v7906_v49 }
 0x245   : > { %7071 = vmatpush3.bf16.msra.mxu0 %v7626_v62 }
 0x246   : > { %7091 = vmatpush3.bf16.msra.mxu1 %v7627_v1  ;;  %7096 = vmatprep.subr.bf16.mxu0 %v7906_v49  ;;  %v6404_v1 = vunpack.c.l.bf16 %v6403_v0 }
 0x247   : > { %7116 = vmatprep.subr.bf16.mxu1 %v7906_v49 }
 0x248   : > { %7073 = vmatmul.mubr.bf16.vlgmr.msra.gmra.mrb[0].mxu0 %v2777_v2 }
 0x249   : > { %7093 = vmatmul.mubr.bf16.vlgmr.msra.gmra.mrb[0].mxu1 %v2777_v2  ;;  %7097 = vmatpush3.bf16.msra.mxu0 %v7628_v3  ;;  %v2765_v3 = vsub.f32 1.0, %v6404_v1 }
 0x24a   : > { %7117 = vmatpush3.bf16.msra.mxu1 %v7629_v4  ;;  %7098 = vmatprep.subr.bf16.mxu0 %v7906_v49 }
 0x24b   : > { %7118 = vmatprep.subr.bf16.mxu1 %v7906_v49  ;;  %7112 = vmatprep.mubr.msk.bf16.mxu0 %vm7907_vm1, %v7906_v49 }
 0x24c   : > { %7132 = vmatprep.mubr.msk.bf16.mxu1 %vm7907_vm1, %v7906_v49 }
 0x24d   : > { %7099 = vmatpush3.bf16.msra.mxu0 %v7630_v23  ;;  %v2767_v23 = vmul.f32 -1e+09, %v2765_v3 }
 0x24e   : > { %7119 = vmatpush3.bf16.msra.mxu1 %v7631_v5  ;;  %7100 = vmatprep.subr.bf16.mxu0 %v7906_v49 }
 0x24f   : > { %7120 = vmatprep.subr.bf16.mxu1 %v7906_v49 }
 0x251   : > { %7101 = vmatpush3.bf16.msra.mxu0 %v7632_v6 }
 0x252   : > { %7121 = vmatpush3.bf16.msra.mxu1 %v7633_v28  ;;  %7102 = vmatprep.subr.bf16.mxu0 %v7906_v49 }
 0x253   : > { %7122 = vmatprep.subr.bf16.mxu1 %v7906_v49 }
 0x255   : > { %7103 = vmatpush3.bf16.msra.mxu0 %v7634_v7 }
 0x256   : > { %7123 = vmatpush3.bf16.msra.mxu1 %v7635_v8  ;;  %7104 = vmatprep.subr.bf16.mxu0 %v7906_v49 }
 0x257   : > { %7124 = vmatprep.subr.bf16.mxu1 %v7906_v49 }
 0x259   : > { %7105 = vmatpush3.bf16.msra.mxu0 %v7636_v9 }
 0x25a   : > { %7125 = vmatpush3.bf16.msra.mxu1 %v7637_v10  ;;  %7106 = vmatprep.subr.bf16.mxu0 %v7906_v49 }
 0x25b   : > { %7126 = vmatprep.subr.bf16.mxu1 %v7906_v49 }
 0x25d   : > { %7107 = vmatpush3.bf16.msra.mxu0 %v7638_v11 }
 0x25e   : > { %7127 = vmatpush3.bf16.msra.mxu1 %v7639_v12  ;;  %7108 = vmatprep.subr.bf16.mxu0 %v7906_v49 }
 0x25f   : > { %7128 = vmatprep.subr.bf16.mxu1 %v7906_v49 }
 0x261   : > { %7109 = vmatpush3.bf16.msra.mxu0 %v7640_v13 }
 0x262   : > { %7129 = vmatpush3.bf16.msra.mxu1 %v7641_v15  ;;  %7110 = vmatprep.subr.bf16.mxu0 %v7906_v49 }
 0x263   : > { %7130 = vmatprep.subr.bf16.mxu1 %v7906_v49 }
 0x265   : > { %7111 = vmatpush3.bf16.msra.mxu0 %v7642_v16 }
 0x266   : > { %7131 = vmatpush3.bf16.msra.mxu1 %v7643_v17  ;;  %7136 = vmatprep.subr.bf16.mxu0 %v7906_v49 }
 0x267   : > { %7144 = vmatprep.subr.bf16.mxu1 %v7906_v49 }
 0x268   : > { %7113 = vmatmul.mubr.bf16.vlgmr.msra.gmra.mrb[4].mxu0 %v2777_v2 }
 0x269   : > { %7133 = vmatmul.mubr.bf16.vlgmr.msra.gmra.mrb[4].mxu1 %v2777_v2  ;;  %7140 = vmatprep.mubr.msk.bf16.mxu0 %vm7907_vm1, %v7906_v49  ;;  %v6405_v2 = vunpack.c.h.bf16 %v6403_v0 }
 0x26a   : > { %7148 = vmatprep.mubr.msk.bf16.mxu1 %vm7907_vm1, %v7906_v49 }
 0x26b   : > { %v2766_v4 = vsub.f32 1.0, %v6405_v2 }
 0x26d   : > { %v2768_v5 = vmul.f32 -1e+09, %v2766_v4 }
 0x26e   : > { %7137 = vmatpush3.bf16.xpose.msra.mxu0 %v3234_v20 }
 0x26f   : > { %7145 = vmatpush3.bf16.xpose.msra.mxu1 %v3284_v21  ;;  %7138 = vmatprep.subr.bf16.mxu0 %v7906_v49 }
 0x270   : > { %7146 = vmatprep.subr.bf16.mxu1 %v7906_v49 }
 0x276   : > { %7139 = vmatpush3.bf16.xpose.msra.mxu0 %v3237_v25 }
 0x277   : > { %7147 = vmatpush3.bf16.xpose.msra.mxu1 %v3287_v26  ;;  %7152 = vmatprep.subr.bf16.mxu0 %v7906_v49 }
 0x278   : > { %7160 = vmatprep.subr.bf16.mxu1 %v7906_v49 }
 0x31b   : > { %v2876_v27 = vpop.f32.mrb[0].mxu0 }
 0x31c   : > { %v2883_v29 = vmul.f32 0.17677669, %v2876_v27  ;;  %v2984_v30 = vpop.f32.mrb[0].mxu1  ;;  %v7074_v31 = vpop.f32.mrb[1].mxu0 }
 0x31d   : > { %v2991_v32 = vmul.f32 0.17677669, %v2984_v30  ;;  %v7094_v33 = vpop.f32.mrb[1].mxu1  ;;  %v2879_v34 = vpop.f32.mrb[2].mxu0 }
 0x31e   : > { %v2884_v36 = vmul.f32 0.17677669, %v2879_v34  ;;  %v2987_v37 = vpop.f32.mrb[2].mxu1  ;;  %v7075_v38 = vpop.f32.mrb[3].mxu0 }
 0x31f   : > { %v2992_v45 = vmul.f32 0.17677669, %v2987_v37  ;;  %v7095_v40 = vpop.f32.mrb[3].mxu1 }
 0x320   : > { %v3209_v41 = vpack.c.bf16 %v2884_v36, %v2883_v29 }
 0x321   : > { %v3210_v43 = vpack.c.bf16 %v2992_v45, %v2991_v32 }
 0x322   : > { %7141 = vmatmul.mubr.msk.bf16.vlgmr.msra.gmra.mrb[8].mxu0 %vm3229_vm2, %v3209_v41 }
 0x323   : > { %7149 = vmatmul.mubr.msk.bf16.vlgmr.msra.gmra.mrb[8].mxu1 %vm3229_vm2, %v3210_v43  ;;  %7153 = vmatpush3.bf16.xpose.msra.mxu0 %v3334_v42 }
 0x324   : > { %7161 = vmatpush3.bf16.xpose.msra.mxu1 %v3384_v44  ;;  %7154 = vmatprep.subr.bf16.mxu0 %v7906_v49 }
 0x325   : > { %7162 = vmatprep.subr.bf16.mxu1 %v7906_v49  ;;  %7156 = vmatprep.mubr.msk.bf16.mxu0 %vm7907_vm1, %v7906_v49 }
 0x326   : > { %7164 = vmatprep.mubr.msk.bf16.mxu1 %vm7907_vm1, %v7906_v49 }
 0x32b   : > { %7155 = vmatpush3.bf16.xpose.msra.mxu0 %v3337_v48 }
 0x32c   : > { %7163 = vmatpush3.bf16.xpose.msra.mxu1 %v3387_v50  ;;  %7168 = vmatprep.subr.bf16.mxu0 %v7906_v49 }
 0x32d   : > { %7176 = vmatprep.subr.bf16.mxu1 %v7906_v49 }
 0x33b   : > { %v3092_v51 = vpop.f32.mrb[4].mxu0 }
 0x33c   : > { %v3200_v52 = vpop.f32.mrb[4].mxu1  ;;  %v7114_v53 = vpop.f32.mrb[5].mxu0  ;;  %v3099_v14 = vmul.f32 0.17677669, %v3092_v51 }
 0x33d   : > { %v3207_v54 = vmul.f32 0.17677669, %v3200_v52  ;;  %v7134_v55 = vpop.f32.mrb[5].mxu1  ;;  %v3095_v56 = vpop.f32.mrb[6].mxu0 }
 0x33e   : > { %v3100_v57 = vmul.f32 0.17677669, %v3095_v56  ;;  %v3203_v58 = vpop.f32.mrb[6].mxu1  ;;  %v7115_v59 = vpop.f32.mrb[7].mxu0 }
 0x33f   : > { %v3208_v60 = vmul.f32 0.17677669, %v3203_v58  ;;  %v7135_v61 = vpop.f32.mrb[7].mxu1 }
 0x340   : > { %v3211_v62 = vpack.c.bf16 %v3100_v57, %v3099_v14 }
 0x341   : > { %v3212_v63 = vpack.c.bf16 %v3208_v60, %v3207_v54 }
 0x342   : > { %7157 = vmatmul.mubr.msk.bf16.vlgmr.msra.gmra.mrb[12].mxu0 %vm3229_vm2, %v3211_v62 }
 0x343   : > { %7165 = vmatmul.mubr.msk.bf16.vlgmr.msra.gmra.mrb[12].mxu1 %vm3229_vm2, %v3212_v63  ;;  %7172 = vmatprep.mubr.msk.bf16.mxu0 %vm7907_vm1, %v7906_v49 }
 0x344   : > { %7180 = vmatprep.mubr.msk.bf16.mxu1 %vm7907_vm1, %v7906_v49 }
 0x3f5   : > { %v3273_v6 = vpop.f32.mrb[8].mxu0 }
 0x3f6   : > { %v3274_v28 = vadd.f32 %v3273_v6, %v2767_v23  ;;  %v3323_v7 = vpop.f32.mrb[8].mxu1  ;;  %v7142_v8 = vpop.f32.mrb[9].mxu0 }
 0x3f7   : > { %v3324_v9 = vadd.f32 %v3323_v7, %v2767_v23  ;;  %v7150_v10 = vpop.f32.mrb[9].mxu1  ;;  %v3276_v11 = vpop.f32.mrb[10].mxu0 }
 0x3f8   : > { %v3277_v12 = vadd.f32 %v3276_v11, %v2768_v5  ;;  %v3326_v13 = vpop.f32.mrb[10].mxu1  ;;  %v7143_v15 = vpop.f32.mrb[11].mxu0  ;;  %v3430_v16 = vsel %vm3229_vm2, %v3274_v28, -inf }
 0x3f9   : > { %v3327_v17 = vadd.f32 %v3326_v13, %v2768_v5  ;;  %v7151_v18 = vpop.f32.mrb[11].mxu1  ;;  %v3436_v19 = vsel %vm3229_vm2, %v3324_v9, -inf  ;;  %3431 = vmax.xlane.f32.xlu0 %v3430_v16  ;;  %v3222_v15 = vld [vmem:[#allocation3 + $0x8] sm:$0xff]  ;;  %v3223_v16 = vld [vmem:[#allocation3 + $0x10] sm:$0xff] }
 0x3fa   : > { %3437 = vmax.xlane.f32.xlu1 %v3436_v19  ;;  %v3433_v21 = vsel %vm3229_vm2, %v3277_v12, -inf  ;;  %7177 = vmatpush3.bf16.msra.mxu1 %v3223_v16  ;;  %v3224_v18 = vld [vmem:[#allocation3 + $0x18] sm:$0xff] }
 0x3fb   : > { %v3439_v20 = vsel %vm3229_vm2, %v3327_v17, -inf  ;;  %7178 = vmatprep.subr.bf16.mxu1 %v7906_v49 }
 0x3fd   : > { %3434 = vmax.xlane.f32.xlu0 %v3433_v21 }
 0x3fe   : > { %3440 = vmax.xlane.f32.xlu1 %v3439_v20  ;;  %7179 = vmatpush3.bf16.msra.mxu1 %v3224_v18 }
 0x3ff   : > { %7192 = vmatprep.subr.bf16.mxu1 %v7906_v49 }
 0x415   : > { %v3373_v22 = vpop.f32.mrb[12].mxu0 }
 0x416   : > { %v3374_v24 = vadd.f32 %v3373_v22, %v2767_v23  ;;  %v3423_v25 = vpop.f32.mrb[12].mxu1  ;;  %v7158_v26 = vpop.f32.mrb[13].mxu0 }
 0x417   : > { %v7166_v27 = vpop.f32.mrb[13].mxu1  ;;  %v3376_v29 = vpop.f32.mrb[14].mxu0  ;;  %v3424_v30 = vadd.f32 %v3423_v25, %v2767_v23 }
 0x418   : > { %v3377_v31 = vadd.f32 %v3376_v29, %v2768_v5  ;;  %v3426_v32 = vpop.f32.mrb[14].mxu1  ;;  %v7159_v33 = vpop.f32.mrb[15].mxu0  ;;  %v3442_v34 = vsel %vm3229_vm2, %v3374_v24, -inf }
 0x419   : > { %v7167_v35 = vpop.f32.mrb[15].mxu1  ;;  %3443 = vmax.xlane.f32.xlu0 %v3442_v34  ;;  %v3427_v36 = vadd.f32 %v3426_v32, %v2768_v5  ;;  %v3448_v38 = vsel %vm3229_vm2, %v3424_v30, -inf }
 0x41a   : > { %v3445_v37 = vsel %vm3229_vm2, %v3377_v31, -inf }
 0x41b   : > { %3446 = vmax.xlane.f32.xlu1 %v3445_v37  ;;  %v3451_v39 = vsel %vm3229_vm2, %v3427_v36, -inf }
 0x41d   : > { %3449 = vmax.xlane.f32.xlu0 %v3448_v38 }
 0x41f   : > { %3452 = vmax.xlane.f32.xlu1 %v3451_v39 }
 0x486   : > { %v3432_v45 = vpop.xlane.xlu0 %3431 }
 0x487   : > { %v3438_v40 = vpop.xlane.xlu1 %3437  ;;  %v3454_v41 = vsub.f32 %v3274_v28, %v3432_v45 }
 0x488   : > { %v3456_v42 = vsub.f32 %v3324_v9, %v3438_v40  ;;  %v3221_v9 = vld [vmem:[#allocation3] sm:$0xff] }
 0x489   : > { %v3462_v43 = vmul.f32 1.442695, %v3454_v41  ;;  %7169 = vmatpush3.bf16.msra.mxu0 %v3221_v9 }
 0x48a   : > { %v3466_v44 = vmul.f32 1.442695, %v3456_v42  ;;  %v3435_v46 = vpop.xlane.xlu0 %3434  ;;  %7170 = vmatprep.subr.bf16.mxu0 %v7906_v49 }
 0x48b   : > { %7732 = vpow2.f32 %v3462_v43  ;;  %v3441_v47 = vpop.xlane.xlu1 %3440  ;;  %v3455_v48 = vsub.f32 %v3277_v12, %v3435_v46  ;;  %v3225_v43 = vld [vmem:[#allocation3 + $0x20] sm:$0xff] }
 0x48c   : > { %v3457_v50 = vsub.f32 %v3327_v17, %v3441_v47  ;;  %7734 = vpow2.f32 %v3466_v44 }
 0x48d   : > { %v3464_v51 = vmul.f32 1.442695, %v3455_v48  ;;  %7171 = vmatpush3.bf16.msra.mxu0 %v3222_v15  ;;  %v3227_v48 = vld [vmem:[#allocation3 + $0x30] sm:$0xff]  ;;  %v7644_v15 = vld [vmem:[%s9466_s27] sm:$0xff]   ;;  %s9468_s27 = sld [smem:[#allocation30_spill]] }
 0x48e   : > { %v3468_v52 = vmul.f32 1.442695, %v3457_v50  ;;  %7184 = vmatprep.subr.bf16.mxu0 %v7906_v49  ;;  %v3226_v50 = vld [vmem:[#allocation3 + $0x28] sm:$0xff] }
 0x48f   : > { %7736 = vpow2.f32 %v3464_v51 }
 0x490   : > { %7738 = vpow2.f32 %v3468_v52  ;;  %v3228_v52 = vld [vmem:[#allocation3 + $0x38] sm:$0xff] }
 0x495   : > { %v8792_v53 = vpop.eup %7732 }
 0x496   : > { %v3478_v54 = vsel %vm3229_vm2, %v8792_v53, 0.0  ;;  %v8796_v55 = vpop.eup %7734 }
 0x497   : > { %3479 = vadd.xlane.f32.xlu0 %v3478_v54  ;;  %v3484_v14 = vsel %vm3229_vm2, %v8796_v55, 0.0 }
 0x499   : > { %v8798_v56 = vpop.eup %7736 }
 0x49a   : > { %v3481_v57 = vsel %vm3229_vm2, %v8798_v56, 0.0  ;;  %v8804_v58 = vpop.eup %7738 }
 0x49b   : > { %3485 = vadd.xlane.f32.xlu0 %v3484_v14  ;;  %3482 = vadd.xlane.f32.xlu1 %v3481_v57  ;;  %v3487_v59 = vsel %vm3229_vm2, %v8804_v58, 0.0 }
 0x49f   : > { %3488 = vadd.xlane.f32.xlu1 %v3487_v59 }
 0x4a6   : > { %v3444_v60 = vpop.xlane.xlu0 %3443 }
 0x4a7   : > { %v3458_v61 = vsub.f32 %v3374_v24, %v3444_v60 }
 0x4a8   : > { %v3447_v62 = vpop.xlane.xlu1 %3446 }
 0x4a9   : > { %v3470_v63 = vmul.f32 1.442695, %v3458_v61  ;;  %v3459_v0 = vsub.f32 %v3377_v31, %v3447_v62 }
 0x4aa   : > { %v3450_v1 = vpop.xlane.xlu0 %3449 }
 0x4ab   : > { %7740 = vpow2.f32 %v3470_v63  ;;  %v3472_v2 = vmul.f32 1.442695, %v3459_v0  ;;  %v3460_v3 = vsub.f32 %v3424_v30, %v3450_v1 }
 0x4ac   : > { %v3453_v4 = vpop.xlane.xlu1 %3452 }
 0x4ad   : > { %7742 = vpow2.f32 %v3472_v2  ;;  %v3474_v23 = vmul.f32 1.442695, %v3460_v3  ;;  %v3461_v5 = vsub.f32 %v3427_v36, %v3453_v4 }
 0x4af   : > { %7744 = vpow2.f32 %v3474_v23  ;;  %v3476_v6 = vmul.f32 1.442695, %v3461_v5 }
 0x4b1   : > { %7746 = vpow2.f32 %v3476_v6 }
 0x4b5   : > { %v8808_v28 = vpop.eup %7740 }
 0x4b6   : > { %v3490_v7 = vsel %vm3229_vm2, %v8808_v28, 0.0 }
 0x4b7   : > { %v8812_v8 = vpop.eup %7742  ;;  %3491 = vadd.xlane.f32.xlu0 %v3490_v7 }
 0x4b8   : > { %v3493_v10 = vsel %vm3229_vm2, %v8812_v8, 0.0 }
 0x4b9   : > { %v8816_v11 = vpop.eup %7744  ;;  %3494 = vadd.xlane.f32.xlu1 %v3493_v10 }
 0x4ba   : > { %v3496_v12 = vsel %vm3229_vm2, %v8816_v11, 0.0 }
 0x4bb   : > { %v8821_v13 = vpop.eup %7746  ;;  %3497 = vadd.xlane.f32.xlu0 %v3496_v12 }
 0x4bc   : > { %v3499_v17 = vsel %vm3229_vm2, %v8821_v13, 0.0 }
 0x4bd   : > { %3500 = vadd.xlane.f32.xlu1 %v3499_v17 }
 0x524   : > { %v3480_v19 = vpop.xlane.xlu0 %3479 }
 0x525   : > { %7748 = vrcp.f32 %v3480_v19 }
 0x528   : > { %v3486_v20 = vpop.xlane.xlu0 %3485  ;;  %v3483_v21 = vpop.xlane.xlu1 %3482 }
 0x529   : > { %7750 = vrcp.f32 %v3486_v20 }
 0x52a   : > { %7752 = vrcp.f32 %v3483_v21 }
 0x52c   : > { %v3489_v22 = vpop.xlane.xlu1 %3488 }
 0x52d   : > { %7754 = vrcp.f32 %v3489_v22 }
 0x52f   : > { %v7749_v24 = vpop.eup %7748 }
 0x530   : > { %v3510_v25 = vmul.f32 %v7749_v24, %v3480_v19  ;;  %v7649_v19 = vld [vmem:[%s9467_s17 + $0x30] sm:$0xff]  }
 0x532   : > { %v3518_v27 = vsub.f32 2.0, %v3510_v25 }
 0x533   : > { %v7751_v26 = vpop.eup %7750 }
 0x534   : > { %v7753_v29 = vpop.eup %7752  ;;  %v3512_v30 = vmul.f32 %v7751_v26, %v3486_v20  ;;  %v3526_v34 = vmul.f32 %v7749_v24, %v3518_v27 }
 0x535   : > { %v3511_v31 = vmul.f32 %v7753_v29, %v3483_v21 }
 0x536   : > { %v3520_v32 = vsub.f32 2.0, %v3512_v30  ;;  %v3534_v45 = vmul.f32 %v8792_v53, %v3526_v34  ;;  %v7651_v30 = vld [vmem:[%s9467_s17 + $0x38] sm:$0xff]  }
 0x537   : > { %v7755_v33 = vpop.eup %7754  ;;  %v3519_v35 = vsub.f32 2.0, %v3511_v31  ;;  %v7650_v31 = vld [vmem:[%s9467_s17 + $0x28] sm:$0xff]  }
 0x538   : > { %v3513_v36 = vmul.f32 %v7755_v33, %v3489_v22  ;;  %v3528_v38 = vmul.f32 %v7751_v26, %v3520_v32  ;;  %v7648_v26 = vld [vmem:[%s9467_s17 + $0x20] sm:$0xff]  }
 0x539   : > { %v3527_v37 = vmul.f32 %v7753_v29, %v3519_v35 }
 0x53a   : > { %v3521_v39 = vsub.f32 2.0, %v3513_v36  ;;  %v3536_v44 = vmul.f32 %v8796_v55, %v3528_v38 }
 0x53b   : > { %v3535_v40 = vmul.f32 %v8798_v56, %v3527_v37 }
 0x53c   : > { %v3529_v41 = vmul.f32 %v7755_v33, %v3521_v39 }
 0x53d   : > { %v3542_v42 = vpack.c.bf16 %v3535_v40, %v3534_v45 }
 0x53e   : > { %v3537_v46 = vmul.f32 %v8804_v58, %v3529_v41 }
 0x53f   : > { %7173 = vmatmul.mubr.msk.bf16.vlgmr.msra.gmra.mrb[16].mxu0 %vm3229_vm2, %v3542_v42 }
 0x540   : > { %v3543_v47 = vpack.c.bf16 %v3537_v46, %v3536_v44  ;;  %7185 = vmatpush3.bf16.msra.mxu0 %v3225_v43  ;;  %7188 = vmatprep.mubr.msk.bf16.mxu0 %vm7907_vm1, %v7906_v49 }
 0x541   : > { %7186 = vmatprep.subr.bf16.mxu0 %v7906_v49 }
 0x542   : > { %7181 = vmatmul.mubr.msk.bf16.vlgmr.msra.gmra.mrb[16].mxu1 %vm3229_vm2, %v3543_v47 }
 0x543   : > { %7193 = vmatpush3.bf16.msra.mxu1 %v3227_v48  ;;  %7196 = vmatprep.mubr.msk.bf16.mxu1 %vm7907_vm1, %v7906_v49 }
 0x544   : > { %v3492_v51 = vpop.xlane.xlu0 %3491  ;;  %7187 = vmatpush3.bf16.msra.mxu0 %v3226_v50  ;;  %7194 = vmatprep.subr.bf16.mxu1 %v7906_v49 }
 0x545   : > { %7756 = vrcp.f32 %v3492_v51  ;;  %7200 = vmatprep.subr.bf16.mxu0 %v7906_v49 }
 0x546   : > { %v3495_v53 = vpop.xlane.xlu1 %3494 }
 0x547   : > { %7758 = vrcp.f32 %v3495_v53  ;;  %7195 = vmatpush3.bf16.msra.mxu1 %v3228_v52 }
 0x548   : > { %v3498_v54 = vpop.xlane.xlu0 %3497  ;;  %7208 = vmatprep.subr.bf16.mxu1 %v7906_v49 }
 0x549   : > { %7760 = vrcp.f32 %v3498_v54 }
 0x54a   : > { %v3501_v55 = vpop.xlane.xlu1 %3500 }
 0x54b   : > { %7762 = vrcp.f32 %v3501_v55 }
 0x54f   : > { %v7757_v56 = vpop.eup %7756 }
 0x550   : > { %v3514_v14 = vmul.f32 %v7757_v56, %v3492_v51 }
 0x551   : > { %v7759_v57 = vpop.eup %7758 }
 0x552   : > { %v3522_v58 = vsub.f32 2.0, %v3514_v14  ;;  %v3515_v59 = vmul.f32 %v7759_v57, %v3495_v53 }
 0x553   : > { %v7761_v60 = vpop.eup %7760 }
 0x554   : > { %v3530_v61 = vmul.f32 %v7757_v56, %v3522_v58  ;;  %v3523_v62 = vsub.f32 2.0, %v3515_v59  ;;  %v3516_v63 = vmul.f32 %v7761_v60, %v3498_v54  ;;  %v6241_v59 = vld [vmem:[%s9468_s27] ss:$0 sm:$0xff]  ;;  %s9474_s27 = sld [smem:[#allocation36_spill]] }
 0x555   : > { %v7763_v0 = vpop.eup %7762 }
 0x556   : > { %v3531_v1 = vmul.f32 %v7759_v57, %v3523_v62  ;;  %v3524_v2 = vsub.f32 2.0, %v3516_v63  ;;  %v3517_v3 = vmul.f32 %v7763_v0, %v3501_v55  ;;  %v3538_v4 = vmul.f32 %v8808_v28, %v3530_v61 }
 0x558   : > { %v3539_v23 = vmul.f32 %v8812_v8, %v3531_v1  ;;  %v3532_v5 = vmul.f32 %v7761_v60, %v3524_v2  ;;  %v3525_v6 = vsub.f32 2.0, %v3517_v3  ;;  %v7645_v8 = vld [vmem:[%s9467_s17 + $0x10] sm:$0xff]   ;;  %v7808_v3 = vld [vmem:[%s8664_s5] sm:$0xff] }
 0x55a   : > { %v3544_v7 = vpack.c.bf16 %v3539_v23, %v3538_v4  ;;  %v3533_v9 = vmul.f32 %v7763_v0, %v3525_v6  ;;  %v3540_v10 = vmul.f32 %v8816_v11, %v3532_v5  ;;  %v7646_v11 = vld [vmem:[%s9467_s17 + $0x8] sm:$0xff]   ;;  %v7652_v6 = vld [vmem:[%s9388_s9] sm:$0xff]  }
 0x55b   : > { %v7809_v23 = vld [vmem:[%s8664_s5 + $0x8] sm:$0xff]  ;;  %s9478_s5 = sld [smem:[#allocation33_spill]] }
 0x55c   : > { %v3541_v12 = vmul.f32 %v8821_v13, %v3533_v9  ;;  %7189 = vmatmul.mubr.msk.bf16.vlgmr.msra.gmra.mrb[20].mxu0 %vm3229_vm2, %v3544_v7  ;;  %v7647_v13 = vld [vmem:[%s9467_s17 + $0x18] sm:$0xff]   ;;  %v7653_v7 = vld [vmem:[%s9388_s9 + $0x40] sm:$0xff]   ;;  %v7654_v9 = vld [vmem:[%s9388_s9 + $0x8] sm:$0xff]  }
 0x55d   : > { %7204 = vmatprep.mubr.msk.bf16.mxu0 %vm7907_vm1, %v7906_v49  ;;  %7201 = vmatpush3.bf16.msra.mxu0 %v7645_v8 }
 0x55e   : > { %v3545_v28 = vpack.c.bf16 %v3541_v12, %v3540_v10  ;;  %7202 = vmatprep.subr.bf16.mxu0 %v7906_v49  ;;  %v7655_v10 = vld [vmem:[%s9388_s9 + $0x48] sm:$0xff]  }
 0x560   : > { %7197 = vmatmul.mubr.msk.bf16.vlgmr.msra.gmra.mrb[20].mxu1 %vm3229_vm2, %v3545_v28 }
 0x561   : > { %7209 = vmatpush3.bf16.msra.mxu1 %v7644_v15  ;;  %7212 = vmatprep.mubr.msk.bf16.mxu1 %vm7907_vm1, %v7906_v49 }
 0x562   : > { %7210 = vmatprep.subr.bf16.mxu1 %v7906_v49  ;;  %7203 = vmatpush3.bf16.msra.mxu0 %v7647_v13 }
 0x563   : > { %7216 = vmatprep.subr.bf16.mxu0 %v7906_v49 }
 0x565   : > { %7211 = vmatpush3.bf16.msra.mxu1 %v7646_v11 }
 0x566   : > { %7224 = vmatprep.subr.bf16.mxu1 %v7906_v49 }
 0x612   : > { %v3583_v16 = vpop.f32.mrb[16].mxu0 }
 0x613   : > { %v7174_v17 = vpop.f32.mrb[17].mxu0 }
 0x614   : > { %v3586_v18 = vpop.f32.mrb[18].mxu0 }
 0x615   : > { %v3722_v20 = vpack.c.bf16 %v3586_v18, %v3583_v16  ;;  %v7175_v21 = vpop.f32.mrb[19].mxu0  ;;  %v3627_v22 = vpop.f32.mrb[16].mxu1  ;;  %v7656_v18 = vld [vmem:[%s9388_s9 + $0x10] sm:$0xff]  }
 0x616   : > { %v7182_v24 = vpop.f32.mrb[17].mxu1  ;;  %v7659_v21 = vld [vmem:[%s9388_s9 + $0x58] sm:$0xff]  }
 0x617   : > { %7213 = vmatmul.mubr.msk.bf16.vlgmr.msra.gmra.mrb[24].mxu1 %vm3229_vm2, %v3722_v20  ;;  %v3630_v25 = vpop.f32.mrb[18].mxu1  ;;  %v7658_v20 = vld [vmem:[%s9388_s9 + $0x18] sm:$0xff]   ;;  %v7661_v24 = vld [vmem:[%s9388_s9 + $0x60] sm:$0xff]  }
 0x618   : > { %v3723_v27 = vpack.c.bf16 %v3630_v25, %v3627_v22  ;;  %v7183_v29 = vpop.f32.mrb[19].mxu1  ;;  %7225 = vmatpush3.bf16.msra.mxu1 %v7649_v19  ;;  %7228 = vmatprep.mubr.msk.bf16.mxu1 %vm7907_vm1, %v7906_v49  ;;  %v7657_v19 = vld [vmem:[%s9388_s9 + $0x50] sm:$0xff]   ;;  %v7660_v22 = vld [vmem:[%s9388_s9 + $0x20] sm:$0xff]   ;;  %v7662_v25 = vld [vmem:[%s9388_s9 + $0x28] sm:$0xff]  }
 0x619   : > { %7226 = vmatprep.subr.bf16.mxu1 %v7906_v49  ;;  %v7665_v29 = vld [vmem:[%s9388_s9 + $0x70] sm:$0xff]  }
 0x61a   : > { %7205 = vmatmul.mubr.msk.bf16.vlgmr.msra.gmra.mrb[24].mxu0 %vm3229_vm2, %v3723_v27  ;;  %v7664_v27 = vld [vmem:[%s9388_s9 + $0x30] sm:$0xff]  }
 0x61b   : > { %7217 = vmatpush3.bf16.msra.mxu0 %v7648_v26  ;;  %7220 = vmatprep.mubr.msk.bf16.mxu0 %vm7907_vm1, %v7906_v49  ;;  %v7663_v26 = vld [vmem:[%s9388_s9 + $0x68] sm:$0xff]  }
 0x61c   : > { %7218 = vmatprep.subr.bf16.mxu0 %v7906_v49  ;;  %7227 = vmatpush3.bf16.msra.mxu1 %v7651_v30  ;;  %v7666_v30 = vld [vmem:[%s9388_s9 + $0x38] sm:$0xff]  }
 0x61d   : > { %7252 = vmatprep.subr.bf16.mxu1 %v7906_v49 }
 0x61f   : > { %7219 = vmatpush3.bf16.msra.mxu0 %v7650_v31  ;;  %v7667_v31 = vld [vmem:[%s9388_s9 + $0x78] sm:$0xff]  }
 0x620   : > { %7232 = vmatprep.subr.bf16.mxu0 %v7906_v49 }
 0x62f   : > { %v3671_v32 = vpop.f32.mrb[20].mxu0 }
 0x630   : > { %v7190_v33 = vpop.f32.mrb[21].mxu0 }
 0x631   : > { %v3674_v34 = vpop.f32.mrb[22].mxu0 }
 0x632   : > { %v3724_v35 = vpack.c.bf16 %v3674_v34, %v3671_v32  ;;  %v7191_v36 = vpop.f32.mrb[23].mxu0 }
 0x633   : > { %v3715_v37 = vpop.f32.mrb[20].mxu1 }
 0x634   : > { %v7198_v38 = vpop.f32.mrb[21].mxu1  ;;  %7221 = vmatmul.mubr.msk.bf16.vlgmr.msra.gmra.mrb[28].mxu0 %vm3229_vm2, %v3724_v35 }
 0x635   : > { %v3718_v39 = vpop.f32.mrb[22].mxu1  ;;  %7248 = vmatprep.mubr.msk.bf16.mxu0 %vm7907_vm1, %v7906_v49  ;;  %7233 = vmatpush3.bf16.msra.mxu0 %v7652_v6 }
 0x636   : > { %v3725_v45 = vpack.c.bf16 %v3718_v39, %v3715_v37  ;;  %v7199_v40 = vpop.f32.mrb[23].mxu1  ;;  %7234 = vmatprep.subr.bf16.mxu0 %v7906_v49  ;;  %v6242_v39 = vld [vmem:[%s9393_s14] ss:$0 sm:$0xff] }
 0x638   : > { %7229 = vmatmul.mubr.msk.bf16.vlgmr.msra.gmra.mrb[28].mxu1 %vm3229_vm2, %v3725_v45 }
 0x639   : > { %7268 = vmatprep.mubr.msk.bf16.mxu1 %vm7907_vm1, %v7906_v49  ;;  %7253 = vmatpush3.bf16.msra.mxu1 %v7653_v7 }
 0x63a   : > { %7254 = vmatprep.subr.bf16.mxu1 %v7906_v49  ;;  %7235 = vmatpush3.bf16.msra.mxu0 %v7654_v9 }
 0x63b   : > { %7236 = vmatprep.subr.bf16.mxu0 %v7906_v49 }
 0x63d   : > { %7255 = vmatpush3.bf16.msra.mxu1 %v7655_v10 }
 0x63e   : > { %7256 = vmatprep.subr.bf16.mxu1 %v7906_v49  ;;  %7237 = vmatpush3.bf16.msra.mxu0 %v7656_v18 }
 0x63f   : > { %7238 = vmatprep.subr.bf16.mxu0 %v7906_v49 }
 0x641   : > { %7257 = vmatpush3.bf16.msra.mxu1 %v7657_v19 }
 0x642   : > { %7258 = vmatprep.subr.bf16.mxu1 %v7906_v49  ;;  %7239 = vmatpush3.bf16.msra.mxu0 %v7658_v20 }
 0x643   : > { %7240 = vmatprep.subr.bf16.mxu0 %v7906_v49 }
 0x645   : > { %7259 = vmatpush3.bf16.msra.mxu1 %v7659_v21 }
 0x646   : > { %7260 = vmatprep.subr.bf16.mxu1 %v7906_v49  ;;  %7241 = vmatpush3.bf16.msra.mxu0 %v7660_v22 }
 0x647   : > { %7242 = vmatprep.subr.bf16.mxu0 %v7906_v49 }
 0x649   : > { %7261 = vmatpush3.bf16.msra.mxu1 %v7661_v24 }
 0x64a   : > { %7262 = vmatprep.subr.bf16.mxu1 %v7906_v49  ;;  %7243 = vmatpush3.bf16.msra.mxu0 %v7662_v25 }
 0x64b   : > { %7244 = vmatprep.subr.bf16.mxu0 %v7906_v49 }
 0x64d   : > { %7263 = vmatpush3.bf16.msra.mxu1 %v7663_v26 }
 0x64e   : > { %7264 = vmatprep.subr.bf16.mxu1 %v7906_v49  ;;  %7245 = vmatpush3.bf16.msra.mxu0 %v7664_v27  ;;  %v4466_v27 = vld [vmem:[#allocation4 + $0x28] sm:$0xff] }
 0x64f   : > { %7246 = vmatprep.subr.bf16.mxu0 %v7906_v49 }
 0x651   : > { %7265 = vmatpush3.bf16.msra.mxu1 %v7665_v29  ;;  %v4468_v29 = vld [vmem:[#allocation4 + $0x38] sm:$0xff] }
 0x652   : > { %7266 = vmatprep.subr.bf16.mxu1 %v7906_v49  ;;  %7247 = vmatpush3.bf16.msra.mxu0 %v7666_v30  ;;  %v4584_v30 = vsel %vm3229_vm2, %v4466_v27, 0 }
 0x653   : > { %7272 = vmatprep.subr.bf16.mxu0 %v7906_v49 }
 0x655   : > { %7267 = vmatpush3.bf16.msra.mxu1 %v7667_v31  ;;  %v4634_v31 = vsel %vm3229_vm2, %v4468_v29, 0 }
 0x656   : > { %7292 = vmatprep.subr.bf16.mxu1 %v7906_v49 }
 0x6ea   : > { %v3840_v41 = vpop.f32.mrb[24].mxu1 }
 0x6eb   : > { %v7214_v42 = vpop.f32.mrb[25].mxu1 }
 0x6ec   : > { %v3843_v43 = vpop.f32.mrb[26].mxu1 }
 0x6ed   : > { %v7215_v44 = vpop.f32.mrb[27].mxu1  ;;  %v3784_v46 = vpop.f32.mrb[24].mxu0 }
 0x6ee   : > { %v3841_v47 = vadd.f32 %v3840_v41, %v3784_v46  ;;  %v7206_v48 = vpop.f32.mrb[25].mxu0 }
 0x6ef   : > { %v3787_v50 = vpop.f32.mrb[26].mxu0  ;;  %v7668_v48 = vld [vmem:[%s9388_s9 + $0x80] sm:$0xff]  }
 0x6f0   : > { %v3844_v51 = vadd.f32 %v3843_v43, %v3787_v50  ;;  %v7207_v52 = vpop.f32.mrb[27].mxu0  ;;  %v6243_v43 = vld [vmem:[%s9394_s15] ss:$0 sm:$0xff] }
 0x6f1   : > { %v7669_v50 = vld [vmem:[%s9388_s9 + $0xc0] sm:$0xff]   ;;  %v7670_v52 = vld [vmem:[%s9388_s9 + $0x88] sm:$0xff]  }
 0x707   : > { %v3901_v53 = vpop.f32.mrb[28].mxu0 }
 0x708   : > { %v3908_v54 = vadd.f32 %v3901_v53, %v3841_v47  ;;  %v7222_v55 = vpop.f32.mrb[29].mxu0  ;;  %v7671_v53 = vld [vmem:[%s9388_s9 + $0xc8] sm:$0xff]  }
 0x709   : > { %v3904_v56 = vpop.f32.mrb[30].mxu0  ;;  %v7673_v55 = vld [vmem:[%s9388_s9 + $0xd0] sm:$0xff]  }
 0x70a   : > { %v3909_v14 = vadd.f32 %v3904_v56, %v3844_v51  ;;  %v7223_v57 = vpop.f32.mrb[31].mxu0  ;;  %v7674_v56 = vld [vmem:[%s9388_s9 + $0x98] sm:$0xff]  }
 0x70b   : > { %v3964_v58 = vpop.f32.mrb[28].mxu1  ;;  %v7676_v57 = vld [vmem:[%s9388_s9 + $0xa0] sm:$0xff]  }
 0x70c   : > { %v3971_v60 = vadd.f32 %v3964_v58, %v3908_v54  ;;  %v7230_v61 = vpop.f32.mrb[29].mxu1  ;;  %v7672_v54 = vld [vmem:[%s9388_s9 + $0x90] sm:$0xff]   ;;  %v7677_v58 = vld [vmem:[%s9388_s9 + $0xe0] sm:$0xff]  }
 0x70d   : > { %v3967_v62 = vpop.f32.mrb[30].mxu1  ;;  %v7680_v61 = vld [vmem:[%s9388_s9 + $0xb0] sm:$0xff]  }
 0x70e   : > { %v3980_v63 = vadd.f32 %v6241_v59, %v3971_v60  ;;  %v3972_v0 = vadd.f32 %v3967_v62, %v3909_v14  ;;  %v7231_v1 = vpop.f32.mrb[31].mxu1  ;;  %v7675_v14 = vld [vmem:[%s9388_s9 + $0xd8] sm:$0xff]   ;;  %v7679_v60 = vld [vmem:[%s9388_s9 + $0xe8] sm:$0xff]   ;;  %v7681_v62 = vld [vmem:[%s9388_s9 + $0xf0] sm:$0xff]  }
 0x70f   : > { %v4461_v1 = vld [vmem:[#allocation4] sm:$0xff] }
 0x710   : > { %v3981_v2 = vadd.f32 %v6241_v59, %v3972_v0  ;;  %v3982_v4 = vadd.f32 %v7808_v3, %v3980_v63  ;;  %v7678_v59 = vld [vmem:[%s9388_s9 + $0xa8] sm:$0xff]   ;;  %v7682_v63 = vld [vmem:[%s9388_s9 + $0xb8] sm:$0xff]   ;;  %v4481_v3 = vsel %vm3229_vm2, %v4461_v1, 0 }
 0x711   : > { %v7683_v0 = vld [vmem:[%s9388_s9 + $0xf8] sm:$0xff]  }
 0x712   : > { %3984 = vadd.xlane.f32.xlu0 %v3982_v4  ;;  %v3983_v5 = vadd.f32 %v7809_v23, %v3981_v2  ;;  %v4463_v2 = vld [vmem:[#allocation4 + $0x10] sm:$0xff]  ;;  %v4462_v23 = vld [vmem:[#allocation4 + $0x8] sm:$0xff] }
 0x713   : > { %v4484_v6 = vsel %vm3229_vm2, %v4462_v23, 0 }
 0x714   : > { %3986 = vadd.xlane.f32.xlu1 %v3983_v5 }
 0x79f   : > { %v3985_v12 = vpop.xlane.xlu0 %3984 }
 0x7a0   : > { %v3989_v15 = vmul.f32 0.0078125, %v3985_v12 }
 0x7a1   : > { %v3987_v28 = vpop.xlane.xlu1 %3986 }
 0x7a2   : > { %v3991_v8 = vsub.f32 %v3982_v4, %v3989_v15  ;;  %v3990_v11 = vmul.f32 0.0078125, %v3987_v28  ;;  %v4531_v4 = vsel %vm3229_vm2, %v4463_v2, 0  ;;  %v4465_v28 = vld [vmem:[#allocation4 + $0x20] sm:$0xff] }
 0x7a3   : > { %v4581_v25 = vsel %vm3229_vm2, %v4465_v28, 0 }
 0x7a4   : > { %v3992_v13 = vsub.f32 %v3983_v5, %v3990_v11  ;;  %v3993_v16 = vmul.f32 %v3991_v8, %v3991_v8  ;;  %v4464_v5 = vld [vmem:[#allocation4 + $0x18] sm:$0xff] }
 0x7a5   : > { %v4534_v7 = vsel %vm3229_vm2, %v4464_v5, 0 }
 0x7a6   : > { %3995 = vadd.xlane.f32.xlu0 %v3993_v16  ;;  %v3994_v17 = vmul.f32 %v3992_v13, %v3992_v13 }
 0x7a8   : > { %3997 = vadd.xlane.f32.xlu1 %v3994_v17 }
 0x833   : > { %v3996_v32 = vpop.xlane.xlu0 %3995 }
 0x834   : > { %v3999_v33 = vmul.f32 0.0078125, %v3996_v32 }
 0x835   : > { %v3998_v34 = vpop.xlane.xlu1 %3997 }
 0x836   : > { %v4001_v35 = vadd.f32 1e-05, %v3999_v33  ;;  %v4000_v36 = vmul.f32 0.0078125, %v3998_v34 }
 0x838   : > { %7764 = vrsqrt.f32 %v4001_v35  ;;  %v4002_v37 = vadd.f32 1e-05, %v4000_v36 }
 0x83a   : > { %7766 = vrsqrt.f32 %v4002_v37 }
 0x842   : > { %v7765_v38 = vpop.eup %7764 }
 0x843   : > { %v4005_v45 = vmul.f32 %v7765_v38, %v3991_v8  ;;  %v4467_v8 = vld [vmem:[#allocation4 + $0x30] sm:$0xff] }
 0x844   : > { %v7767_v40 = vpop.eup %7766  ;;  %v4631_v26 = vsel %vm3229_vm2, %v4467_v8, 0 }
 0x845   : > { %v4006_v41 = vmul.f32 %v7767_v40, %v3992_v13  ;;  %v4014_v42 = vmul.f32 %v6242_v39, %v4005_v45 }
 0x847   : > { %v4015_v44 = vmul.f32 %v6242_v39, %v4006_v41  ;;  %v8971_v46 = vadd.f32 %v6243_v43, %v4014_v42 }
 0x849   : > { %v8973_v47 = vadd.f32 %v6243_v43, %v4015_v44 }
 0x84b   : > { %v4025_v51 = vpack.c.bf16 %v8973_v47, %v8971_v46 }
 0x84d   : > { %7249 = vmatmul.mubr.bf16.vlgmr.msra.gmra.mrb[32].mxu0 %v4025_v51  ;;  %7269 = vmatmul.mubr.bf16.vlgmr.msra.gmra.mrb[32].mxu1 %v4025_v51 }
 0x84e   : > { %7273 = vmatpush3.bf16.msra.mxu0 %v7668_v48  ;;  %7293 = vmatpush3.bf16.msra.mxu1 %v7669_v50  ;;  %v6407_v48 = vld [vmem:[%s8137_s20] sm:$0xff]   ;;  %s9480_s20 = sld [smem:[#allocation34_spill]] }
 0x84f   : > { %7274 = vmatprep.subr.bf16.mxu0 %v7906_v49  ;;  %7294 = vmatprep.subr.bf16.mxu1 %v7906_v49  ;;  %v6408_v50 = vunpack.c.l.bf16 %v6407_v48 }
 0x850   : > { %7288 = vmatprep.mubr.msk.bf16.mxu0 %vm7907_vm1, %v7906_v49  ;;  %7308 = vmatprep.mubr.msk.bf16.mxu1 %vm7907_vm1, %v7906_v49 }
 0x852   : > { %7275 = vmatpush3.bf16.msra.mxu0 %v7670_v52  ;;  %7295 = vmatpush3.bf16.msra.mxu1 %v7671_v53  ;;  %v2773_v52 = vsub.f32 1.0, %v6408_v50 }
 0x853   : > { %7276 = vmatprep.subr.bf16.mxu0 %v7906_v49  ;;  %7296 = vmatprep.subr.bf16.mxu1 %v7906_v49 }
 0x856   : > { %7277 = vmatpush3.bf16.msra.mxu0 %v7672_v54  ;;  %7297 = vmatpush3.bf16.msra.mxu1 %v7673_v55  ;;  %v2775_v54 = vmul.f32 -1e+09, %v2773_v52 }
 0x857   : > { %7278 = vmatprep.subr.bf16.mxu0 %v7906_v49  ;;  %7298 = vmatprep.subr.bf16.mxu1 %v7906_v49 }
 0x85a   : > { %7279 = vmatpush3.bf16.msra.mxu0 %v7674_v56  ;;  %7299 = vmatpush3.bf16.msra.mxu1 %v7675_v14 }
 0x85b   : > { %7280 = vmatprep.subr.bf16.mxu0 %v7906_v49  ;;  %7300 = vmatprep.subr.bf16.mxu1 %v7906_v49 }
 0x85e   : > { %7281 = vmatpush3.bf16.msra.mxu0 %v7676_v57  ;;  %7301 = vmatpush3.bf16.msra.mxu1 %v7677_v58 }
 0x85f   : > { %7282 = vmatprep.subr.bf16.mxu0 %v7906_v49  ;;  %7302 = vmatprep.subr.bf16.mxu1 %v7906_v49 }
 0x862   : > { %7283 = vmatpush3.bf16.msra.mxu0 %v7678_v59  ;;  %7303 = vmatpush3.bf16.msra.mxu1 %v7679_v60 }
 0x863   : > { %7284 = vmatprep.subr.bf16.mxu0 %v7906_v49  ;;  %7304 = vmatprep.subr.bf16.mxu1 %v7906_v49 }
 0x866   : > { %7285 = vmatpush3.bf16.msra.mxu0 %v7680_v61  ;;  %7305 = vmatpush3.bf16.msra.mxu1 %v7681_v62 }
 0x867   : > { %7286 = vmatprep.subr.bf16.mxu0 %v7906_v49  ;;  %7306 = vmatprep.subr.bf16.mxu1 %v7906_v49 }
 0x86a   : > { %7287 = vmatpush3.bf16.msra.mxu0 %v7682_v63  ;;  %7307 = vmatpush3.bf16.msra.mxu1 %v7683_v0 }
 0x86b   : > { %7312 = vmatprep.subr.bf16.mxu0 %v7906_v49  ;;  %7320 = vmatprep.subr.bf16.mxu1 %v7906_v49 }
 0x86d   : > { %7289 = vmatmul.mubr.bf16.vlgmr.msra.gmra.mrb[36].mxu0 %v4025_v51  ;;  %7309 = vmatmul.mubr.bf16.vlgmr.msra.gmra.mrb[36].mxu1 %v4025_v51  ;;  %v6409_v51 = vunpack.c.h.bf16 %v6407_v48 }
 0x86e   : > { %7316 = vmatprep.mubr.msk.bf16.mxu0 %vm7907_vm1, %v7906_v49  ;;  %7324 = vmatprep.mubr.msk.bf16.mxu1 %vm7907_vm1, %v7906_v49 }
 0x86f   : > { %v2774_v53 = vsub.f32 1.0, %v6409_v51 }
 0x871   : > { %v2776_v55 = vmul.f32 -1e+09, %v2774_v53 }
 0x873   : > { %7313 = vmatpush3.bf16.xpose.msra.mxu0 %v4481_v3  ;;  %7321 = vmatpush3.bf16.xpose.msra.mxu1 %v4531_v4 }
 0x874   : > { %7314 = vmatprep.subr.bf16.mxu0 %v7906_v49  ;;  %7322 = vmatprep.subr.bf16.mxu1 %v7906_v49 }
 0x87b   : > { %7315 = vmatpush3.bf16.xpose.msra.mxu0 %v4484_v6  ;;  %7323 = vmatpush3.bf16.xpose.msra.mxu1 %v4534_v7 }
 0x87c   : > { %7328 = vmatprep.subr.bf16.mxu0 %v7906_v49  ;;  %7336 = vmatprep.subr.bf16.mxu1 %v7906_v49 }
 0x920   : > { %v4124_v9 = vpop.f32.mrb[32].mxu0  ;;  %v4232_v10 = vpop.f32.mrb[32].mxu1 }
 0x921   : > { %v7250_v12 = vpop.f32.mrb[33].mxu0  ;;  %v7270_v15 = vpop.f32.mrb[33].mxu1  ;;  %v4131_v11 = vmul.f32 0.17677669, %v4124_v9  ;;  %v4239_v13 = vmul.f32 0.17677669, %v4232_v10 }
 0x922   : > { %v4127_v16 = vpop.f32.mrb[34].mxu0  ;;  %v4235_v17 = vpop.f32.mrb[34].mxu1 }
 0x923   : > { %v4132_v18 = vmul.f32 0.17677669, %v4127_v16  ;;  %v4240_v19 = vmul.f32 0.17677669, %v4235_v17  ;;  %v7251_v20 = vpop.f32.mrb[35].mxu0  ;;  %v7271_v21 = vpop.f32.mrb[35].mxu1 }
 0x925   : > { %v4457_v22 = vpack.c.bf16 %v4132_v18, %v4131_v11  ;;  %v4458_v24 = vpack.c.bf16 %v4240_v19, %v4239_v13 }
 0x927   : > { %7317 = vmatmul.mubr.msk.bf16.vlgmr.msra.gmra.mrb[40].mxu0 %vm3229_vm2, %v4457_v22  ;;  %7325 = vmatmul.mubr.msk.bf16.vlgmr.msra.gmra.mrb[40].mxu1 %vm3229_vm2, %v4458_v24 }
 0x928   : > { %7329 = vmatpush3.bf16.xpose.msra.mxu0 %v4581_v25  ;;  %7337 = vmatpush3.bf16.xpose.msra.mxu1 %v4631_v26 }
 0x929   : > { %7330 = vmatprep.subr.bf16.mxu0 %v7906_v49  ;;  %7338 = vmatprep.subr.bf16.mxu1 %v7906_v49 }
 0x92a   : > { %7332 = vmatprep.mubr.msk.bf16.mxu0 %vm7907_vm1, %v7906_v49  ;;  %7340 = vmatprep.mubr.msk.bf16.mxu1 %vm7907_vm1, %v7906_v49 }
 0x930   : > { %7331 = vmatpush3.bf16.xpose.msra.mxu0 %v4584_v30  ;;  %7339 = vmatpush3.bf16.xpose.msra.mxu1 %v4634_v31 }
 0x931   : > { %7344 = vmatprep.subr.bf16.mxu0 %v7906_v49  ;;  %7352 = vmatprep.subr.bf16.mxu1 %v7906_v49 }
 0x940   : > { %v4340_v32 = vpop.f32.mrb[36].mxu0  ;;  %v4448_v33 = vpop.f32.mrb[36].mxu1 }
 0x941   : > { %v7290_v34 = vpop.f32.mrb[37].mxu0  ;;  %v7310_v35 = vpop.f32.mrb[37].mxu1  ;;  %v4347_v36 = vmul.f32 0.17677669, %v4340_v32  ;;  %v4455_v37 = vmul.f32 0.17677669, %v4448_v33 }
 0x942   : > { %v4343_v38 = vpop.f32.mrb[38].mxu0  ;;  %v4451_v39 = vpop.f32.mrb[38].mxu1 }
 0x943   : > { %v4348_v45 = vmul.f32 0.17677669, %v4343_v38  ;;  %v4456_v40 = vmul.f32 0.17677669, %v4451_v39  ;;  %v7291_v41 = vpop.f32.mrb[39].mxu0  ;;  %v7311_v42 = vpop.f32.mrb[39].mxu1 }
 0x945   : > { %v4459_v43 = vpack.c.bf16 %v4348_v45, %v4347_v36  ;;  %v4460_v44 = vpack.c.bf16 %v4456_v40, %v4455_v37 }
 0x947   : > { %7333 = vmatmul.mubr.msk.bf16.vlgmr.msra.gmra.mrb[44].mxu0 %vm3229_vm2, %v4459_v43  ;;  %7341 = vmatmul.mubr.msk.bf16.vlgmr.msra.gmra.mrb[44].mxu1 %vm3229_vm2, %v4460_v44 }
 0x948   : > { %7348 = vmatprep.mubr.msk.bf16.mxu0 %vm7907_vm1, %v7906_v49  ;;  %7356 = vmatprep.mubr.msk.bf16.mxu1 %vm7907_vm1, %v7906_v49 }
 0x9fa   : > { %v4520_v56 = vpop.f32.mrb[40].mxu0  ;;  %v4570_v14 = vpop.f32.mrb[40].mxu1 }
 0x9fb   : > { %v4521_v57 = vadd.f32 %v4520_v56, %v2775_v54  ;;  %v7318_v58 = vpop.f32.mrb[41].mxu0  ;;  %v7326_v59 = vpop.f32.mrb[41].mxu1  ;;  %v4571_v62 = vadd.f32 %v4570_v14, %v2775_v54 }
 0x9fc   : > { %v4523_v60 = vpop.f32.mrb[42].mxu0  ;;  %v4573_v61 = vpop.f32.mrb[42].mxu1  ;;  %v4469_v59 = vld [vmem:[#allocation5] sm:$0xff] }
 0x9fd   : > { %v4524_v63 = vadd.f32 %v4523_v60, %v2776_v55  ;;  %v7319_v0 = vpop.f32.mrb[43].mxu0  ;;  %v7327_v1 = vpop.f32.mrb[43].mxu1  ;;  %v4677_v2 = vsel %vm3229_vm2, %v4521_v57, -inf  ;;  %v4574_v3 = vadd.f32 %v4573_v61, %v2776_v55  ;;  %v4683_v23 = vsel %vm3229_vm2, %v4571_v62, -inf  ;;  %7345 = vmatpush3.bf16.msra.mxu0 %v4469_v59 }
 0x9fe   : > { %4678 = vmax.xlane.f32.xlu0 %v4677_v2  ;;  %7346 = vmatprep.subr.bf16.mxu0 %v7906_v49  ;;  %v4470_v0 = vld [vmem:[#allocation5 + $0x8] sm:$0xff]  ;;  %v4471_v1 = vld [vmem:[#allocation5 + $0x10] sm:$0xff] }
 0x9ff   : > { %v4680_v4 = vsel %vm3229_vm2, %v4524_v63, -inf  ;;  %v4686_v5 = vsel %vm3229_vm2, %v4574_v3, -inf  ;;  %7353 = vmatpush3.bf16.msra.mxu1 %v4471_v1 }
 0xa00   : > { %4681 = vmax.xlane.f32.xlu1 %v4680_v4  ;;  %7354 = vmatprep.subr.bf16.mxu1 %v7906_v49 }
 0xa01   : > { %7347 = vmatpush3.bf16.msra.mxu0 %v4470_v0 }
 0xa02   : > { %4684 = vmax.xlane.f32.xlu0 %v4683_v23  ;;  %7360 = vmatprep.subr.bf16.mxu0 %v7906_v49  ;;  %v4472_v23 = vld [vmem:[#allocation5 + $0x18] sm:$0xff] }
 0xa03   : > { %7355 = vmatpush3.bf16.msra.mxu1 %v4472_v23 }
 0xa04   : > { %4687 = vmax.xlane.f32.xlu1 %v4686_v5  ;;  %7368 = vmatprep.subr.bf16.mxu1 %v7906_v49 }
 0xa1a   : > { %v4620_v6 = vpop.f32.mrb[44].mxu0  ;;  %v4670_v7 = vpop.f32.mrb[44].mxu1 }
 0xa1b   : > { %v4621_v9 = vadd.f32 %v4620_v6, %v2775_v54  ;;  %v7334_v10 = vpop.f32.mrb[45].mxu0  ;;  %v7342_v12 = vpop.f32.mrb[45].mxu1  ;;  %v4671_v8 = vadd.f32 %v4670_v7, %v2775_v54 }
 0xa1c   : > { %v4623_v15 = vpop.f32.mrb[46].mxu0  ;;  %v4673_v28 = vpop.f32.mrb[46].mxu1 }
 0xa1d   : > { %v4624_v11 = vadd.f32 %v4623_v15, %v2776_v55  ;;  %v7335_v13 = vpop.f32.mrb[47].mxu0  ;;  %v7343_v16 = vpop.f32.mrb[47].mxu1  ;;  %v4689_v17 = vsel %vm3229_vm2, %v4621_v9, -inf  ;;  %v4674_v18 = vadd.f32 %v4673_v28, %v2776_v55  ;;  %v4695_v20 = vsel %vm3229_vm2, %v4671_v8, -inf }
 0xa1e   : > { %4690 = vmax.xlane.f32.xlu0 %v4689_v17 }
 0xa1f   : > { %v4692_v19 = vsel %vm3229_vm2, %v4624_v11, -inf  ;;  %v4698_v21 = vsel %vm3229_vm2, %v4674_v18, -inf }
 0xa20   : > { %4693 = vmax.xlane.f32.xlu1 %v4692_v19 }
 0xa22   : > { %4696 = vmax.xlane.f32.xlu0 %v4695_v20 }
 0xa24   : > { %4699 = vmax.xlane.f32.xlu1 %v4698_v21 }
 0xa8b   : > { %v4679_v22 = vpop.xlane.xlu0 %4678 }
 0xa8c   : > { %v4701_v24 = vsub.f32 %v4521_v57, %v4679_v22 }
 0xa8d   : > { %v4682_v25 = vpop.xlane.xlu1 %4681 }
 0xa8e   : > { %v4709_v26 = vmul.f32 1.442695, %v4701_v24  ;;  %v4702_v27 = vsub.f32 %v4524_v63, %v4682_v25 }
 0xa8f   : > { %v4685_v29 = vpop.xlane.xlu0 %4684 }
 0xa90   : > { %7768 = vpow2.f32 %v4709_v26  ;;  %v4711_v30 = vmul.f32 1.442695, %v4702_v27  ;;  %v4703_v31 = vsub.f32 %v4571_v62, %v4685_v29 }
 0xa91   : > { %v4688_v32 = vpop.xlane.xlu1 %4687 }
 0xa92   : > { %7770 = vpow2.f32 %v4711_v30  ;;  %v4713_v33 = vmul.f32 1.442695, %v4703_v31  ;;  %v4704_v34 = vsub.f32 %v4574_v3, %v4688_v32  ;;  %v4473_v30 = vld [vmem:[#allocation5 + $0x20] sm:$0xff] }
 0xa94   : > { %7772 = vpow2.f32 %v4713_v33  ;;  %v4715_v35 = vmul.f32 1.442695, %v4704_v34  ;;  %v4475_v34 = vld [vmem:[#allocation5 + $0x30] sm:$0xff] }
 0xa96   : > { %7774 = vpow2.f32 %v4715_v35  ;;  %v4474_v35 = vld [vmem:[#allocation5 + $0x28] sm:$0xff] }
 0xa9a   : > { %v9086_v36 = vpop.eup %7768 }
 0xa9b   : > { %v4725_v37 = vsel %vm3229_vm2, %v9086_v36, 0.0 }
 0xa9c   : > { %v9090_v38 = vpop.eup %7770  ;;  %4726 = vadd.xlane.f32.xlu0 %v4725_v37 }
 0xa9d   : > { %v4728_v39 = vsel %vm3229_vm2, %v9090_v38, 0.0 }
 0xa9e   : > { %v9094_v45 = vpop.eup %7772  ;;  %4729 = vadd.xlane.f32.xlu1 %v4728_v39 }
 0xa9f   : > { %v4731_v40 = vsel %vm3229_vm2, %v9094_v45, 0.0 }
 0xaa0   : > { %v9098_v41 = vpop.eup %7774  ;;  %4732 = vadd.xlane.f32.xlu0 %v4731_v40 }
 0xaa1   : > { %v4734_v42 = vsel %vm3229_vm2, %v9098_v41, 0.0 }
 0xaa2   : > { %4735 = vadd.xlane.f32.xlu1 %v4734_v42 }
 0xaab   : > { %v4691_v43 = vpop.xlane.xlu0 %4690 }
 0xaac   : > { %v4705_v44 = vsub.f32 %v4621_v9, %v4691_v43 }
 0xaad   : > { %v4694_v48 = vpop.xlane.xlu1 %4693 }
 0xaae   : > { %v4717_v50 = vmul.f32 1.442695, %v4705_v44  ;;  %v4706_v51 = vsub.f32 %v4624_v11, %v4694_v48 }
 0xaaf   : > { %v4697_v52 = vpop.xlane.xlu0 %4696 }
 0xab0   : > { %7776 = vpow2.f32 %v4717_v50  ;;  %v4719_v53 = vmul.f32 1.442695, %v4706_v51  ;;  %v4707_v54 = vsub.f32 %v4671_v8, %v4697_v52 }
 0xab1   : > { %v4700_v55 = vpop.xlane.xlu1 %4699 }
 0xab2   : > { %7778 = vpow2.f32 %v4719_v53  ;;  %v4721_v56 = vmul.f32 1.442695, %v4707_v54  ;;  %v4708_v14 = vsub.f32 %v4674_v18, %v4700_v55 }
 0xab4   : > { %7780 = vpow2.f32 %v4721_v56  ;;  %v4723_v57 = vmul.f32 1.442695, %v4708_v14 }
 0xab6   : > { %7782 = vpow2.f32 %v4723_v57 }
 0xaba   : > { %v9102_v58 = vpop.eup %7776 }
 0xabb   : > { %v4737_v60 = vsel %vm3229_vm2, %v9102_v58, 0.0 }
 0xabc   : > { %v9106_v61 = vpop.eup %7778  ;;  %4738 = vadd.xlane.f32.xlu0 %v4737_v60 }
 0xabd   : > { %v4740_v62 = vsel %vm3229_vm2, %v9106_v61, 0.0 }
 0xabe   : > { %v9111_v63 = vpop.eup %7780  ;;  %4741 = vadd.xlane.f32.xlu1 %v4740_v62 }
 0xabf   : > { %v4743_v2 = vsel %vm3229_vm2, %v9111_v63, 0.0 }
 0xac0   : > { %v9115_v3 = vpop.eup %7782  ;;  %4744 = vadd.xlane.f32.xlu0 %v4743_v2 }
 0xac1   : > { %v4746_v4 = vsel %vm3229_vm2, %v9115_v3, 0.0 }
 0xac2   : > { %4747 = vadd.xlane.f32.xlu1 %v4746_v4  ;;  %v7684_v4 = vld [vmem:[%s9391_s12] sm:$0xff]  }
 0xb29   : > { %v4727_v5 = vpop.xlane.xlu0 %4726 }
 0xb2a   : > { %7784 = vrcp.f32 %v4727_v5 }
 0xb2b   : > { %v4730_v6 = vpop.xlane.xlu1 %4729 }
 0xb2c   : > { %7786 = vrcp.f32 %v4730_v6 }
 0xb2d   : > { %v4733_v7 = vpop.xlane.xlu0 %4732 }
 0xb2e   : > { %7788 = vrcp.f32 %v4733_v7 }
 0xb2f   : > { %v4736_v9 = vpop.xlane.xlu1 %4735 }
 0xb30   : > { %7790 = vrcp.f32 %v4736_v9 }
 0xb34   : > { %v7785_v10 = vpop.eup %7784 }
 0xb35   : > { %v4757_v12 = vmul.f32 %v7785_v10, %v4727_v5 }
 0xb36   : > { %v7787_v15 = vpop.eup %7786 }
 0xb37   : > { %v4765_v28 = vsub.f32 2.0, %v4757_v12  ;;  %v4758_v8 = vmul.f32 %v7787_v15, %v4730_v6 }
 0xb38   : > { %v7789_v11 = vpop.eup %7788 }
 0xb39   : > { %v4773_v13 = vmul.f32 %v7785_v10, %v4765_v28  ;;  %v4766_v16 = vsub.f32 2.0, %v4758_v8  ;;  %v4759_v17 = vmul.f32 %v7789_v11, %v4733_v7  ;;  %v7689_v7 = vld [vmem:[%s9391_s12 + $0x30] sm:$0xff]   ;;  %v7688_v8 = vld [vmem:[%s9391_s12 + $0x20] sm:$0xff]  }
 0xb3a   : > { %v7791_v18 = vpop.eup %7790 }
 0xb3b   : > { %v4774_v19 = vmul.f32 %v7787_v15, %v4766_v16  ;;  %v4767_v20 = vsub.f32 2.0, %v4759_v17  ;;  %v4760_v21 = vmul.f32 %v7791_v18, %v4736_v9  ;;  %v4781_v22 = vmul.f32 %v9086_v36, %v4773_v13  ;;  %v4476_v36 = vld [vmem:[#allocation5 + $0x38] sm:$0xff]  ;;  %v7690_v17 = vld [vmem:[%s9391_s12 + $0x28] sm:$0xff]  }
 0xb3c   : > { %v7691_v16 = vld [vmem:[%s9391_s12 + $0x38] sm:$0xff]  }
 0xb3d   : > { %v4782_v24 = vmul.f32 %v9090_v38, %v4774_v19  ;;  %v4775_v25 = vmul.f32 %v7789_v11, %v4767_v20  ;;  %v4768_v26 = vsub.f32 2.0, %v4760_v21 }
 0xb3f   : > { %v4789_v27 = vpack.c.bf16 %v4782_v24, %v4781_v22  ;;  %v4776_v29 = vmul.f32 %v7791_v18, %v4768_v26  ;;  %v4783_v31 = vmul.f32 %v9094_v45, %v4775_v25 }
 0xb41   : > { %v4784_v32 = vmul.f32 %v9098_v41, %v4776_v29  ;;  %7349 = vmatmul.mubr.msk.bf16.vlgmr.msra.gmra.mrb[48].mxu0 %vm3229_vm2, %v4789_v27 }
 0xb42   : > { %7361 = vmatpush3.bf16.msra.mxu0 %v4473_v30  ;;  %7364 = vmatprep.mubr.msk.bf16.mxu0 %vm7907_vm1, %v7906_v49 }
 0xb43   : > { %v4790_v33 = vpack.c.bf16 %v4784_v32, %v4783_v31  ;;  %7362 = vmatprep.subr.bf16.mxu0 %v7906_v49 }
 0xb45   : > { %7357 = vmatmul.mubr.msk.bf16.vlgmr.msra.gmra.mrb[48].mxu1 %vm3229_vm2, %v4790_v33 }
 0xb46   : > { %7369 = vmatpush3.bf16.msra.mxu1 %v4475_v34  ;;  %7363 = vmatpush3.bf16.msra.mxu0 %v4474_v35 }
 0xb47   : > { %7370 = vmatprep.subr.bf16.mxu1 %v7906_v49  ;;  %7372 = vmatprep.mubr.msk.bf16.mxu1 %vm7907_vm1, %v7906_v49 }
 0xb48   : > { %7376 = vmatprep.subr.bf16.mxu0 %v7906_v49 }
 0xb49   : > { %v4739_v37 = vpop.xlane.xlu0 %4738 }
 0xb4a   : > { %7792 = vrcp.f32 %v4739_v37  ;;  %7371 = vmatpush3.bf16.msra.mxu1 %v4476_v36 }
 0xb4b   : > { %v4742_v38 = vpop.xlane.xlu1 %4741  ;;  %7384 = vmatprep.subr.bf16.mxu1 %v7906_v49 }
 0xb4c   : > { %7794 = vrcp.f32 %v4742_v38 }
 0xb4d   : > { %v4745_v39 = vpop.xlane.xlu0 %4744 }
 0xb4e   : > { %7796 = vrcp.f32 %v4745_v39 }
 0xb4f   : > { %v4748_v45 = vpop.xlane.xlu1 %4747 }
 0xb50   : > { %7798 = vrcp.f32 %v4748_v45 }
 0xb54   : > { %v7793_v40 = vpop.eup %7792 }
 0xb55   : > { %v4761_v41 = vmul.f32 %v7793_v40, %v4739_v37 }
 0xb56   : > { %v7795_v42 = vpop.eup %7794 }
 0xb57   : > { %v4769_v43 = vsub.f32 2.0, %v4761_v41  ;;  %v4762_v44 = vmul.f32 %v7795_v42, %v4742_v38 }
 0xb58   : > { %v7797_v48 = vpop.eup %7796 }
 0xb59   : > { %v4777_v50 = vmul.f32 %v7793_v40, %v4769_v43  ;;  %v4770_v51 = vsub.f32 2.0, %v4762_v44  ;;  %v4763_v52 = vmul.f32 %v7797_v48, %v4745_v39 }
 0xb5a   : > { %v7799_v53 = vpop.eup %7798 }
 0xb5b   : > { %v4778_v54 = vmul.f32 %v7795_v42, %v4770_v51  ;;  %v4771_v55 = vsub.f32 2.0, %v4763_v52  ;;  %v4764_v56 = vmul.f32 %v7799_v53, %v4748_v45  ;;  %v4785_v14 = vmul.f32 %v9102_v58, %v4777_v50 }
 0xb5d   : > { %v4786_v57 = vmul.f32 %v9106_v61, %v4778_v54  ;;  %v4779_v59 = vmul.f32 %v7797_v48, %v4771_v55  ;;  %v4772_v60 = vsub.f32 2.0, %v4764_v56  ;;  %v7685_v61 = vld [vmem:[%s9391_s12 + $0x10] sm:$0xff]   ;;  %v6356_v48 = vld [vmem:[%s9392_s13] ss:$0 sm:$0xff] }
 0xb5f   : > { %v4791_v62 = vpack.c.bf16 %v4786_v57, %v4785_v14  ;;  %v4780_v0 = vmul.f32 %v7799_v53, %v4772_v60  ;;  %v4787_v1 = vmul.f32 %v9111_v63, %v4779_v59  ;;  %v7686_v63 = vld [vmem:[%s9391_s12 + $0x8] sm:$0xff]  }
 0xb60   : > { %v7692_v59 = vld [vmem:[%s9469_s16] ss:$8 sps:$4 sm:$0xff]   ;;  %v7694_v60 = vld [vmem:[%s9469_s16 + $0x4] ss:$8 sps:$4 sm:$0xff]  }
 0xb61   : > { %v4788_v2 = vmul.f32 %v9115_v3, %v4780_v0  ;;  %7365 = vmatmul.mubr.msk.bf16.vlgmr.msra.gmra.mrb[52].mxu0 %vm3229_vm2, %v4791_v62  ;;  %v7687_v3 = vld [vmem:[%s9391_s12 + $0x18] sm:$0xff]  }
 0xb62   : > { %7380 = vmatprep.mubr.msk.bf16.mxu0 %vm7907_vm1, %v7906_v49  ;;  %7377 = vmatpush3.bf16.msra.mxu0 %v7685_v61  ;;  %v7697_v62 = vld [vmem:[%s9469_s16 + $0x14] ss:$8 sps:$4 sm:$0xff]  }
 0xb63   : > { %v4792_v58 = vpack.c.bf16 %v4788_v2, %v4787_v1  ;;  %7378 = vmatprep.subr.bf16.mxu0 %v7906_v49 }
 0xb65   : > { %7373 = vmatmul.mubr.msk.bf16.vlgmr.msra.gmra.mrb[52].mxu1 %vm3229_vm2, %v4792_v58 }
 0xb66   : > { %7385 = vmatpush3.bf16.msra.mxu1 %v7684_v4  ;;  %7388 = vmatprep.mubr.msk.bf16.mxu1 %vm7907_vm1, %v7906_v49 }
 0xb67   : > { %7386 = vmatprep.subr.bf16.mxu1 %v7906_v49  ;;  %7379 = vmatpush3.bf16.msra.mxu0 %v7687_v3  ;;  %v7700_v3 = vld [vmem:[%s9469_s16 + $0x24] ss:$8 sps:$4 sm:$0xff]  }
 0xb68   : > { %7392 = vmatprep.subr.bf16.mxu0 %v7906_v49 }
 0xb6a   : > { %7387 = vmatpush3.bf16.msra.mxu1 %v7686_v63 }
 0xb6b   : > { %7400 = vmatprep.subr.bf16.mxu1 %v7906_v49 }
 0xc14   : > { %v4830_v23 = vpop.f32.mrb[48].mxu0 }
 0xc15   : > { %v7350_v5 = vpop.f32.mrb[49].mxu0 }
 0xc16   : > { %v4833_v6 = vpop.f32.mrb[50].mxu0  ;;  %v7703_v5 = vld [vmem:[%s9469_s16 + $0x34] ss:$8 sps:$4 sm:$0xff]  }
 0xc17   : > { %v4969_v9 = vpack.c.bf16 %v4833_v6, %v4830_v23  ;;  %v7351_v10 = vpop.f32.mrb[51].mxu0  ;;  %v7698_v23 = vld [vmem:[%s9469_s16 + $0x20] ss:$8 sps:$4 sm:$0xff]   ;;  %v7701_v6 = vld [vmem:[%s9469_s16 + $0x30] ss:$8 sps:$4 sm:$0xff]  }
 0xc18   : > { %v4874_v12 = vpop.f32.mrb[48].mxu1  ;;  %v7709_v10 = vld [vmem:[%s9469_s16 + $0x54] ss:$8 sps:$4 sm:$0xff]  }
 0xc19   : > { %v7358_v15 = vpop.f32.mrb[49].mxu1  ;;  %7389 = vmatmul.mubr.msk.bf16.vlgmr.msra.gmra.mrb[56].mxu1 %vm3229_vm2, %v4969_v9  ;;  %v7704_v9 = vld [vmem:[%s9469_s16 + $0x40] ss:$8 sps:$4 sm:$0xff]  }
 0xc1a   : > { %v4877_v28 = vpop.f32.mrb[50].mxu1  ;;  %7401 = vmatpush3.bf16.msra.mxu1 %v7689_v7  ;;  %7404 = vmatprep.mubr.msk.bf16.mxu1 %vm7907_vm1, %v7906_v49  ;;  %v7706_v7 = vld [vmem:[%s9469_s16 + $0x44] ss:$8 sps:$4 sm:$0xff]  }
 0xc1b   : > { %v4970_v11 = vpack.c.bf16 %v4877_v28, %v4874_v12  ;;  %v7359_v13 = vpop.f32.mrb[51].mxu1  ;;  %7402 = vmatprep.subr.bf16.mxu1 %v7906_v49  ;;  %v7707_v12 = vld [vmem:[%s9469_s16 + $0x50] ss:$8 sps:$4 sm:$0xff]   ;;  %v7712_v15 = vld [vmem:[%s9469_s16 + $0x64] ss:$8 sps:$4 sm:$0xff]  }
 0xc1c   : > { %v7710_v28 = vld [vmem:[%s9469_s16 + $0x60] ss:$8 sps:$4 sm:$0xff]   ;;  %v7908_v13 = vmov 0  }
 0xc1d   : > { %7381 = vmatmul.mubr.msk.bf16.vlgmr.msra.gmra.mrb[56].mxu0 %vm3229_vm2, %v4970_v11  ;;  %v7713_v11 = vld [vmem:[%s9469_s16 + $0x70] ss:$8 sps:$4 sm:$0xff]  }
 0xc1e   : > { %7393 = vmatpush3.bf16.msra.mxu0 %v7688_v8  ;;  %7396 = vmatprep.mubr.msk.bf16.mxu0 %vm7907_vm1, %v7906_v49  ;;  %v7715_v8 = vld [vmem:[%s9469_s16 + $0x74] ss:$8 sps:$4 sm:$0xff]  }
 0xc1f   : > { %7394 = vmatprep.subr.bf16.mxu0 %v7906_v49  ;;  %7403 = vmatpush3.bf16.msra.mxu1 %v7691_v16  ;;  %v7716_v16 = vld [vmem:[%s9470_s0 + $0x40] sm:$0xff]  }
 0xc20   : > { %6714 = vmatprep.subr.bf16.mxu1 %v7716_v16 }
 0xc22   : > { %7395 = vmatpush3.bf16.msra.mxu0 %v7690_v17  ;;  %v7717_v17 = vld [vmem:[%s9471_s25] sm:$0xff]  }
 0xc23   : > { %5380 = vmatprep.subr.bf16.mxu0 %v7694_v60 }
 0xc34   : > { %v4918_v18 = vpop.f32.mrb[52].mxu0 }
 0xc35   : > { %v7366_v19 = vpop.f32.mrb[53].mxu0 }
 0xc36   : > { %v4921_v20 = vpop.f32.mrb[54].mxu0  ;;  %v7719_v19 = vld [vmem:[%s9471_s25 + $0x8] sm:$0xff]  }
 0xc37   : > { %v4971_v21 = vpack.c.bf16 %v4921_v20, %v4918_v18  ;;  %v7367_v22 = vpop.f32.mrb[55].mxu0  ;;  %v7718_v18 = vld [vmem:[%s9471_s25 + $0x48] sm:$0xff]   ;;  %v7720_v20 = vld [vmem:[%s9471_s25 + $0x50] sm:$0xff]  }
 0xc38   : > { %v4962_v24 = vpop.f32.mrb[52].mxu1  ;;  %v7722_v22 = vld [vmem:[%s9471_s25 + $0x58] sm:$0xff]  }
 0xc39   : > { %v7374_v25 = vpop.f32.mrb[53].mxu1  ;;  %7397 = vmatmul.mubr.msk.bf16.vlgmr.msra.gmra.mrb[60].mxu0 %vm3229_vm2, %v4971_v21  ;;  %v7721_v21 = vld [vmem:[%s9471_s25 + $0x10] sm:$0xff]  }
 0xc3a   : > { %v4965_v26 = vpop.f32.mrb[54].mxu1  ;;  %5381 = vmatpush1.bf16.msra.mxu0 %v7692_v59  ;;  %5412 = vmatprep.mubr.bf16.mxu0 %v7908_v13  ;;  %v7724_v25 = vld [vmem:[%s9471_s25 + $0x60] sm:$0xff]  }
 0xc3b   : > { %v4972_v27 = vpack.c.bf16 %v4965_v26, %v4962_v24  ;;  %v7375_v29 = vpop.f32.mrb[55].mxu1  ;;  %5382 = vmatprep.subr.bf16.mxu0 %v7697_v62  ;;  %v7723_v24 = vld [vmem:[%s9471_s25 + $0x18] sm:$0xff]   ;;  %v7725_v26 = vld [vmem:[%s9471_s25 + $0x20] sm:$0xff]  }
 0xc3d   : > { %7405 = vmatmul.mubr.msk.bf16.vlgmr.msra.gmra.mrb[60].mxu1 %vm3229_vm2, %v4972_v27  ;;  %v7726_v27 = vld [vmem:[%s9471_s25 + $0x68] sm:$0xff]  }
 0xc3e   : > { %6715 = vmatpush3.bf16.msra.mxu1 %v7717_v17 }
 0xc3f   : > { %6716 = vmatprep.subr.bf16.mxu1 %v7718_v18 }
 0xc42   : > { %6717 = vmatpush3.bf16.msra.mxu1 %v7719_v19 }
 0xc43   : > { %6718 = vmatprep.subr.bf16.mxu1 %v7720_v20 }
 0xc46   : > { %6719 = vmatpush3.bf16.msra.mxu1 %v7721_v21 }
 0xc47   : > { %6720 = vmatprep.subr.bf16.mxu1 %v7722_v22 }
 0xc4a   : > { %6721 = vmatpush3.bf16.msra.mxu1 %v7723_v24 }
 0xc4b   : > { %6722 = vmatprep.subr.bf16.mxu1 %v7724_v25 }
 0xc4e   : > { %6723 = vmatpush3.bf16.msra.mxu1 %v7725_v26 }
 0xc4f   : > { %6724 = vmatprep.subr.bf16.mxu1 %v7726_v27 }
 0xcec   : > { %v5087_v30 = vpop.f32.mrb[56].mxu1 }
 0xced   : > { %v7390_v31 = vpop.f32.mrb[57].mxu1 }
 0xcee   : > { %v5090_v32 = vpop.f32.mrb[58].mxu1 }
 0xcef   : > { %v7391_v49 = vpop.f32.mrb[59].mxu1 }
 0xcf0   : > { %v5031_v33 = vpop.f32.mrb[56].mxu0 }
 0xcf1   : > { %v5088_v34 = vadd.f32 %v5087_v30, %v5031_v33  ;;  %v7382_v35 = vpop.f32.mrb[57].mxu0 }
 0xcf2   : > { %v5034_v36 = vpop.f32.mrb[58].mxu0  ;;  %v6357_v35 = vld [vmem:[%s9472_s28] ss:$0 sm:$0xff] }
 0xcf3   : > { %v5091_v37 = vadd.f32 %v5090_v32, %v5034_v36  ;;  %v7383_v38 = vpop.f32.mrb[59].mxu0 }
 0xd0c   : > { %v5148_v39 = vpop.f32.mrb[60].mxu0 }
 0xd0d   : > { %v5155_v45 = vadd.f32 %v5148_v39, %v5088_v34  ;;  %v7398_v40 = vpop.f32.mrb[61].mxu0 }
 0xd0e   : > { %v5151_v41 = vpop.f32.mrb[62].mxu0 }
 0xd0f   : > { %v5156_v42 = vadd.f32 %v5151_v41, %v5091_v37  ;;  %v7399_v43 = vpop.f32.mrb[63].mxu0 }
 0xd10   : > { %v5211_v44 = vpop.f32.mrb[60].mxu1 }
 0xd11   : > { %v5218_v50 = vadd.f32 %v5211_v44, %v5155_v45  ;;  %v7406_v51 = vpop.f32.mrb[61].mxu1  ;;  %v6358_v45 = vld [vmem:[%s9473_s2] ss:$0 sm:$0xff]  ;;  %v7727_v44 = vld [vmem:[%s9471_s25 + $0x28] sm:$0xff]   ;;  %s9476_s2 = sld [smem:[#allocation12_spill]] }
 0xd12   : > { %v5214_v52 = vpop.f32.mrb[62].mxu1  ;;  %6725 = vmatpush3.bf16.msra.mxu1 %v7727_v44  ;;  %v7730_v51 = vld [vmem:[%s9471_s25 + $0x78] sm:$0xff]  }
 0xd13   : > { %v5227_v53 = vadd.f32 %v6356_v48, %v5218_v50  ;;  %v5219_v54 = vadd.f32 %v5214_v52, %v5156_v42  ;;  %v7407_v55 = vpop.f32.mrb[63].mxu1  ;;  %v7729_v50 = vld [vmem:[%s9471_s25 + $0x30] sm:$0xff]   ;;  %v7731_v52 = vld [vmem:[%s9471_s25 + $0x38] sm:$0xff]  }
 0xd15   : > { %v5228_v56 = vadd.f32 %v6356_v48, %v5219_v54  ;;  %v5229_v14 = vadd.f32 %v5227_v53, %v8971_v46  ;;  %v7695_v46 = vld [vmem:[%s9469_s16 + $0x10] ss:$8 sps:$4 sm:$0xff]   ;;  %v5290_v53 = vlaneseq }
 0xd16   : > { %5383 = vmatpush1.bf16.msra.mxu0 %v7695_v46  ;;  %v7728_v48 = vld [vmem:[%s9471_s25 + $0x70] sm:$0xff]  }
 0xd17   : > { %5231 = vadd.xlane.f32.xlu0 %v5229_v14  ;;  %v5230_v57 = vadd.f32 %v5228_v56, %v8973_v47  ;;  %5384 = vmatprep.subr.bf16.mxu0 %v7700_v3  ;;  %v5291_v54 = vshrl.u32 %v5290_v53, 7  ;;  %v5288_v56 = vld [vmem:[%s9474_s27] sm:$0x3]  ;;  %s6396_s1 = sshll.u32 %s9476_s2, 2  ;;  %s5665_s27 = sshll.u32 %s8139_s29, 4  ;;  %s9321_s27 = int_to_ptr.vmem [resolvable:$true] %s5665_s27 }
 0xd18   : > { %6726 = vmatprep.subr.bf16.mxu1 %v7728_v48  ;;  %s5662_s8 = sadd.s32 %s6396_s1, %s9477_s18  ;;  %s9483_s18 = sand.u32 1, %s9479_s7  }
 0xd19   : > { %5233 = vadd.xlane.f32.xlu1 %v5230_v57  ;;  %6727 = vmatpush3.bf16.msra.mxu1 %v7729_v50  ;;  %v5292_v55 = vsub.s32 0, %v5291_v54  ;;  %s6397_s26 = sshll.u32 %s5662_s8, 7  ;;  %s9327_s1 = scalar_lea.sflag [#allocation7], %s9483_s18 }
 0xd1a   : > { %5385 = vmatpush1.bf16.msra.mxu0 %v7698_v23  ;;  %6728 = vmatprep.subr.bf16.mxu1 %v7730_v51  ;;  %s7810_s19 = scalar_lea.vmem %s9321_s27, 256 }
 0xd1b   : > { %5386 = vmatprep.subr.bf16.mxu0 %v7703_v5  ;;  %p7811_p1 = scmp.ne.s32.totalorder %s9321_s27, %s7810_s19 }
 0xd1d   : > { %6729 = vmatpush3.bf16.msra.mxu1 %v7731_v52  ;;  %p7812_p2 = pnand %p7811_p1, %p8088_p3 }
 0xd1e   : > { %5387 = vmatpush1.bf16.msra.mxu0 %v7701_v6 }
 0xd1f   : > { %5388 = vmatprep.subr.bf16.mxu0 %v7706_v7  ;;  %v6375_v7 = vld [vmem:[%s9475_s23] ss:$0 sm:$0xff]  ;;  %s9482_s23 = sld [smem:[#allocation39_spill]]  ;;  %p7813_p4 = pneg %p7812_p2 }
 0xd22   : > { %5389 = vmatpush1.bf16.msra.mxu0 %v7704_v9 }
 0xd23   : > { %5390 = vmatprep.subr.bf16.mxu0 %v7709_v10 }
 0xd25   : > { %s9319_s2 = scalar_lea.hbm %s9482_s23, %s6397_s26 }
 0xd26   : > { %5391 = vmatpush1.bf16.msra.mxu0 %v7707_v12 }
 0xd27   : > { %5392 = vmatprep.subr.bf16.mxu0 %v7712_v15 }
 0xd2a   : > { %5393 = vmatpush1.bf16.msra.mxu0 %v7710_v28 }
 0xd2b   : > { %5394 = vmatprep.subr.bf16.mxu0 %v7715_v8 }
 0xd2e   : > { %5395 = vmatpush1.bf16.msra.mxu0 %v7713_v11 }
 0xda4   : > { %v5232_v47 = vpop.xlane.xlu0 %5231 }
 0xda5   : > { %v5235_v0 = vmul.f32 0.0078125, %v5232_v47 }
 0xda6   : > { %v5234_v1 = vpop.xlane.xlu1 %5233 }
 0xda7   : > { %v9201_v2 = vsub.f32 %v5229_v14, %v5235_v0  ;;  %v5236_v4 = vmul.f32 0.0078125, %v5234_v1  ;;  %v5296_v14 = vsub.s32 1, %v5291_v54 }
 0xda9   : > { %v9203_v58 = vsub.f32 %v5230_v57, %v5236_v4  ;;  %v5239_v61 = vmul.f32 %v9201_v2, %v9201_v2  ;;  %v5293_v57 = vrot.slane %v5288_v56, %v5292_v55  ;;  %v5297_v59 = vrot.slane %v5288_v56, %v5296_v14 }
 0xdab   : > { %5241 = vadd.xlane.f32.xlu0 %v5239_v61  ;;  %v5240_v63 = vmul.f32 %v9203_v58, %v9203_v58 }
 0xdad   : > { %5243 = vadd.xlane.f32.xlu1 %v5240_v63 }
 0xe38   : > { %v5242_v29 = vpop.xlane.xlu0 %5241 }
 0xe39   : > { %v5245_v30 = vmul.f32 0.0078125, %v5242_v29 }
 0xe3a   : > { %v5244_v31 = vpop.xlane.xlu1 %5243 }
 0xe3b   : > { %v5247_v32 = vadd.f32 1e-05, %v5245_v30  ;;  %v5246_v49 = vmul.f32 0.0078125, %v5244_v31 }
 0xe3d   : > { %7800 = vrsqrt.f32 %v5247_v32  ;;  %v5248_v33 = vadd.f32 1e-05, %v5246_v49 }
 0xe3f   : > { %7802 = vrsqrt.f32 %v5248_v33  ;;  %v6392_v33 = vld [vmem:[%s9478_s5] ss:$0 sm:$0xff]  ;;  %s7814_s5 = sshll.u32 %s7909_s24, 4  ;;  %s7815_s5 = int_to_ptr.vmem [resolvable:$false] %s7814_s5 }
 0xe40   : > { %s7816_s8 = scalar_lea.vmem %s7815_s5, 512  ;;  %p7817_p5 = scmp.lt.s32.totalorder %s9321_s27, %s7815_s5 }
 0xe41   : > { %p7818_p6 = scmp.lt.s32.totalorder %s7816_s8, %s7810_s19 }
 0xe43   : > { %p7819_p7 = por %p7818_p6, %p7817_p5 }
 0xe45   : > { %p7820_p9 = pnand %p7819_p7, %p7813_p4 }
 0xe47   : > { %v7801_v34 = vpop.eup %7800 }
 0xe48   : > { %v5251_v36 = vmul.f32 %v7801_v34, %v9201_v2 }
 0xe49   : > { %v7803_v37 = vpop.eup %7802 }
 0xe4a   : > { %v5252_v38 = vmul.f32 %v7803_v37, %v9203_v58  ;;  %v5260_v39 = vmul.f32 %v6357_v35, %v5251_v36  ;;  %v6393_v36 = vld [vmem:[%s9480_s20] ss:$0 sm:$0xff] }
 0xe4c   : > { %v5261_v40 = vmul.f32 %v6357_v35, %v5252_v38  ;;  %v5269_v41 = vadd.f32 %v6358_v45, %v5260_v39 }
 0xe4e   : > { %v5270_v42 = vadd.f32 %v6358_v45, %v5261_v40 }
 0xe50   : > { %v5271_v43 = vpack.c.bf16 %v5270_v42, %v5269_v41 }
 0xe52   : > { %5413 = vmatmul.mubr.bf16.vlgmr.msra.gmra.mrb[64].mxu0 %v5271_v43 }
 0xf25   : > { %v5414_v60 = vpop.f32.mrb[64].mxu0 }
 0xf26   : > { %v5415_v62 = vadd.f32 %v5414_v60, %v5293_v57  ;;  %v5416_v46 = vpop.f32.mrb[65].mxu0 }
 0xf27   : > { %v5417_v47 = vadd.f32 %v5416_v46, %v5297_v59  ;;  %v5418_v0 = vpop.f32.mrb[66].mxu0 }
 0xf28   : > { %v5419_v1 = vadd.f32 %v5418_v0, %v5293_v57  ;;  %v5420_v2 = vpop.f32.mrb[67].mxu0  ;;  %v5423_v58 = vmax.f32 %v5415_v62, 0.0 }
 0xf29   : > { %v5421_v4 = vadd.f32 %v5420_v2, %v5297_v59  ;;  %v5424_v63 = vmax.f32 %v5417_v47, 0.0 }
 0xf2a   : > { %v5425_v61 = vmax.f32 %v5419_v1, 0.0 }
 0xf2b   : > { %v5426_v3 = vmax.f32 %v5421_v4, 0.0 }
 0xf2c   : > { %v5427_v23 = vpack.c.bf16 %v5425_v61, %v5423_v58 }
 0xf2d   : > { %v5428_v5 = vpack.c.bf16 %v5426_v3, %v5424_v63 }
 0xf2f   : > { %5596 = vmatprep.mubr.bf16.mxu1 %v5428_v5 }
 0xf30   : > { %5597 = vmatmul.mubr.bf16.vlgmr.msra.gmra.mrb[64].mxu1 %v5427_v23 }
0x1003   : > { %v6730_v6 = vpop.f32.mrb[64].mxu1 }
0x1004   : > { %v6731_v9 = vpop.f32.mrb[65].mxu1 }
0x1005   : > { %v6732_v10 = vadd.f32 %v6731_v9, %v6730_v6  ;;  %v6733_v12 = vpop.f32.mrb[66].mxu1 }
0x1006   : > { %v6734_v15 = vpop.f32.mrb[67].mxu1 }
0x1007   : > { %v5599_v28 = vadd.f32 %v6732_v10, %v6375_v7  ;;  %v6735_v8 = vadd.f32 %v6734_v15, %v6733_v12 }
0x1009   : > { %v5602_v11 = vadd.f32 %v6735_v8, %v6375_v7  ;;  %v5605_v13 = vadd.f32 %v5599_v28, %v5269_v41 }
0x100b   : > { %5607 = vadd.xlane.f32.xlu0 %v5605_v13  ;;  %v5606_v16 = vadd.f32 %v5602_v11, %v5270_v42 }
0x100d   : > { %5609 = vadd.xlane.f32.xlu1 %v5606_v16 }
0x1098   : > { %v5608_v17 = vpop.xlane.xlu0 %5607 }
0x1099   : > { %v5611_v18 = vmul.f32 0.0078125, %v5608_v17 }
0x109a   : > { %v5610_v19 = vpop.xlane.xlu1 %5609 }
0x109b   : > { %v5613_v20 = vsub.f32 %v5605_v13, %v5611_v18  ;;  %v5612_v21 = vmul.f32 0.0078125, %v5610_v19 }
0x109d   : > { %v5614_v22 = vsub.f32 %v5606_v16, %v5612_v21  ;;  %v5615_v24 = vmul.f32 %v5613_v20, %v5613_v20 }
0x109f   : > { %5617 = vadd.xlane.f32.xlu0 %v5615_v24  ;;  %v5616_v25 = vmul.f32 %v5614_v22, %v5614_v22 }
0x10a1   : > { %5619 = vadd.xlane.f32.xlu1 %v5616_v25 }
0x112c   : > { %v5618_v26 = vpop.xlane.xlu0 %5617 }
0x112d   : > { %v5621_v27 = vmul.f32 0.0078125, %v5618_v26 }
0x112e   : > { %v5620_v29 = vpop.xlane.xlu1 %5619 }
0x112f   : > { %v5623_v30 = vadd.f32 1e-05, %v5621_v27  ;;  %v5622_v31 = vmul.f32 0.0078125, %v5620_v29 }
0x1131   : > { %7804 = vrsqrt.f32 %v5623_v30  ;;  %v5624_v32 = vadd.f32 1e-05, %v5622_v31 }
0x1133   : > { %7806 = vrsqrt.f32 %v5624_v32 }
0x113b   : > { %v7805_v49 = vpop.eup %7804 }
0x113c   : > { %v5627_v34 = vmul.f32 %v7805_v49, %v5613_v20 }
0x113d   : > { %v7807_v35 = vpop.eup %7806 }
0x113e   : > { %v5636_v37 = vmul.f32 %v6392_v33, %v5627_v34  ;;  %v5628_v38 = vmul.f32 %v7807_v35, %v5614_v22 }
0x1140   : > { %v5637_v39 = vmul.f32 %v6392_v33, %v5628_v38  ;;  %v5645_v45 = vadd.f32 %v6393_v36, %v5636_v37 }
0x1142   : > { %v5646_v40 = vadd.f32 %v6393_v36, %v5637_v39  ;;  %5647 = vst [vmem:[%s8139_s29] sm:$0xff] %v5645_v45 }
0x1144   : > { %5648 = vst [vmem:[%s8139_s29 + $0x8] sm:$0xff] %v5646_v40 }
0x1145   : > { %7823 = shalt.err (!%p7820_p9)
}
0x1146   : > { %s7824_s29 = scalar_lea.hbm %s9319_s2, 256  ;;  %s7828_s4 = scalar_lea.hbm %s9482_s23, 1024 }
0x1147   : > { %p7825_p10 = scmp.ne.s32.totalorder %s9319_s2, %s7824_s29  ;;  %p7829_p13 = scmp.lt.u32.totalorder %s9319_s2, %s9482_s23 }
0x1148   : > { %p7830_p0 = scmp.lt.u32.totalorder %s7828_s4, %s7824_s29  ;;  %p7832_p2 = scmp.lt.u32.totalorder %s7824_s29, %s9319_s2 }
0x1149   : > { %p7826_p11 = pnand %p7825_p10, %p8088_p3 }
0x114a   : > { %p7831_p1 = por %p7830_p0, %p7829_p13 }
0x114b   : > { %p7827_p12 = pneg %p7826_p11 }
0x114c   : > { %p7833_p4 = por %p7832_p2, %p7831_p1 }
0x114e   : > { %p7834_p5 = pnand %p7833_p4, %p7827_p12 }
0x1150   : > { %7837 = shalt.err (!%p7834_p5)
}
0x1151   : > { %s7910_s28 = smov 128   ;;  %s7911_s22 = smov 8  }
0x1152   : > { %7408 = dma.vmem_to_hbm [thread:$0]  (%p8088_p3), %s9321_s27, 256, %s9319_s2, %s9327_s1, %s7910_s28, %s7910_s28, %s7911_s22  }
0x1153 PF: > { %s9484_s18 = sld [smem:[#allocation15_spill]]  ;;  %s9485_s19 = sld [smem:[#allocation9_spill]] }
0x1159   : > { %p7414_p6 = scmp.ge.s32.totalorder %s9484_s18, 2  ;;  %s5680_s5 = sand.u32 1, %s9485_s19  }
0x115a   : > { %s5681_s8 = scalar_lea.sflag [#allocation7], %s5680_s5 }
0x115b   : > { %p7411_p7 = pnand %p7414_p6, %p8097_p8 }
0x115d   : > { %7871 = dma.done.wait (!%p7411_p7), %s5681_s8, 256  }
0x115e   : > { %7873 = vsyncadd (!%p7411_p7), %s5681_s8, 4294967040  ;;  %s37_s0 = sadd.s32 1, %s9484_s18   ;;  %s9487_s5 = sld [smem:[#allocation10_spill]] }
0x115f   : > { %p34_p9 = scmp.ge.s32.totalorder %s37_s0, 6   ;;  %s9488_s26 = sld [smem:[#allocation11_spill]] }
0x1160   : > { %s9489_s27 = sld [smem:[#allocation20_spill]]  ;;  %s9490_s28 = sld [smem:[#allocation13_spill]] }
0x1161   : > { %s9491_s6 = sld [smem:[#allocation14_spill]]  ;;  %s9492_s2 = sld [smem:[#allocation16_spill]] }
0x1162   : > { %s9493_s29 = sld [smem:[#allocation18_spill]]  ;;  %36 = sbr.rel (!%p34_p9) target bundleno = 24 (0x18), region = 201 }
0x1169   :  { %5686 = vsyncpa [#allocation7], 1 }
0x116a   :  { %5688 = vsyncpa [#allocation7 + $0x1], 1 }

</bundles_post_ra>
